<compile_context>
chip_gen: v7x
topology: tpu7x:2x2x1
jax: 0.10.0
libtpu: 0.0.40
codegen_flags: <defaults>
</compile_context>

<pallas_src>
import functools

import jax
import jax.numpy as jnp
from jax.experimental import pallas as pl
from jax.experimental.pallas import tpu as pltpu


# ----------------------------- fused per-(batch, head) kernel -----------------

def _dsa3d_kernel(q_ref, val_ref, base_ref, coord_ref,
                  woa_ref, boa_ref, wv_ref, bv_ref, wo_ref, bo_ref,
                  out_ref, *, num_points, z_scale):
    """One (batch, head) step of the fused deformable spatial attention.

    q_ref:     (nq, E)     query (+pos) tokens
    val_ref:   (NV, E)     raw value tokens, NV = D*H*W, token = d*H*W + y*W + x
    base_ref:  (nq, 2)     pixel-space reference coords (x, y) per query
    coord_ref: (8, NV)     rows 0..2 = float (x, y, d) lane coordinates
    woa_ref:   (E, 4*np)   this head's fused [off_x|off_y|off_z|logits] weights
    boa_ref:   (1, 4*np)
    wv_ref:    (E, hd)     this head's value-projection columns
    bv_ref:    (1, hd)
    wo_ref:    (hd, E)     this head's output-projection rows
    bo_ref:    (1, E)
    out_ref:   (nq, E)     resident accumulator across the head axis
    """
    np_ = num_points
    h = pl.program_id(1)

    # Fused sampling_offsets ‖ attention_weights projection for this head.
    oa = (jnp.dot(q_ref[...], woa_ref[...], preferred_element_type=jnp.float32)
          + boa_ref[...])                                     # (nq, 4*np)
    off_x = oa[:, 0 * np_:1 * np_]
    off_y = oa[:, 1 * np_:2 * np_]
    off_z = oa[:, 2 * np_:3 * np_]
    logits = oa[:, 3 * np_:4 * np_]

    # Softmax over sampling points (exact divide: tiny tensor, keeps parity).
    m = jnp.max(logits, axis=-1, keepdims=True)
    e = jnp.exp(logits - m)
    attn = e / jnp.sum(e, axis=-1, keepdims=True)             # (nq, np)

    # Pixel-space sampling coords (grid_sample, align_corners=False):
    #   x_pix = (ref_x + off_x / W) * W - 0.5 = base_x + off_x   (base_x = col)
    #   z_pix = (off_z / num_frames) * D - 0.5
    xpix = base_ref[:, 0:1] + off_x                           # (nq, np)
    ypix = base_ref[:, 1:2] + off_y
    zpix = off_z * z_scale - 0.5

    # Hoisted float lane coordinates of the (d, y, x)-flattened value volume.
    xl = coord_ref[0:1, :]                                    # (1, NV)
    yl = coord_ref[1:2, :]
    dl = coord_ref[2:3, :]

    nq = q_ref.shape[0]
    nv = coord_ref.shape[1]

    # Lane-dense sampling matrix S: tent-function trilinear weights.  Out-of-
    # range corners get weight 0 automatically (== grid_sample zeros padding).
    s = jnp.zeros((nq, nv), jnp.float32)
    for p in range(np_):                                      # static unroll, np small
        wx = jnp.maximum(1.0 - jnp.abs(xpix[:, p:p + 1] - xl), 0.0)
        wy = jnp.maximum(1.0 - jnp.abs(ypix[:, p:p + 1] - yl), 0.0)
        wz = jnp.maximum(1.0 - jnp.abs(zpix[:, p:p + 1] - dl), 0.0)
        s = s + (attn[:, p:p + 1] * wx) * (wy * wz)

    # Value projection (this head's columns), gather+reduce on the MXU, and the
    # per-head slice of the output projection, accumulated into the resident out.
    v_h = (jnp.dot(val_ref[...], wv_ref[...], preferred_element_type=jnp.float32)
           + bv_ref[...])                                     # (NV, hd)
    sampled = jnp.dot(s, v_h, preferred_element_type=jnp.float32)        # (nq, hd)
    contrib = jnp.dot(sampled, wo_ref[...], preferred_element_type=jnp.float32)

    @pl.when(h == 0)
    def _init():
        out_ref[...] = jnp.broadcast_to(bo_ref[...], out_ref.shape)

    out_ref[...] += contrib


# ------------------------------ layer forward --------------------------------

def deformable_spatial_attention_layer_3d(packed_params, query, value,
                                          query_pos=None, *, spatial_shapes, cfg):
    """DeformableSpatialAttentionLayer3D.forward (dropout = identity).

    query:     (bs, num_query, embed_dims)
    value:     (bs, num_query * D, embed_dims),  D = 2*num_frames - 1
    query_pos: (bs, num_query, embed_dims) or None
    """
    bs, nq, E = query.shape
    nh = cfg["num_heads"]
    np_ = cfg["num_points"]
    nframes = cfg["num_frames"]
    H, W = spatial_shapes
    D = 2 * nframes - 1
    NV = nq * D
    hd = packed_params["w_v"].shape[-1]
    assert nq == H * W and value.shape[1] == NV

    q = query + query_pos if query_pos is not None else query

    # Hoisted constants (constant-folded by XLA): float lane-coordinate table of
    # the (d, y, x)-flattened value volume, and per-query pixel-space base coords.
    lin = jnp.arange(NV, dtype=jnp.int32)
    coords = jnp.concatenate([
        jnp.stack([(lin % W).astype(jnp.float32),
                   ((lin // W) % H).astype(jnp.float32),
                   (lin // (H * W)).astype(jnp.float32)], axis=0),
        jnp.zeros((5, NV), jnp.float32)], axis=0)              # (8, NV)
    qi = jnp.arange(nq, dtype=jnp.int32)
    base = jnp.stack([(qi % W).astype(jnp.float32),
                      (qi // W).astype(jnp.float32)], axis=-1)  # (nq, 2)

    kernel = functools.partial(_dsa3d_kernel, num_points=np_,
                               z_scale=float(D) / float(nframes))

    out = pl.pallas_call(
        kernel,
        out_shape=jax.ShapeDtypeStruct((bs, nq, E), jnp.float32),
        grid_spec=pltpu.PrefetchScalarGridSpec(
            num_scalar_prefetch=0,
            grid=(bs, nh),
            in_specs=[
                # Leading size-1 dims squeezed (None) so the kernel sees 2-D tiles.
                pl.BlockSpec((None, nq, E), lambda b, h: (b, 0, 0)),       # q (+pos)
                pl.BlockSpec((None, NV, E), lambda b, h: (b, 0, 0)),       # value tokens
                pl.BlockSpec((nq, 2), lambda b, h: (0, 0)),                # base coords
                pl.BlockSpec((8, NV), lambda b, h: (0, 0)),                # lane coords
                pl.BlockSpec((None, E, 4 * np_), lambda b, h: (h, 0, 0)),  # W_oa[h]
                pl.BlockSpec((None, 1, 4 * np_), lambda b, h: (h, 0, 0)),  # b_oa[h]
                pl.BlockSpec((None, E, hd), lambda b, h: (h, 0, 0)),       # W_v[h]
                pl.BlockSpec((None, 1, hd), lambda b, h: (h, 0, 0)),       # b_v[h]
                pl.BlockSpec((None, hd, E), lambda b, h: (h, 0, 0)),       # W_o[h]
                pl.BlockSpec((1, E), lambda b, h: (0, 0)),                 # b_o
            ],
            out_specs=pl.BlockSpec((None, nq, E), lambda b, h: (b, 0, 0)),
        ),
        compiler_params=pltpu.CompilerParams(
            dimension_semantics=("parallel", "arbitrary")),
    )(q, value, base, coords,
      packed_params["w_oa"], packed_params["b_oa"],
      packed_params["w_v"], packed_params["b_v"],
      packed_params["w_o"], packed_params["b_o"])
    # nn.Dropout -> identity (eval mode)
    return out


# ------------------------------- param handling -------------------------------

def init_layer_params(key, cfg):
    """Parameters with PyTorch nn.Linear semantics (JAX (in, out) weight layout)."""
    E = cfg["embed_dims"]
    nh, np_ = cfg["num_heads"], cfg["num_points"]
    value_dims = (E // nh) * nh

    def lin(k, i, o, scale=0.1):
        kw, kb = jax.random.split(k)
        return (jax.random.uniform(kw, (i, o), jnp.float32, -scale, scale),
                jax.random.uniform(kb, (o,), jnp.float32, -scale, scale))

    ks = jax.random.split(key, 4)
    off_w, off_b = lin(ks[0], E, nh * np_ * 3)
    attn_w, attn_b = lin(ks[1], E, nh * np_)
    value_w, value_b = lin(ks[2], E, value_dims)
    out_w, out_b = lin(ks[3], value_dims, E)
    # TODO(synk): replicate the yaw/pitch/roll sampling-offset bias init (only
    #             defined for num_heads == 18 in the reference); random here.
    return dict(off_w=off_w, off_b=off_b, attn_w=attn_w, attn_b=attn_b,
                value_w=value_w, value_b=value_b, out_w=out_w, out_b=out_b)


def prepare_params(params, cfg):
    """Repack PyTorch-layout params into per-head blocks consumed by the kernel.

    Called once, outside jit — no per-call reshape/transpose ops in the forward.
    """
    E = cfg["embed_dims"]
    nh, np_ = cfg["num_heads"], cfg["num_points"]
    value_dims = params["value_w"].shape[1]
    hd = value_dims // nh

    # Per-head fused [off_x(np)|off_y(np)|off_z(np)|logits(np)] projection.
    ow = params["off_w"].reshape(E, nh, np_, 3).transpose(1, 0, 3, 2)
    ow = ow.reshape(nh, E, 3 * np_)
    ob = params["off_b"].reshape(nh, np_, 3).transpose(0, 2, 1).reshape(nh, 1, 3 * np_)
    aw = params["attn_w"].reshape(E, nh, np_).transpose(1, 0, 2)        # (nh, E, np)
    ab = params["attn_b"].reshape(nh, 1, np_)
    w_oa = jnp.concatenate([ow, aw], axis=-1)                           # (nh, E, 4*np)
    b_oa = jnp.concatenate([ob, ab], axis=-1)                           # (nh, 1, 4*np)

    w_v = params["value_w"].reshape(E, nh, hd).transpose(1, 0, 2)       # (nh, E, hd)
    b_v = params["value_b"].reshape(nh, 1, hd)
    w_o = params["out_w"].reshape(nh, hd, E)                            # (nh, hd, E)
    b_o = params["out_b"].reshape(1, E)
    return dict(w_oa=w_oa, b_oa=b_oa, w_v=w_v, b_v=b_v, w_o=w_o, b_o=b_o)


# ----------------------- pure-JAX reference (validation) ----------------------

def _reference_forward(pp, query, value, query_pos, *, spatial_shapes, cfg):
    """Non-Pallas reference implementing the same forward math."""
    bs, nq, E = query.shape
    nh, np_, nf = cfg["num_heads"], cfg["num_points"], cfg["num_frames"]
    H, W = spatial_shapes
    D = 2 * nf - 1
    NV = nq * D
    q = query + query_pos if query_pos is not None else query

    oa = jnp.einsum("bqe,hec->bhqc", q, pp["w_oa"]) + pp["b_oa"][None]
    off_x, off_y = oa[..., 0:np_], oa[..., np_:2 * np_]
    off_z, logits = oa[..., 2 * np_:3 * np_], oa[..., 3 * np_:]
    attn = jax.nn.softmax(logits, axis=-1)

    qi = jnp.arange(nq)
    xpix = (qi % W).astype(jnp.float32)[None, None, :, None] + off_x
    ypix = (qi // W).astype(jnp.float32)[None, None, :, None] + off_y
    zpix = off_z * (float(D) / float(nf)) - 0.5

    lin = jnp.arange(NV)
    xl = (lin % W).astype(jnp.float32)
    yl = ((lin // W) % H).astype(jnp.float32)
    dl = (lin // (H * W)).astype(jnp.float32)
    wx = jnp.maximum(1.0 - jnp.abs(xpix[..., None] - xl), 0.0)
    wy = jnp.maximum(1.0 - jnp.abs(ypix[..., None] - yl), 0.0)
    wz = jnp.maximum(1.0 - jnp.abs(zpix[..., None] - dl), 0.0)
    s = jnp.sum(attn[..., None] * wx * wy * wz, axis=3)                 # (bs,nh,nq,NV)

    v = jnp.einsum("bne,hej->bhnj", value, pp["w_v"]) + pp["b_v"][None]
    sampled = jnp.einsum("bhqn,bhnj->bhqj", s, v)
    out = jnp.einsum("bhqj,hje->bqe", sampled, pp["w_o"]) + pp["b_o"][None]
    return out


# --------------------------------- main ---------------------------------------

if __name__ == "__main__":
    cfg = dict(embed_dims=32, num_heads=4, num_points=4, num_frames=3)
    H, W = 8, 8
    bs = 2
    E = cfg["embed_dims"]
    nq = H * W
    D = 2 * cfg["num_frames"] - 1

    key = jax.random.PRNGKey(0)
    kp, kq, kqp, kv = jax.random.split(key, 4)
    params = init_layer_params(kp, cfg)
    packed = prepare_params(params, cfg)   # one-time repack, outside jit

    query = jax.random.normal(kq, (bs, nq, E), jnp.float32)
    query_pos = jax.random.normal(kqp, (bs, nq, E), jnp.float32)
    value = jax.random.normal(kv, (bs, nq * D, E), jnp.float32)

    fwd = jax.jit(functools.partial(deformable_spatial_attention_layer_3d,
                                    spatial_shapes=(H, W), cfg=cfg))
    out = fwd(packed, query, value, query_pos)
    jax.block_until_ready(out)

    assert out.shape == (bs, nq, E)
    assert bool(jnp.all(jnp.isfinite(out)))

    ref = _reference_forward(packed, query, value, query_pos,
                             spatial_shapes=(H, W), cfg=cfg)
    max_err = float(jnp.max(jnp.abs(out - ref)))
    assert max_err < 2e-2, f"mismatch vs pure-JAX reference: max_err={max_err}"

    print("KERNEL_OK")
</pallas_src>

<mosaic_0001>
module attributes {stable_mosaic.version = 11 : i64} {
  func.func @_dsa3d_kernel(%arg0: i32, %arg1: i32, %arg2: memref<1x64x32xf32, #tpu.memory_space<vmem>>, %arg3: memref<1x320x32xf32, #tpu.memory_space<vmem>>, %arg4: memref<64x2xf32, #tpu.memory_space<vmem>>, %arg5: memref<8x320xf32, #tpu.memory_space<vmem>>, %arg6: memref<1x32x16xf32, #tpu.memory_space<vmem>>, %arg7: memref<1x1x16xf32, #tpu.memory_space<vmem>>, %arg8: memref<1x32x8xf32, #tpu.memory_space<vmem>>, %arg9: memref<1x1x8xf32, #tpu.memory_space<vmem>>, %arg10: memref<1x8x32xf32, #tpu.memory_space<vmem>>, %arg11: memref<1x32xf32, #tpu.memory_space<vmem>>, %arg12: memref<1x64x32xf32, #tpu.memory_space<vmem>>) attributes {dimension_semantics = [#tpu.dimension_semantics<parallel>, #tpu.dimension_semantics<arbitrary>], iteration_bounds = array<i64: 2, 4>, scalar_prefetch = 0 : i64, scratch_operands = 0 : i64, tpu.core_type = #tpu.core_type<tc>, window_params = [{transform_indices = @transform_0, window_bounds = array<i64: 1, 64, 32>}, {transform_indices = @transform_1, window_bounds = array<i64: 1, 320, 32>}, {pipeline_mode = #tpu.pipeline_mode<synchronous>, transform_indices = @transform_2, window_bounds = array<i64: 64, 2>}, {pipeline_mode = #tpu.pipeline_mode<synchronous>, transform_indices = @transform_3, window_bounds = array<i64: 8, 320>}, {transform_indices = @transform_4, window_bounds = array<i64: 1, 32, 16>}, {transform_indices = @transform_5, window_bounds = array<i64: 1, 1, 16>}, {transform_indices = @transform_6, window_bounds = array<i64: 1, 32, 8>}, {transform_indices = @transform_7, window_bounds = array<i64: 1, 1, 8>}, {transform_indices = @transform_8, window_bounds = array<i64: 1, 8, 32>}, {pipeline_mode = #tpu.pipeline_mode<synchronous>, transform_indices = @transform_9, window_bounds = array<i64: 1, 32>}, {transform_indices = @transform_10, window_bounds = array<i64: 1, 64, 32>}]} {
    %c0 = arith.constant 0 : index
    %c0_0 = arith.constant 0 : index
    %c0_1 = arith.constant 0 : index
    %0 = vector.load %arg2[%c0, %c0_0, %c0_1] : memref<1x64x32xf32, #tpu.memory_space<vmem>>, vector<1x64x32xf32>
    %1 = vector.shape_cast %0 : vector<1x64x32xf32> to vector<64x32xf32>
    %c0_2 = arith.constant 0 : index
    %c0_3 = arith.constant 0 : index
    %c0_4 = arith.constant 0 : index
    %2 = vector.load %arg6[%c0_2, %c0_3, %c0_4] : memref<1x32x16xf32, #tpu.memory_space<vmem>>, vector<1x32x16xf32>
    %3 = vector.shape_cast %2 : vector<1x32x16xf32> to vector<32x16xf32>
    %cst = arith.constant dense<0.000000e+00> : vector<64x16xf32>
    %4 = tpu.matmul %1, %3, %cst {dimension_numbers = #tpu.dot_dimension_numbers<[1], [0], [0], [1], [0, 0, 1, 1], [], []>} : vector<64x32xf32>, vector<32x16xf32>, vector<64x16xf32> -> vector<64x16xf32>
    %c0_5 = arith.constant 0 : index
    %c0_6 = arith.constant 0 : index
    %c0_7 = arith.constant 0 : index
    %5 = vector.load %arg7[%c0_5, %c0_6, %c0_7] : memref<1x1x16xf32, #tpu.memory_space<vmem>>, vector<1x1x16xf32>
    %6 = vector.shape_cast %5 : vector<1x1x16xf32> to vector<1x16xf32>
    %7 = vector.broadcast %6 : vector<1x16xf32> to vector<64x16xf32>
    %8 = arith.addf %4, %7 : vector<64x16xf32>
    %9 = vector.extract_strided_slice %8 {offsets = [0, 0], sizes = [64, 4], strides = [1, 1]} : vector<64x16xf32> to vector<64x4xf32>
    %10 = vector.extract_strided_slice %8 {offsets = [0, 4], sizes = [64, 4], strides = [1, 1]} : vector<64x16xf32> to vector<64x4xf32>
    %11 = vector.extract_strided_slice %8 {offsets = [0, 8], sizes = [64, 4], strides = [1, 1]} : vector<64x16xf32> to vector<64x4xf32>
    %12 = vector.extract_strided_slice %8 {offsets = [0, 12], sizes = [64, 4], strides = [1, 1]} : vector<64x16xf32> to vector<64x4xf32>
    %cst_8 = arith.constant dense<0xFF800000> : vector<64xf32>
    %13 = vector.multi_reduction <maximumf>, %12, %cst_8 [1] : vector<64x4xf32> to vector<64xf32>
    %14 = vector.shape_cast %13 : vector<64xf32> to vector<64x1xf32>
    %15 = vector.broadcast %14 : vector<64x1xf32> to vector<64x4xf32>
    %16 = arith.subf %12, %15 : vector<64x4xf32>
    %17 = math.exp %16 : vector<64x4xf32>
    %cst_9 = arith.constant dense<0.000000e+00> : vector<64xf32>
    %18 = vector.multi_reduction <add>, %17, %cst_9 [1] : vector<64x4xf32> to vector<64xf32>
    %19 = vector.shape_cast %18 : vector<64xf32> to vector<64x1xf32>
    %20 = vector.broadcast %19 : vector<64x1xf32> to vector<64x4xf32>
    %21 = arith.divf %17, %20 : vector<64x4xf32>
    %c0_10 = arith.constant 0 : index
    %c0_11 = arith.constant 0 : index
    %22 = vector.load %arg4[%c0_10, %c0_11] : memref<64x2xf32, #tpu.memory_space<vmem>>, vector<64x1xf32>
    %23 = vector.broadcast %22 : vector<64x1xf32> to vector<64x4xf32>
    %24 = arith.addf %23, %9 : vector<64x4xf32>
    %c0_12 = arith.constant 0 : index
    %c1 = arith.constant 1 : index
    %25 = vector.load %arg4[%c0_12, %c1] : memref<64x2xf32, #tpu.memory_space<vmem>>, vector<64x1xf32>
    %26 = vector.broadcast %25 : vector<64x1xf32> to vector<64x4xf32>
    %27 = arith.addf %26, %10 : vector<64x4xf32>
    %cst_13 = arith.constant 1.66666663 : f32
    %28 = vector.broadcast %cst_13 : f32 to vector<64x4xf32>
    %29 = arith.mulf %11, %28 : vector<64x4xf32>
    %cst_14 = arith.constant 5.000000e-01 : f32
    %30 = vector.broadcast %cst_14 : f32 to vector<64x4xf32>
    %31 = arith.subf %29, %30 : vector<64x4xf32>
    %c0_15 = arith.constant 0 : index
    %c0_16 = arith.constant 0 : index
    %32 = vector.load %arg5[%c0_15, %c0_16] : memref<8x320xf32, #tpu.memory_space<vmem>>, vector<1x320xf32>
    %c1_17 = arith.constant 1 : index
    %c0_18 = arith.constant 0 : index
    %33 = vector.load %arg5[%c1_17, %c0_18] : memref<8x320xf32, #tpu.memory_space<vmem>>, vector<1x320xf32>
    %c2 = arith.constant 2 : index
    %c0_19 = arith.constant 0 : index
    %34 = vector.load %arg5[%c2, %c0_19] : memref<8x320xf32, #tpu.memory_space<vmem>>, vector<1x320xf32>
    %cst_20 = arith.constant 0.000000e+00 : f32
    %35 = vector.broadcast %cst_20 : f32 to vector<64x320xf32>
    %36 = vector.extract_strided_slice %24 {offsets = [0, 0], sizes = [64, 1], strides = [1, 1]} : vector<64x4xf32> to vector<64x1xf32>
    %37 = vector.broadcast %36 : vector<64x1xf32> to vector<64x320xf32>
    %38 = vector.broadcast %32 : vector<1x320xf32> to vector<64x320xf32>
    %39 = arith.subf %37, %38 : vector<64x320xf32>
    %40 = math.absf %39 : vector<64x320xf32>
    %cst_21 = arith.constant 1.000000e+00 : f32
    %41 = vector.broadcast %cst_21 : f32 to vector<64x320xf32>
    %42 = arith.subf %41, %40 : vector<64x320xf32>
    %cst_22 = arith.constant 0.000000e+00 : f32
    %43 = vector.broadcast %cst_22 : f32 to vector<64x320xf32>
    %44 = arith.maximumf %42, %43 : vector<64x320xf32>
    %45 = vector.extract_strided_slice %27 {offsets = [0, 0], sizes = [64, 1], strides = [1, 1]} : vector<64x4xf32> to vector<64x1xf32>
    %46 = vector.broadcast %45 : vector<64x1xf32> to vector<64x320xf32>
    %47 = vector.broadcast %33 : vector<1x320xf32> to vector<64x320xf32>
    %48 = arith.subf %46, %47 : vector<64x320xf32>
    %49 = math.absf %48 : vector<64x320xf32>
    %cst_23 = arith.constant 1.000000e+00 : f32
    %50 = vector.broadcast %cst_23 : f32 to vector<64x320xf32>
    %51 = arith.subf %50, %49 : vector<64x320xf32>
    %cst_24 = arith.constant 0.000000e+00 : f32
    %52 = vector.broadcast %cst_24 : f32 to vector<64x320xf32>
    %53 = arith.maximumf %51, %52 : vector<64x320xf32>
    %54 = vector.extract_strided_slice %31 {offsets = [0, 0], sizes = [64, 1], strides = [1, 1]} : vector<64x4xf32> to vector<64x1xf32>
    %55 = vector.broadcast %54 : vector<64x1xf32> to vector<64x320xf32>
    %56 = vector.broadcast %34 : vector<1x320xf32> to vector<64x320xf32>
    %57 = arith.subf %55, %56 : vector<64x320xf32>
    %58 = math.absf %57 : vector<64x320xf32>
    %cst_25 = arith.constant 1.000000e+00 : f32
    %59 = vector.broadcast %cst_25 : f32 to vector<64x320xf32>
    %60 = arith.subf %59, %58 : vector<64x320xf32>
    %cst_26 = arith.constant 0.000000e+00 : f32
    %61 = vector.broadcast %cst_26 : f32 to vector<64x320xf32>
    %62 = arith.maximumf %60, %61 : vector<64x320xf32>
    %63 = vector.extract_strided_slice %21 {offsets = [0, 0], sizes = [64, 1], strides = [1, 1]} : vector<64x4xf32> to vector<64x1xf32>
    %64 = vector.broadcast %63 : vector<64x1xf32> to vector<64x320xf32>
    %65 = arith.mulf %64, %44 : vector<64x320xf32>
    %66 = arith.mulf %53, %62 : vector<64x320xf32>
    %67 = arith.mulf %65, %66 : vector<64x320xf32>
    %68 = arith.addf %35, %67 : vector<64x320xf32>
    %69 = vector.extract_strided_slice %24 {offsets = [0, 1], sizes = [64, 1], strides = [1, 1]} : vector<64x4xf32> to vector<64x1xf32>
    %70 = vector.broadcast %69 : vector<64x1xf32> to vector<64x320xf32>
    %71 = vector.broadcast %32 : vector<1x320xf32> to vector<64x320xf32>
    %72 = arith.subf %70, %71 : vector<64x320xf32>
    %73 = math.absf %72 : vector<64x320xf32>
    %cst_27 = arith.constant 1.000000e+00 : f32
    %74 = vector.broadcast %cst_27 : f32 to vector<64x320xf32>
    %75 = arith.subf %74, %73 : vector<64x320xf32>
    %cst_28 = arith.constant 0.000000e+00 : f32
    %76 = vector.broadcast %cst_28 : f32 to vector<64x320xf32>
    %77 = arith.maximumf %75, %76 : vector<64x320xf32>
    %78 = vector.extract_strided_slice %27 {offsets = [0, 1], sizes = [64, 1], strides = [1, 1]} : vector<64x4xf32> to vector<64x1xf32>
    %79 = vector.broadcast %78 : vector<64x1xf32> to vector<64x320xf32>
    %80 = vector.broadcast %33 : vector<1x320xf32> to vector<64x320xf32>
    %81 = arith.subf %79, %80 : vector<64x320xf32>
    %82 = math.absf %81 : vector<64x320xf32>
    %cst_29 = arith.constant 1.000000e+00 : f32
    %83 = vector.broadcast %cst_29 : f32 to vector<64x320xf32>
    %84 = arith.subf %83, %82 : vector<64x320xf32>
    %cst_30 = arith.constant 0.000000e+00 : f32
    %85 = vector.broadcast %cst_30 : f32 to vector<64x320xf32>
    %86 = arith.maximumf %84, %85 : vector<64x320xf32>
    %87 = vector.extract_strided_slice %31 {offsets = [0, 1], sizes = [64, 1], strides = [1, 1]} : vector<64x4xf32> to vector<64x1xf32>
    %88 = vector.broadcast %87 : vector<64x1xf32> to vector<64x320xf32>
    %89 = vector.broadcast %34 : vector<1x320xf32> to vector<64x320xf32>
    %90 = arith.subf %88, %89 : vector<64x320xf32>
    %91 = math.absf %90 : vector<64x320xf32>
    %cst_31 = arith.constant 1.000000e+00 : f32
    %92 = vector.broadcast %cst_31 : f32 to vector<64x320xf32>
    %93 = arith.subf %92, %91 : vector<64x320xf32>
    %cst_32 = arith.constant 0.000000e+00 : f32
    %94 = vector.broadcast %cst_32 : f32 to vector<64x320xf32>
    %95 = arith.maximumf %93, %94 : vector<64x320xf32>
    %96 = vector.extract_strided_slice %21 {offsets = [0, 1], sizes = [64, 1], strides = [1, 1]} : vector<64x4xf32> to vector<64x1xf32>
    %97 = vector.broadcast %96 : vector<64x1xf32> to vector<64x320xf32>
    %98 = arith.mulf %97, %77 : vector<64x320xf32>
    %99 = arith.mulf %86, %95 : vector<64x320xf32>
    %100 = arith.mulf %98, %99 : vector<64x320xf32>
    %101 = arith.addf %68, %100 : vector<64x320xf32>
    %102 = vector.extract_strided_slice %24 {offsets = [0, 2], sizes = [64, 1], strides = [1, 1]} : vector<64x4xf32> to vector<64x1xf32>
    %103 = vector.broadcast %102 : vector<64x1xf32> to vector<64x320xf32>
    %104 = vector.broadcast %32 : vector<1x320xf32> to vector<64x320xf32>
    %105 = arith.subf %103, %104 : vector<64x320xf32>
    %106 = math.absf %105 : vector<64x320xf32>
    %cst_33 = arith.constant 1.000000e+00 : f32
    %107 = vector.broadcast %cst_33 : f32 to vector<64x320xf32>
    %108 = arith.subf %107, %106 : vector<64x320xf32>
    %cst_34 = arith.constant 0.000000e+00 : f32
    %109 = vector.broadcast %cst_34 : f32 to vector<64x320xf32>
    %110 = arith.maximumf %108, %109 : vector<64x320xf32>
    %111 = vector.extract_strided_slice %27 {offsets = [0, 2], sizes = [64, 1], strides = [1, 1]} : vector<64x4xf32> to vector<64x1xf32>
    %112 = vector.broadcast %111 : vector<64x1xf32> to vector<64x320xf32>
    %113 = vector.broadcast %33 : vector<1x320xf32> to vector<64x320xf32>
    %114 = arith.subf %112, %113 : vector<64x320xf32>
    %115 = math.absf %114 : vector<64x320xf32>
    %cst_35 = arith.constant 1.000000e+00 : f32
    %116 = vector.broadcast %cst_35 : f32 to vector<64x320xf32>
    %117 = arith.subf %116, %115 : vector<64x320xf32>
    %cst_36 = arith.constant 0.000000e+00 : f32
    %118 = vector.broadcast %cst_36 : f32 to vector<64x320xf32>
    %119 = arith.maximumf %117, %118 : vector<64x320xf32>
    %120 = vector.extract_strided_slice %31 {offsets = [0, 2], sizes = [64, 1], strides = [1, 1]} : vector<64x4xf32> to vector<64x1xf32>
    %121 = vector.broadcast %120 : vector<64x1xf32> to vector<64x320xf32>
    %122 = vector.broadcast %34 : vector<1x320xf32> to vector<64x320xf32>
    %123 = arith.subf %121, %122 : vector<64x320xf32>
    %124 = math.absf %123 : vector<64x320xf32>
    %cst_37 = arith.constant 1.000000e+00 : f32
    %125 = vector.broadcast %cst_37 : f32 to vector<64x320xf32>
    %126 = arith.subf %125, %124 : vector<64x320xf32>
    %cst_38 = arith.constant 0.000000e+00 : f32
    %127 = vector.broadcast %cst_38 : f32 to vector<64x320xf32>
    %128 = arith.maximumf %126, %127 : vector<64x320xf32>
    %129 = vector.extract_strided_slice %21 {offsets = [0, 2], sizes = [64, 1], strides = [1, 1]} : vector<64x4xf32> to vector<64x1xf32>
    %130 = vector.broadcast %129 : vector<64x1xf32> to vector<64x320xf32>
    %131 = arith.mulf %130, %110 : vector<64x320xf32>
    %132 = arith.mulf %119, %128 : vector<64x320xf32>
    %133 = arith.mulf %131, %132 : vector<64x320xf32>
    %134 = arith.addf %101, %133 : vector<64x320xf32>
    %135 = vector.extract_strided_slice %24 {offsets = [0, 3], sizes = [64, 1], strides = [1, 1]} : vector<64x4xf32> to vector<64x1xf32>
    %136 = vector.broadcast %135 : vector<64x1xf32> to vector<64x320xf32>
    %137 = vector.broadcast %32 : vector<1x320xf32> to vector<64x320xf32>
    %138 = arith.subf %136, %137 : vector<64x320xf32>
    %139 = math.absf %138 : vector<64x320xf32>
    %cst_39 = arith.constant 1.000000e+00 : f32
    %140 = vector.broadcast %cst_39 : f32 to vector<64x320xf32>
    %141 = arith.subf %140, %139 : vector<64x320xf32>
    %cst_40 = arith.constant 0.000000e+00 : f32
    %142 = vector.broadcast %cst_40 : f32 to vector<64x320xf32>
    %143 = arith.maximumf %141, %142 : vector<64x320xf32>
    %144 = vector.extract_strided_slice %27 {offsets = [0, 3], sizes = [64, 1], strides = [1, 1]} : vector<64x4xf32> to vector<64x1xf32>
    %145 = vector.broadcast %144 : vector<64x1xf32> to vector<64x320xf32>
    %146 = vector.broadcast %33 : vector<1x320xf32> to vector<64x320xf32>
    %147 = arith.subf %145, %146 : vector<64x320xf32>
    %148 = math.absf %147 : vector<64x320xf32>
    %cst_41 = arith.constant 1.000000e+00 : f32
    %149 = vector.broadcast %cst_41 : f32 to vector<64x320xf32>
    %150 = arith.subf %149, %148 : vector<64x320xf32>
    %cst_42 = arith.constant 0.000000e+00 : f32
    %151 = vector.broadcast %cst_42 : f32 to vector<64x320xf32>
    %152 = arith.maximumf %150, %151 : vector<64x320xf32>
    %153 = vector.extract_strided_slice %31 {offsets = [0, 3], sizes = [64, 1], strides = [1, 1]} : vector<64x4xf32> to vector<64x1xf32>
    %154 = vector.broadcast %153 : vector<64x1xf32> to vector<64x320xf32>
    %155 = vector.broadcast %34 : vector<1x320xf32> to vector<64x320xf32>
    %156 = arith.subf %154, %155 : vector<64x320xf32>
    %157 = math.absf %156 : vector<64x320xf32>
    %cst_43 = arith.constant 1.000000e+00 : f32
    %158 = vector.broadcast %cst_43 : f32 to vector<64x320xf32>
    %159 = arith.subf %158, %157 : vector<64x320xf32>
    %cst_44 = arith.constant 0.000000e+00 : f32
    %160 = vector.broadcast %cst_44 : f32 to vector<64x320xf32>
    %161 = arith.maximumf %159, %160 : vector<64x320xf32>
    %162 = vector.extract_strided_slice %21 {offsets = [0, 3], sizes = [64, 1], strides = [1, 1]} : vector<64x4xf32> to vector<64x1xf32>
    %163 = vector.broadcast %162 : vector<64x1xf32> to vector<64x320xf32>
    %164 = arith.mulf %163, %143 : vector<64x320xf32>
    %165 = arith.mulf %152, %161 : vector<64x320xf32>
    %166 = arith.mulf %164, %165 : vector<64x320xf32>
    %167 = arith.addf %134, %166 : vector<64x320xf32>
    %c0_45 = arith.constant 0 : index
    %c0_46 = arith.constant 0 : index
    %c0_47 = arith.constant 0 : index
    %168 = vector.load %arg3[%c0_45, %c0_46, %c0_47] : memref<1x320x32xf32, #tpu.memory_space<vmem>>, vector<1x320x32xf32>
    %169 = vector.shape_cast %168 : vector<1x320x32xf32> to vector<320x32xf32>
    %c0_48 = arith.constant 0 : index
    %c0_49 = arith.constant 0 : index
    %c0_50 = arith.constant 0 : index
    %170 = vector.load %arg8[%c0_48, %c0_49, %c0_50] : memref<1x32x8xf32, #tpu.memory_space<vmem>>, vector<1x32x8xf32>
    %171 = vector.shape_cast %170 : vector<1x32x8xf32> to vector<32x8xf32>
    %cst_51 = arith.constant dense<0.000000e+00> : vector<320x8xf32>
    %172 = tpu.matmul %169, %171, %cst_51 {dimension_numbers = #tpu.dot_dimension_numbers<[1], [0], [0], [1], [0, 0, 1, 1], [], []>} : vector<320x32xf32>, vector<32x8xf32>, vector<320x8xf32> -> vector<320x8xf32>
    %c0_52 = arith.constant 0 : index
    %c0_53 = arith.constant 0 : index
    %c0_54 = arith.constant 0 : index
    %173 = vector.load %arg9[%c0_52, %c0_53, %c0_54] : memref<1x1x8xf32, #tpu.memory_space<vmem>>, vector<1x1x8xf32>
    %174 = vector.shape_cast %173 : vector<1x1x8xf32> to vector<1x8xf32>
    %175 = vector.broadcast %174 : vector<1x8xf32> to vector<320x8xf32>
    %176 = arith.addf %172, %175 : vector<320x8xf32>
    %cst_55 = arith.constant dense<0.000000e+00> : vector<64x8xf32>
    %177 = tpu.matmul %167, %176, %cst_55 {dimension_numbers = #tpu.dot_dimension_numbers<[1], [0], [0], [1], [0, 0, 1, 1], [], []>} : vector<64x320xf32>, vector<320x8xf32>, vector<64x8xf32> -> vector<64x8xf32>
    %c0_56 = arith.constant 0 : index
    %c0_57 = arith.constant 0 : index
    %c0_58 = arith.constant 0 : index
    %178 = vector.load %arg10[%c0_56, %c0_57, %c0_58] : memref<1x8x32xf32, #tpu.memory_space<vmem>>, vector<1x8x32xf32>
    %179 = vector.shape_cast %178 : vector<1x8x32xf32> to vector<8x32xf32>
    %cst_59 = arith.constant dense<0.000000e+00> : vector<64x32xf32>
    %180 = tpu.matmul %177, %179, %cst_59 {dimension_numbers = #tpu.dot_dimension_numbers<[1], [0], [0], [1], [0, 0, 1, 1], [], []>} : vector<64x8xf32>, vector<8x32xf32>, vector<64x32xf32> -> vector<64x32xf32>
    %c0_i32 = arith.constant 0 : i32
    %181 = arith.cmpi eq, %arg1, %c0_i32 : i32
    %182 = arith.extui %181 : i1 to i32
    %c0_i32_60 = arith.constant 0 : i32
    %183 = arith.cmpi ne, %182, %c0_i32_60 : i32
    scf.if %183 {
      %c0_67 = arith.constant 0 : index
      %c0_68 = arith.constant 0 : index
      %190 = vector.load %arg11[%c0_67, %c0_68] : memref<1x32xf32, #tpu.memory_space<vmem>>, vector<1x32xf32>
      %191 = vector.shape_cast %190 : vector<1x32xf32> to vector<1x32xf32>
      %192 = vector.broadcast %191 : vector<1x32xf32> to vector<64x32xf32>
      %c0_69 = arith.constant 0 : index
      %c0_70 = arith.constant 0 : index
      %c0_71 = arith.constant 0 : index
      %193 = vector.load %arg12[%c0_69, %c0_70, %c0_71] : memref<1x64x32xf32, #tpu.memory_space<vmem>>, vector<1x64x32xf32>
      %194 = vector.shape_cast %193 : vector<1x64x32xf32> to vector<64x32xf32>
      %195 = vector.shape_cast %192 : vector<64x32xf32> to vector<1x64x32xf32>
      tpu.vector_store %arg12[%c0_69, %c0_70, %c0_71], %195 {strides = array<i32>} : memref<1x64x32xf32, #tpu.memory_space<vmem>>, vector<1x64x32xf32>,
    } else {
    }
    %c0_61 = arith.constant 0 : index
    %c0_62 = arith.constant 0 : index
    %c0_63 = arith.constant 0 : index
    %184 = vector.load %arg12[%c0_61, %c0_62, %c0_63] : memref<1x64x32xf32, #tpu.memory_space<vmem>>, vector<1x64x32xf32>
    %185 = vector.shape_cast %184 : vector<1x64x32xf32> to vector<64x32xf32>
    %186 = arith.addf %185, %180 : vector<64x32xf32>
    %c0_64 = arith.constant 0 : index
    %c0_65 = arith.constant 0 : index
    %c0_66 = arith.constant 0 : index
    %187 = vector.load %arg12[%c0_64, %c0_65, %c0_66] : memref<1x64x32xf32, #tpu.memory_space<vmem>>, vector<1x64x32xf32>
    %188 = vector.shape_cast %187 : vector<1x64x32xf32> to vector<64x32xf32>
    %189 = vector.shape_cast %186 : vector<64x32xf32> to vector<1x64x32xf32>
    tpu.vector_store %arg12[%c0_64, %c0_65, %c0_66], %189 {strides = array<i32>} : memref<1x64x32xf32, #tpu.memory_space<vmem>>, vector<1x64x32xf32>,
    return
  }
  func.func @transform_0(%arg0: i32, %arg1: i32) -> (i32, i32, i32) {
    %c0_i32 = arith.constant 0 : i32
    %c0_i32_0 = arith.constant 0 : i32
    %c0_i32_1 = arith.constant 0 : i32
    return %arg0, %c0_i32, %c0_i32_0 : i32, i32, i32
  }
  func.func @transform_1(%arg0: i32, %arg1: i32) -> (i32, i32, i32) {
    %c0_i32 = arith.constant 0 : i32
    %c0_i32_0 = arith.constant 0 : i32
    %c0_i32_1 = arith.constant 0 : i32
    return %arg0, %c0_i32, %c0_i32_0 : i32, i32, i32
  }
  func.func @transform_2(%arg0: i32, %arg1: i32) -> (i32, i32) {
    %c0_i32 = arith.constant 0 : i32
    %c0_i32_0 = arith.constant 0 : i32
    %c0_i32_1 = arith.constant 0 : i32
    return %c0_i32, %c0_i32_0 : i32, i32
  }
  func.func @transform_3(%arg0: i32, %arg1: i32) -> (i32, i32) {
    %c0_i32 = arith.constant 0 : i32
    %c0_i32_0 = arith.constant 0 : i32
    %c0_i32_1 = arith.constant 0 : i32
    return %c0_i32, %c0_i32_0 : i32, i32
  }
  func.func @transform_4(%arg0: i32, %arg1: i32) -> (i32, i32, i32) {
    %c0_i32 = arith.constant 0 : i32
    %c0_i32_0 = arith.constant 0 : i32
    %c0_i32_1 = arith.constant 0 : i32
    return %arg1, %c0_i32, %c0_i32_0 : i32, i32, i32
  }
  func.func @transform_5(%arg0: i32, %arg1: i32) -> (i32, i32, i32) {
    %c0_i32 = arith.constant 0 : i32
    %c0_i32_0 = arith.constant 0 : i32
    %c0_i32_1 = arith.constant 0 : i32
    return %arg1, %c0_i32, %c0_i32_0 : i32, i32, i32
  }
  func.func @transform_6(%arg0: i32, %arg1: i32) -> (i32, i32, i32) {
    %c0_i32 = arith.constant 0 : i32
    %c0_i32_0 = arith.constant 0 : i32
    %c0_i32_1 = arith.constant 0 : i32
    return %arg1, %c0_i32, %c0_i32_0 : i32, i32, i32
  }
  func.func @transform_7(%arg0: i32, %arg1: i32) -> (i32, i32, i32) {
    %c0_i32 = arith.constant 0 : i32
    %c0_i32_0 = arith.constant 0 : i32
    %c0_i32_1 = arith.constant 0 : i32
    return %arg1, %c0_i32, %c0_i32_0 : i32, i32, i32
  }
  func.func @transform_8(%arg0: i32, %arg1: i32) -> (i32, i32, i32) {
    %c0_i32 = arith.constant 0 : i32
    %c0_i32_0 = arith.constant 0 : i32
    %c0_i32_1 = arith.constant 0 : i32
    return %arg1, %c0_i32, %c0_i32_0 : i32, i32, i32
  }
  func.func @transform_9(%arg0: i32, %arg1: i32) -> (i32, i32) {
    %c0_i32 = arith.constant 0 : i32
    %c0_i32_0 = arith.constant 0 : i32
    %c0_i32_1 = arith.constant 0 : i32
    return %c0_i32, %c0_i32_0 : i32, i32
  }
  func.func @transform_10(%arg0: i32, %arg1: i32) -> (i32, i32, i32) {
    %c0_i32 = arith.constant 0 : i32
    %c0_i32_0 = arith.constant 0 : i32
    %c0_i32_1 = arith.constant 0 : i32
    return %arg0, %c0_i32, %c0_i32_0 : i32, i32, i32
  }
}

</mosaic_0001>

<bundles_post_ra>
// kernel: deformable_spatial_attention_layer_3d.1
= control target key start
LH: loop header
LB: loop body
LE: loop exit
PB: predicated region body
PF: predicated region fallthrough
CT: control target
= control target key end

     0   :  { %s4729_s13 = smov 0   ;;  %s4731_s14 = smov 0   ;;  %s7158_s0 = inlined_call_operand.vmem [shape: f32[2,64,32], index: 0, kind: input, shape index: {}]   ;;  %s7159_s1 = inlined_call_operand.vmem [shape: f32[2,320,32], index: 1, kind: input, shape index: {}]   ;;  %s7160_s2 = inlined_call_operand.vmem [shape: f32[64,2], index: 2, kind: input, shape index: {}]   ;;  %s7161_s3 = inlined_call_operand.vmem [shape: f32[8,320], index: 3, kind: input, shape index: {}]   ;;  %s7162_s4 = inlined_call_operand.vmem [shape: f32[4,32,16], index: 4, kind: input, shape index: {}]   ;;  %s7163_s5 = inlined_call_operand.vmem [shape: f32[4,1,16], index: 5, kind: input, shape index: {}]   ;;  %s7164_s6 = inlined_call_operand.vmem [shape: f32[4,32,8], index: 6, kind: input, shape index: {}]   ;;  %s7165_s7 = inlined_call_operand.vmem [shape: f32[4,1,8], index: 7, kind: input, shape index: {}]   ;;  %s7166_s8 = inlined_call_operand.vmem [shape: f32[4,8,32], index: 8, kind: input, shape index: {}]   ;;  %s7167_s9 = inlined_call_operand.vmem [shape: f32[1,32], index: 9, kind: input, shape index: {}]   ;;  %s7168_s10 = inlined_call_operand.vmem [shape: f32[2,64,32], index: 10, kind: output, shape index: {}]  }
   0x1   :  { %s4733_s15 = smov 0   ;;  %s4735_s16 = smov 0  }
   0x2   :  { %s4737_s17 = smov 0  }
   0x3 LB: > { %s29_s18 = sadd.s32 1, %s4647_s15  ;;  %s32_s19 = sadd.s32 1, %s4651_s16  ;;  %s4655_s17 = sphi %s4737_s17, %s20_s17   ;;  %s4651_s16 = sphi %s4735_s16, %s7858_s16   ;;  %s4647_s15 = sphi %s4733_s15, %s7857_s15   ;;  %s4643_s14 = sphi %s4731_s14, %s7856_s14   ;;  %s4639_s13 = sphi %s4729_s13, %s7855_s13  }
   0x4   : > { %p30_p0 = scmp.ge.s32.totalorder %s29_s18, 4  ;;  %p3974_p1 = scmp.ge.s32.totalorder %s4655_s17, 1 }
   0x5   : > { %p379_p2 = scmp.lt.s32.totalorder %s4655_s17, 9 }
   0x6   : > { %s7860_s18 = smov (%p30_p0, %s29_s18), 0  ;;  %s7862_s19 = smov (!%p30_p0, %s32_s19), %s4651_s16 }
   0x7   : > { %p380_p3 = pnand %p3974_p1, %p379_p2  ;;  %p34_p4 = scmp.ge.s32.totalorder %s7862_s19, 2 }
   0x9   : > { %s7864_s19 = smov (%p34_p4, %s7862_s19), 0  ;;  %383 = sbr.rel (%p380_p3) target bundleno = 1647 (0x66f), region = 60 }
  0x10   : > { %p452_p5 = scmp.lt.s32.totalorder %s4639_s13, 3  ;;  %p442_p6 = scmp.lt.s32.totalorder %s4643_s14, 1  ;;  %v749_v0 = vld [vmem:[%s7160_s2 + $0x8] sm:$0xff]  ;;  %v7178_v1 = vmov 1   ;;  %v748_v2 = vld [vmem:[%s7160_s2] sm:$0xff]  ;;  %v750_v3 = vld [vmem:[%s7160_s2 + $0x10] sm:$0xff] }
  0x11   : > { %4475 = vset.pattern.permute.xlu0 %v7178_v1  ;;  %4474 = vset.pattern.permute.xlu1 %v7178_v1  ;;  %vm496_vm0 = vcmask 261120   ;;  %v7169_v7 = vmov 0   ;;  %v751_v12 = vld [vmem:[%s7160_s2 + $0x18] sm:$0xff]  ;;  %v752_v15 = vld [vmem:[%s7160_s2 + $0x20] sm:$0xff]  ;;  %v753_v18 = vld [vmem:[%s7160_s2 + $0x28] sm:$0xff]  ;;  %v7181_v24 = vmov 5  }
  0x12   : > { %s4771_s24 = scalar_select %p452_p5, %s4639_s13, 3  ;;  %809 = vperm.xlu0 %4475, %v749_v0   ;;  %805 = vperm.xlu1 %4474, %v748_v2   ;;  %v4825_v22 = vld [vmem:[%s7160_s2 + $0x30] sm:$0xff]  ;;  %v4832_v23 = vld [vmem:[%s7160_s2 + $0x38] sm:$0xff]  ;;  %vm626_vm1 = vcmask 130144   ;;  %v7188_v42 = vmov 4   ;;  %v7170_v52 = vmov 2  }
  0x13   : > { %s7866_s14 = smov (!%p442_p6, %s4643_s14), 1  ;;  %v7174_v55 = vmov 6   ;;  %v7172_v57 = vmov 7   ;;  %v7180_v62 = vmov 3   ;;  %vm707_vm2 = vcmask 31744   ;;  %p4061_p7 = scmp.ne.s32.totalorder %s4639_s13, 0 }
  0x14   : > { %s4066_s25 = sshll.u32 %s4771_s24, 5  ;;  %s4065_s11 = sshll.u32 %s7866_s14, 6  ;;  %vm3429_vm3 = vcmask 523264   ;;  %vm3665_vm4 = vcmask 64512  }
  0x15   : > { %s456_s30 = scalar_lea.vmem %s7162_s4, %s4066_s25  ;;  %s4788_s21 = scalar_lea.vmem %s7158_s0, %s4065_s11 }
  0x16   : > { %v485_v4 = vld [vmem:[%s456_s30] sm:$0xff]  ;;  %v486_v5 = vld [vmem:[%s456_s30 + $0x8] sm:$0xff]  ;;  %v487_v6 = vld [vmem:[%s456_s30 + $0x10] sm:$0xff]  ;;  %4476 = vset.pattern.permute.xlu0 %v7169_v7  ;;  %4477 = vset.pattern.permute.xlu1 %v7169_v7  ;;  %s4795_s26 = scalar_lea.vmem %s7168_s10, %s4065_s11  ;;  %s459_s29 = scalar_lea.vmem %s7163_s5, %s4771_s24 }
  0x17   : > { %v4336_v8 = vpack.c.bf16 %v486_v5, %v485_v4  ;;  %v488_v9 = vld [vmem:[%s456_s30 + $0x18] sm:$0xff]  ;;  %v477_v10 = vld [vmem:[%s4788_s21] sm:$0xff]  ;;  %758 = vperm.xlu0 %4476, %v748_v2   ;;  %768 = vperm.xlu1 %4477, %v750_v3   ;;  %v478_v13 = vld [vmem:[%s4788_s21 + $0x8] sm:$0xff]  ;;  %v7176_v2 = vmov 11   ;;  %s4669_s30 = smov 116   ;;  %s4416_s11 = smul.u32 320, %s7866_s14 }
  0x18   : > { %v4340_v11 = vpack.c.bf16 %v488_v9, %v487_v6  ;;  %4214 = vmatprep.mubr.msk.f32.mxu0 %vm496_vm0, %v477_v10  ;;  %v479_v14 = vld [vmem:[%s4788_s21 + $0x10] sm:$0xff]  ;;  %v480_v16 = vld [vmem:[%s4788_s21 + $0x18] sm:$0xff]  ;;  %v481_v17 = vld [vmem:[%s4788_s21 + $0x20] sm:$0xff]  ;;  %s464_s27 = scalar_lea.vmem %s7164_s6, %s4066_s25  ;;  %s3982_s14 = sshll.u32 %s4771_s24, 3 }
  0x19   : > { %4337 = vmatprep.subr.bf16.mxu0 %v4336_v8  ;;  %v482_v19 = vld [vmem:[%s4788_s21 + $0x28] sm:$0xff]  ;;  %v483_v20 = vld [vmem:[%s4788_s21 + $0x30] sm:$0xff]  ;;  %v484_v21 = vld [vmem:[%s4788_s21 + $0x38] sm:$0xff]  ;;  %s5261_s22 = scalar_lea.vmem %s7159_s1, %s4416_s11  ;;  %s471_s25 = scalar_lea.vmem %s7166_s8, %s3982_s14 }
  0x1a   : > { %4339 = vmatpush3.bf16.msra.mxu0 %v4336_v8  ;;  %v3985_v27 = vld [vmem:[%s459_s29] ss:$0 sm:$0xff] }
  0x1b   : > { %4341 = vmatprep.subr.bf16.mxu0 %v4340_v11  ;;  %763 = vperm.xlu0 %4476, %v749_v0  }
  0x1c   : > { %4478 = vset.pattern.permute.xlu1 %v7178_v1 }
  0x1d   : > { %813 = vperm.xlu1 %4478, %v750_v3  }
  0x1e   : > { %4343 = vmatpush3.bf16.msra.mxu0 %v4340_v11 }
  0x1f   : > { %773 = vperm.xlu0 %4476, %v751_v12  }
  0x21   : > { %4215 = vmatmul.mubr.msk.f32.vlgmr.msra.gmra.mrb[0].mxu0 %vm496_vm0, %v478_v13  ;;  %817 = vperm.xlu1 %4478, %v751_v12  }
  0x22   : > { %4217 = vmatprep.mubr.msk.f32.mxu0 %vm496_vm0, %v479_v14 }
  0x23   : > { %778 = vperm.xlu0 %4476, %v752_v15  }
  0x25   : > { %4218 = vmatmul.mubr.msk.f32.gmra.mrb[2].mxu0 %vm496_vm0, %v480_v16  ;;  %821 = vperm.xlu1 %4478, %v752_v15  }
  0x26   : > { %4220 = vmatprep.mubr.msk.f32.mxu0 %vm496_vm0, %v481_v17 }
  0x27   : > { %783 = vperm.xlu0 %4476, %v753_v18  }
  0x29   : > { %4221 = vmatmul.mubr.msk.f32.gmra.mrb[4].mxu0 %vm496_vm0, %v482_v19  ;;  %825 = vperm.xlu1 %4478, %v753_v18   ;;  %v7179_v19 = vmov 9  }
  0x2a   : > { %4223 = vmatprep.mubr.msk.f32.mxu0 %vm496_vm0, %v483_v20 }
  0x2b   : > { %4497 = vset.pattern.permute.xlu0 %v7181_v24 }
  0x2d   : > { %4224 = vmatmul.mubr.msk.f32.gmra.mrb[6].mxu0 %vm496_vm0, %v484_v21  ;;  %829 = vperm.xlu1 %4478, %v4825_v22  }
  0x31   : > { %833 = vperm.xlu1 %4478, %v4832_v23  }
  0x35   : > { %4479 = vset.pattern.permute.xlu1 %v7169_v7 }
  0x91   : > { %v810_v25 = vpop.permute.xlu0 %809  ;;  %v806_v37 = vpop.permute.xlu1 %805 }
  0x96   : > { %v759_v26 = vpop.permute.xlu0 %758  ;;  %v4857_v44 = vpop.permute.xlu1 %768 }
  0x9a   : > { %v764_v31 = vpop.permute.xlu0 %763 }
  0x9c   : > { %v814_v49 = vpop.permute.xlu1 %813 }
  0x9e   : > { %v774_v4 = vpop.permute.xlu0 %773 }
  0xa0   : > { %v818_v50 = vpop.permute.xlu1 %817 }
  0xa2   : > { %v779_v6 = vpop.permute.xlu0 %778 }
  0xa4   : > { %v822_v3 = vpop.permute.xlu1 %821 }
  0xa6   : > { %v784_v10 = vpop.permute.xlu0 %783 }
  0xf4   : > { %v4216_v28 = vpop.f32.mrb[0].mxu0 }
  0xf5   : > { %v4841_v29 = vadd.f32 %v4216_v28, %v3985_v27  ;;  %v587_v30 = vpop.f32.mrb[1].mxu0 }
  0xf6   : > { %v4843_v32 = vadd.f32 %v3985_v27, %v587_v30 }
  0xf7   : > { %v630_v33 = vsel %vm626_vm1, %v4841_v29, -inf  ;;  %v4848_v34 = vadd.f32 %v764_v31, %v4841_v29  ;;  %v837_v40 = vadd.f32 %v810_v25, %v4841_v29  ;;  %v845_v63 = vmul.f32 1.6666666, %v4841_v29 }
  0xf8   : > { %631 = vmax.xlane.f32.xlu0 %v630_v33  ;;  %v4219_v35 = vpop.f32.mrb[2].mxu0  ;;  %v627_v38 = vsel %vm626_vm1, %v4843_v32, -inf  ;;  %v836_v58 = vadd.f32 %v806_v37, %v4843_v32  ;;  %v796_v59 = vadd.f32 %v759_v26, %v4843_v32  ;;  %v4972_v26 = vpop.permute.xlu1 %825 }
  0xf9   : > { %872 = vperm.xlu1 %4479, %v4848_v34   ;;  %v597_v36 = vpop.f32.mrb[3].mxu0  ;;  %v4866_v51 = vadd.f32 %v4219_v35, %v3985_v27  ;;  %v4897_v0 = vadd.f32 -0.5, %v845_v63 }
  0xfa   : > { %v4870_v53 = vadd.f32 %v3985_v27, %v597_v36 }
  0xfb   : > { %v4873_v54 = vadd.f32 %v818_v50, %v4866_v51  ;;  %v636_v11 = vsel %vm626_vm1, %v4866_v51, -inf  ;;  %v799_v14 = vadd.f32 %v774_v4, %v4866_v51  ;;  %v847_v17 = vmul.f32 1.6666666, %v4866_v51 }
  0xfc   : > { %v4222_v39 = vpop.f32.mrb[4].mxu0  ;;  %628 = vmax.xlane.f32.xlu0 %v627_v38  ;;  %v4877_v56 = vadd.f32 %v814_v49, %v4870_v53  ;;  %v4917_v9 = vadd.f32 %v4857_v44, %v4870_v53  ;;  %v633_v13 = vsel %vm626_vm1, %v4870_v53, -inf  ;;  %v4976_v28 = vpop.permute.xlu1 %829  ;;  %v4667_v50 = vmov 10  }
  0xfd   : > { %v4854_v41 = vadd.f32 %v4222_v39, %v3985_v27  ;;  %4480 = vset.pattern.permute.xlu1 %v7188_v42  ;;  %v607_v43 = vpop.f32.mrb[5].mxu0  ;;  %v4958_v18 = vadd.f32 -0.5, %v847_v17 }
  0xfe   : > { %1024 = vperm.xlu1 %4480, %v837_v40   ;;  %v4890_v60 = vadd.f32 %v3985_v27, %v607_v43 }
  0xff   : > { %v4924_v12 = vadd.f32 %v784_v10, %v4854_v41  ;;  %v642_v33 = vsel %vm626_vm1, %v4854_v41, -inf  ;;  %v849_v10 = vmul.f32 1.6666666, %v4854_v41 }
 0x100   : > { %v4225_v45 = vpop.f32.mrb[6].mxu0  ;;  %v639_v61 = vsel %vm626_vm1, %v4890_v60, -inf  ;;  %v4903_v5 = vadd.f32 %v822_v3, %v4890_v60  ;;  %v4907_v8 = vadd.f32 %v779_v6, %v4890_v60  ;;  %v4980_v31 = vpop.permute.xlu1 %833 }
 0x101   : > { %v4859_v46 = vadd.f32 %v4225_v45, %v3985_v27  ;;  %v617_v47 = vpop.f32.mrb[7].mxu0 }
 0x102   : > { %4481 = vset.pattern.permute.xlu1 %v7178_v1  ;;  %v4862_v48 = vadd.f32 %v3985_v27, %v617_v47 }
 0x103   : > { %1462 = vperm.xlu1 %4481, %v4848_v34   ;;  %v851_v63 = vmul.f32 1.6666666, %v4859_v46 }
 0x104   : > { %v645_v15 = vsel %vm626_vm1, %v4862_v48, -inf }
 0x105   : > { %v5022_v4 = vadd.f32 -0.5, %v851_v63  ;;  %v648_v63 = vsel %vm626_vm1, %v4859_v46, -inf }
 0x107   : > { %4482 = vset.pattern.permute.xlu1 %v7181_v24 }
 0x108   : > { %1590 = vperm.xlu1 %4482, %v837_v40  }
 0x10c   : > { %4483 = vset.pattern.permute.xlu1 %v7170_v52 }
 0x10d   : > { %1974 = vperm.xlu1 %4483, %v4848_v34  }
 0x111   : > { %4484 = vset.pattern.permute.xlu1 %v7174_v55 }
 0x112   : > { %2102 = vperm.xlu1 %4484, %v837_v40   ;;  %1598 = vperm.xlu0 %4497, %v4873_v54  }
 0x116   : > { %4485 = vset.pattern.permute.xlu1 %v7172_v57  ;;  %1594 = vperm.xlu0 %4497, %v4877_v56  }
 0x117   : > { %2614 = vperm.xlu1 %4485, %v837_v40   ;;  %v846_v40 = vmul.f32 1.6666666, %v4870_v53 }
 0x119   : > { %v3996_v45 = vadd.f32 -0.5, %v846_v40 }
 0x11a   : > { %4511 = vset.pattern.permute.xlu0 %v7188_v42 }
 0x11b   : > { %4486 = vset.pattern.permute.xlu1 %v7188_v42 }
 0x11c   : > { %1019 = vperm.xlu1 %4486, %v836_v58  }
 0x120   : > { %4487 = vset.pattern.permute.xlu1 %v7178_v1 }
 0x121   : > { %1458 = vperm.xlu1 %4487, %v796_v59  }
 0x125   : > { %4488 = vset.pattern.permute.xlu1 %v7181_v24 }
 0x126   : > { %1586 = vperm.xlu1 %4488, %v836_v58  }
 0x12a   : > { %4489 = vset.pattern.permute.xlu1 %v7170_v52 }
 0x12b   : > { %1970 = vperm.xlu1 %4489, %v796_v59  }
 0x12f   : > { %4490 = vset.pattern.permute.xlu1 %v7174_v55 }
 0x130   : > { %2098 = vperm.xlu1 %4490, %v836_v58  }
 0x134   : > { %4491 = vset.pattern.permute.xlu1 %v7180_v62 }
 0x135   : > { %2482 = vperm.xlu1 %4491, %v796_v59   ;;  %640 = vmax.xlane.f32.xlu0 %v639_v61 }
 0x139   : > { %4492 = vset.pattern.permute.xlu1 %v7172_v57 }
 0x13a   : > { %2610 = vperm.xlu1 %4492, %v836_v58  }
 0x13e   : > { %4493 = vset.pattern.permute.xlu1 %v7176_v2 }
 0x13f   : > { %2742 = vperm.xlu1 %4493, %v4897_v0  }
 0x143   : > { %4494 = vset.pattern.permute.xlu1 %v7169_v7 }
 0x14b   : > { %1039 = vperm.xlu0 %4511, %v4903_v5  }
 0x14f   : > { %4512 = vset.pattern.permute.xlu0 %v7178_v1 }
 0x150   : > { %1474 = vperm.xlu0 %4512, %v4907_v8  }
 0x154   : > { %4515 = vset.pattern.permute.xlu0 %v7174_v55 }
 0x155   : > { %2114 = vperm.xlu0 %4515, %v4903_v5  }
 0x159   : > { %4524 = vset.pattern.permute.xlu0 %v7172_v57 }
 0x15a   : > { %2626 = vperm.xlu0 %4524, %v4903_v5  }
 0x15e   : > { %4525 = vset.pattern.permute.xlu0 %v7170_v52 }
 0x15f   : > { %1978 = vperm.xlu0 %4525, %v4917_v9  }
 0x163   : > { %637 = vmax.xlane.f32.xlu1 %v636_v11  ;;  %1990 = vperm.xlu0 %4525, %v4924_v12  }
 0x167   : > { %634 = vmax.xlane.f32.xlu1 %v633_v13  ;;  %4527 = vset.pattern.permute.xlu0 %v7169_v7  ;;  %v5037_v13 = vadd.f32 -0.5, %v849_v10 }
 0x168   : > { %788 = vperm.xlu0 %4527, %v4825_v22  }
 0x16c   : > { %793 = vperm.xlu0 %4527, %v4832_v23  }
 0x170   : > { %867 = vperm.xlu0 %4527, %v796_v59   ;;  %v7183_v59 = vmov 8  }
 0x174   : > { %892 = vperm.xlu0 %4527, %v4924_v12  }
 0x178   : > { %882 = vperm.xlu1 %4494, %v799_v14   ;;  %v4986_v36 = vpop.permute.xlu1 %872 }
 0x17c   : > { %4495 = vset.pattern.permute.xlu1 %v7188_v42 }
 0x17d   : > { %1034 = vperm.xlu1 %4495, %v4873_v54   ;;  %v4990_v38 = vpop.permute.xlu1 %1024 }
 0x181   : > { %4496 = vset.pattern.permute.xlu1 %v7178_v1 }
 0x182   : > { %1470 = vperm.xlu1 %4496, %v799_v14   ;;  %v4995_v43 = vpop.permute.xlu1 %1462 }
 0x185   : > { %v4953_v16 = vpop.xlane.xlu0 %631 }
 0x186   : > { %4498 = vset.pattern.permute.xlu1 %v7170_v52 }
 0x187   : > { %1982 = vperm.xlu1 %4498, %v799_v14   ;;  %v5001_v49 = vpop.permute.xlu1 %1590 }
 0x189   : > { %v4961_v20 = vpop.xlane.xlu0 %628 }
 0x18a   : > { %v651_v11 = vsub.f32 %v4843_v32, %v4961_v20 }
 0x18b   : > { %4499 = vset.pattern.permute.xlu1 %v7174_v55 }
 0x18c   : > { %2110 = vperm.xlu1 %4499, %v4873_v54   ;;  %v5008_v58 = vpop.permute.xlu1 %1974 }
 0x190   : > { %4500 = vset.pattern.permute.xlu1 %v7180_v62 }
 0x191   : > { %2494 = vperm.xlu1 %4500, %v799_v14   ;;  %v4964_v21 = vpop.permute.xlu0 %1598  ;;  %v5014_v61 = vpop.permute.xlu1 %2102 }
 0x193   : > { %646 = vmax.xlane.f32.xlu0 %v645_v15  ;;  %v659_v15 = vmul.f32 1.442695, %v651_v11 }
 0x195   : > { %4501 = vset.pattern.permute.xlu1 %v7172_v57  ;;  %v4966_v22 = vpop.permute.xlu0 %1594  ;;  %4584 = vpow2.f32 %v659_v15 }
 0x196   : > { %2622 = vperm.xlu1 %4501, %v4873_v54   ;;  %v844_v54 = vmul.f32 1.6666666, %v4843_v32  ;;  %v5019_v3 = vpop.permute.xlu1 %2614  ;;  %v850_v32 = vmul.f32 1.6666666, %v4862_v48 }
 0x19a   : > { %4502 = vset.pattern.permute.xlu1 %v7169_v7 }
 0x19b   : > { %877 = vperm.xlu1 %4502, %v4917_v9   ;;  %v5027_v6 = vpop.permute.xlu1 %1019 }
 0x19f   : > { %4503 = vset.pattern.permute.xlu1 %v7188_v42 }
 0x1a0   : > { %1029 = vperm.xlu1 %4503, %v4877_v56  }
 0x1a4   : > { %4504 = vset.pattern.permute.xlu1 %v7178_v1 }
 0x1a5   : > { %1466 = vperm.xlu1 %4504, %v4917_v9  }
 0x1a9   : > { %4505 = vset.pattern.permute.xlu1 %v7174_v55  ;;  %v848_v55 = vmul.f32 1.6666666, %v4890_v60 }
 0x1aa   : > { %2106 = vperm.xlu1 %4505, %v4877_v56  }
 0x1ae   : > { %4506 = vset.pattern.permute.xlu1 %v7172_v57 }
 0x1af   : > { %2618 = vperm.xlu1 %4506, %v4877_v56   ;;  %v3994_v56 = vadd.f32 -0.5, %v844_v54 }
 0x1b3   : > { %4507 = vset.pattern.permute.xlu1 %v7179_v19 }
 0x1b4   : > { %1726 = vperm.xlu1 %4507, %v4958_v18  }
 0x1c2   : > { %v4968_v23 = vpop.xlane.xlu0 %640 }
 0x1c3   : > { %v655_v11 = vsub.f32 %v4890_v60, %v4968_v23  ;;  %v3998_v23 = vadd.f32 -0.5, %v848_v55  ;;  %v841_v55 = vadd.f32 %v4972_v26, %v4854_v41 }
 0x1ca   : > { %v4970_v25 = vpop.permute.xlu0 %1039 }
 0x1cf   : > { %v4974_v27 = vpop.permute.xlu0 %1474 }
 0x1d4   : > { %v4978_v30 = vpop.permute.xlu0 %2114 }
 0x1d8   : > { %643 = vmax.xlane.f32.xlu1 %v642_v33 }
 0x1d9   : > { %v4984_v35 = vpop.permute.xlu0 %2626 }
 0x1de   : > { %v4988_v37 = vpop.permute.xlu0 %1978 }
 0x1e2   : > { %v4992_v39 = vpop.permute.xlu0 %1990 }
 0x1e3   : > { %7282 = vst [vmem:[#allocation2_spill] sm:$0xff] %v4992_v39  ;;  %v3017_v39 = vld [vmem:[%s5261_s22 + $0xc0] sm:$0xff] }
 0x1e7   : > { %v789_v44 = vpop.permute.xlu0 %788 }
 0x1e8   : > { %v4998_v47 = vadd.f32 %v789_v44, %v4862_v48  ;;  %v5054_v44 = vpop.eup %4584 }
 0x1e9   : > { %1722 = vperm.xlu1 %4507, %v3996_v45  }
 0x1ea   : > { %897 = vperm.xlu0 %4527, %v4998_v47  }
 0x1eb   : > { %v5045_v33 = vpop.permute.xlu0 %793 }
 0x1ed   : > { %4508 = vset.pattern.permute.xlu1 %v4667_v50 }
 0x1ee   : > { %2234 = vperm.xlu1 %4508, %v3996_v45   ;;  %4534 = vset.pattern.permute.xlu0 %v7178_v1 }
 0x1ef   : > { %1482 = vperm.xlu0 %4534, %v4998_v47   ;;  %v5052_v20 = vpop.permute.xlu0 %867 }
 0x1f0   : > { %7283 = vst [vmem:[#allocation3_spill] sm:$0xff] %v5052_v20 }
 0x1f2   : > { %4509 = vset.pattern.permute.xlu1 %v7176_v2 }
 0x1f3   : > { %2746 = vperm.xlu1 %4509, %v3996_v45   ;;  %4535 = vset.pattern.permute.xlu0 %v7183_v59  ;;  %v5064_v10 = vpop.permute.xlu0 %892 }
 0x1f4   : > { %1171 = vperm.xlu0 %4535, %v3994_v56   ;;  %7284 = vst [vmem:[#allocation4_spill] sm:$0xff] %v5064_v10 }
 0x1f7   : > { %4510 = vset.pattern.permute.xlu1 %v7169_v7 }
 0x1f8   : > { %887 = vperm.xlu1 %4510, %v4907_v8   ;;  %1176 = vperm.xlu0 %4535, %v4897_v0  }
 0x1fc   : > { %4513 = vset.pattern.permute.xlu1 %v7181_v24  ;;  %1181 = vperm.xlu0 %4535, %v3996_v45   ;;  %v5058_v45 = vadd.f32 -0.5, %v850_v32  ;;  %v667_v32 = vmul.f32 1.442695, %v655_v11 }
 0x1fd   : > { %1602 = vperm.xlu1 %4513, %v4903_v5   ;;  %v5031_v5 = vpop.permute.xlu1 %1458 }
 0x1fe   : > { %4586 = vpow2.f32 %v667_v32  ;;  %v7293_v32 = vmov 11  }
 0x200   : > { %1186 = vperm.xlu0 %4535, %v4958_v18  }
 0x201   : > { %4514 = vset.pattern.permute.xlu1 %v7170_v52  ;;  %v5039_v14 = vpop.permute.xlu1 %1586 }
 0x202   : > { %1986 = vperm.xlu1 %4514, %v4907_v8  }
 0x204   : > { %1206 = vperm.xlu0 %4535, %v5022_v4  }
 0x205   : > { %v5043_v17 = vpop.permute.xlu1 %1970 }
 0x206   : > { %4516 = vset.pattern.permute.xlu1 %v7183_v59 }
 0x208   : > { %4542 = vset.pattern.permute.xlu0 %v7179_v19 }
 0x209   : > { %1714 = vperm.xlu0 %4542, %v3994_v56   ;;  %v5048_v40 = vpop.permute.xlu1 %2098 }
 0x20d   : > { %1718 = vperm.xlu0 %4542, %v4897_v0   ;;  %v5060_v54 = vpop.permute.xlu1 %2482 }
 0x211   : > { %1734 = vperm.xlu0 %4542, %v5037_v13   ;;  %v5069_v15 = vpop.permute.xlu1 %2610 }
 0x215   : > { %1742 = vperm.xlu0 %4542, %v5022_v4   ;;  %v5073_v57 = vpop.permute.xlu1 %2742 }
 0x219   : > { %4545 = vset.pattern.permute.xlu0 %v7176_v2  ;;  %v5077_v2 = vpop.xlane.xlu1 %637 }
 0x21a   : > { %2738 = vperm.xlu0 %4545, %v3994_v56  }
 0x21e   : > { %2750 = vperm.xlu0 %4545, %v4958_v18  }
 0x220   : > { %v647_v7 = vpop.xlane.xlu0 %646 }
 0x221   : > { %v657_v52 = vsub.f32 %v4862_v48, %v647_v7  ;;  %v5083_v7 = vpop.eup %4586 }
 0x222   : > { %683 = vrot.lane.b32.xlu0 %v5054_v44, %s4669_s30  ;;  %7285 = vst [vmem:[#allocation5_spill] sm:$0xff] %v5083_v7 }
 0x226   : > { %649 = vmax.xlane.f32.xlu1 %v648_v63  ;;  %2762 = vperm.xlu0 %4545, %v5058_v45   ;;  %v671_v63 = vmul.f32 1.442695, %v657_v52 }
 0x228   : > { %4588 = vpow2.f32 %v671_v63  ;;  %v7295_v63 = vmov 6  }
 0x22a   : > { %4548 = vset.pattern.permute.xlu0 %v4667_v50 }
 0x22b   : > { %2226 = vperm.xlu0 %4548, %v3994_v56   ;;  %v5081_v56 = vpop.xlane.xlu1 %634 }
 0x22f   : > { %2230 = vperm.xlu0 %4548, %v4897_v0   ;;  %v5090_v60 = vpop.permute.xlu1 %882 }
 0x230   : > { %7287 = vst [vmem:[#allocation7_spill] sm:$0xff] %v5090_v60 }
 0x232   : > { %v5088_v52 = vpop.eup %4588 }
 0x233   : > { %2238 = vperm.xlu0 %4548, %v4958_v18   ;;  %7286 = vst [vmem:[#allocation6_spill] sm:$0xff] %v5088_v52  ;;  %v5098_v0 = vpop.permute.xlu1 %1034 }
 0x234   : > { %7288 = vst [vmem:[#allocation8_spill] sm:$0xff] %v5098_v0 }
 0x237   : > { %1191 = vperm.xlu1 %4516, %v3998_v23   ;;  %2250 = vperm.xlu0 %4548, %v5058_v45   ;;  %v5104_v18 = vpop.permute.xlu1 %1470 }
 0x238   : > { %7289 = vst [vmem:[#allocation9_spill] sm:$0xff] %v5104_v18 }
 0x23b   : > { %4517 = vset.pattern.permute.xlu1 %v7179_v19  ;;  %691 = vrot.lane.b32.xlu0 %v5083_v7, %s4669_s30  ;;  %v5110_v26 = vpop.permute.xlu1 %1982 }
 0x23c   : > { %1730 = vperm.xlu1 %4517, %v3998_v23   ;;  %7290 = vst [vmem:[#allocation10_spill] sm:$0xff] %v5110_v26 }
 0x23f   : > { %695 = vrot.lane.b32.xlu0 %v5088_v52, %s4669_s30  ;;  %v5113_v11 = vpop.permute.xlu1 %2110 }
 0x240   : > { %4518 = vset.pattern.permute.xlu1 %v4667_v50  ;;  %7291 = vst [vmem:[#allocation11_spill] sm:$0xff] %v5113_v11 }
 0x241   : > { %2242 = vperm.xlu1 %4518, %v3998_v23  }
 0x243   : > { %2254 = vperm.xlu0 %4548, %v5022_v4  }
 0x245   : > { %4519 = vset.pattern.permute.xlu1 %v7188_v42 }
 0x246   : > { %1044 = vperm.xlu1 %4519, %v841_v55  }
 0x247   : > { %4551 = vset.pattern.permute.xlu0 %v7180_v62 }
 0x248   : > { %2486 = vperm.xlu0 %4551, %v4848_v34   ;;  %v5117_v34 = vpop.permute.xlu1 %2494 }
 0x249   : > { %7292 = vst [vmem:[#allocation12_spill] sm:$0xff] %v5117_v34 }
 0x24a   : > { %4520 = vset.pattern.permute.xlu1 %v7183_v59  ;;  %v5142_v59 = vadd.f32 %v4976_v28, %v4862_v48  ;;  %v7309_v48 = vmov 5  }
 0x24b   : > { %1196 = vperm.xlu1 %4520, %v5037_v13  }
 0x24c   : > { %2490 = vperm.xlu0 %4551, %v4917_v9   ;;  %v5120_v9 = vpop.permute.xlu1 %2622 }
 0x24d   : > { %7294 = vst [vmem:[#allocation13_spill] sm:$0xff] %v5120_v9  ;;  %v3005_v9 = vld [vmem:[%s5261_s22 + $0x60] sm:$0xff] }
 0x24f   : > { %4521 = vset.pattern.permute.xlu1 %v7178_v1 }
 0x250   : > { %1478 = vperm.xlu1 %4521, %v4924_v12   ;;  %v5124_v1 = vpop.permute.xlu1 %877 }
 0x251   : > { %7296 = vst [vmem:[#allocation14_spill] sm:$0xff] %v5124_v1  ;;  %v7323_v1 = vmov 1  }
 0x254   : > { %4522 = vset.pattern.permute.xlu1 %v7181_v24  ;;  %v5132_v24 = vpop.permute.xlu1 %1029 }
 0x255   : > { %1606 = vperm.xlu1 %4522, %v841_v55   ;;  %7300 = vst [vmem:[#allocation17_spill] sm:$0xff] %v5132_v24 }
 0x259   : > { %4523 = vset.pattern.permute.xlu1 %v7180_v62  ;;  %v7298_v62 = vmov 7  }
 0x25a   : > { %2498 = vperm.xlu1 %4523, %v4907_v8  }
 0x25e   : > { %4526 = vset.pattern.permute.xlu1 %v7293_v32 }
 0x25f   : > { %2754 = vperm.xlu1 %4526, %v3998_v23  }
 0x263   : > { %4528 = vset.pattern.permute.xlu1 %v7295_v63 }
 0x264   : > { %2118 = vperm.xlu1 %4528, %v841_v55  }
 0x268   : > { %4529 = vset.pattern.permute.xlu1 %v4667_v50  ;;  %v5138_v50 = vpop.permute.xlu1 %1466 }
 0x269   : > { %2246 = vperm.xlu1 %4529, %v5037_v13   ;;  %v5127_v19 = vpop.permute.xlu0 %897  ;;  %7302 = vst [vmem:[#allocation19_spill] sm:$0xff] %v5138_v50 }
 0x26a   : > { %7297 = vst [vmem:[#allocation15_spill] sm:$0xff] %v5127_v19  ;;  %v7313_v19 = vmov 2  }
 0x26d   : > { %4530 = vset.pattern.permute.xlu1 %v7298_v62 }
 0x26e   : > { %2630 = vperm.xlu1 %4530, %v841_v55   ;;  %v5130_v8 = vpop.permute.xlu0 %1482  ;;  %v5148_v55 = vpop.permute.xlu1 %2106 }
 0x26f   : > { %7299 = vst [vmem:[#allocation16_spill] sm:$0xff] %v5130_v8  ;;  %7304 = vst [vmem:[#allocation21_spill] sm:$0xff] %v5148_v55  ;;  %v7306_v8 = vmov 8  }
 0x272   : > { %4531 = vset.pattern.permute.xlu1 %v7293_v32 }
 0x273   : > { %2758 = vperm.xlu1 %4531, %v5037_v13   ;;  %v5136_v23 = vpop.permute.xlu0 %1171 }
 0x274   : > { %7301 = vst [vmem:[#allocation18_spill] sm:$0xff] %v5136_v23  ;;  %v5156_v23 = vpop.permute.xlu1 %2618 }
 0x275   : > { %7308 = vst [vmem:[#allocation24_spill] sm:$0xff] %v5156_v23 }
 0x277   : > { %4532 = vset.pattern.permute.xlu1 %v7188_v42  ;;  %v5145_v7 = vpop.permute.xlu0 %1176  ;;  %v7310_v42 = vmov 9  }
 0x278   : > { %7303 = vst [vmem:[#allocation20_spill] sm:$0xff] %v5145_v7  ;;  %1049 = vperm.xlu1 %4532, %v5142_v59   ;;  %v5163_v7 = vpop.permute.xlu1 %1726 }
 0x279   : > { %7311 = vst [vmem:[#allocation25_spill] sm:$0xff] %v5163_v7 }
 0x27b   : > { %v5150_v52 = vpop.permute.xlu0 %1181 }
 0x27c   : > { %7305 = vst [vmem:[#allocation22_spill] sm:$0xff] %v5150_v52  ;;  %4533 = vset.pattern.permute.xlu1 %v7306_v8  ;;  %v644_v8 = vpop.xlane.xlu1 %643 }
 0x27d   : > { %1201 = vperm.xlu1 %4533, %v5058_v45  }
 0x27f   : > { %v5154_v13 = vpop.permute.xlu0 %1186 }
 0x280   : > { %7307 = vst [vmem:[#allocation23_spill] sm:$0xff] %v5154_v13  ;;  %v5175_v55 = vpop.permute.xlu1 %1722 }
 0x281   : > { %4536 = vset.pattern.permute.xlu1 %v7309_v48  ;;  %7316 = vst [vmem:[#allocation29_spill] sm:$0xff] %v5175_v55  ;;  %v7320_v55 = vmov 4  }
 0x282   : > { %1610 = vperm.xlu1 %4536, %v5142_v59  }
 0x283   : > { %v5160_v28 = vpop.permute.xlu0 %1206 }
 0x284   : > { %v5186_v7 = vpop.permute.xlu1 %2234 }
 0x285   : > { %7318 = vst [vmem:[#allocation30_spill] sm:$0xff] %v5186_v7  ;;  %v654_v7 = vsub.f32 %v4866_v51, %v5077_v2  ;;  %v7326_v2 = vmov 3  }
 0x286   : > { %4537 = vset.pattern.permute.xlu1 %v7310_v42  ;;  %v5180_v42 = vadd.f32 %v5045_v33, %v4859_v46  ;;  %v652_v33 = vsub.f32 %v4841_v29, %v4953_v16  ;;  %v653_v29 = vsub.f32 %v4870_v53, %v5081_v56  ;;  %v656_v56 = vsub.f32 %v4854_v41, %v644_v8 }
 0x287   : > { %1738 = vperm.xlu1 %4537, %v5058_v45  }
 0x288   : > { %v5166_v52 = vpop.permute.xlu0 %1714  ;;  %v5198_v50 = vpop.permute.xlu1 %2746  ;;  %v661_v24 = vmul.f32 1.442695, %v652_v33 }
 0x289   : > { %7312 = vst [vmem:[#allocation26_spill] sm:$0xff] %v5166_v52  ;;  %v7317_v52 = vmov 0   ;;  %7321 = vst [vmem:[#allocation32_spill] sm:$0xff] %v5198_v50 }
 0x28a   : > { %4590 = vpow2.f32 %v661_v24 }
 0x28b   : > { %4538 = vset.pattern.permute.xlu1 %v7313_v19 }
 0x28c   : > { %1994 = vperm.xlu1 %4538, %v4998_v47   ;;  %v5170_v13 = vpop.permute.xlu0 %1718  ;;  %v5208_v16 = vpop.permute.xlu1 %887 }
 0x28d   : > { %7314 = vst [vmem:[#allocation27_spill] sm:$0xff] %v5170_v13  ;;  %v5190_v13 = vadd.f32 %v4980_v31, %v4859_v46  ;;  %7324 = vst [vmem:[#allocation34_spill] sm:$0xff] %v5208_v16 }
 0x290   : > { %4539 = vset.pattern.permute.xlu1 %v7295_v63  ;;  %v5173_v23 = vpop.permute.xlu0 %1734  ;;  %v5213_v51 = vpop.permute.xlu1 %1602 }
 0x291   : > { %7315 = vst [vmem:[#allocation28_spill] sm:$0xff] %v5173_v23  ;;  %2122 = vperm.xlu1 %4539, %v5142_v59   ;;  %7325 = vst [vmem:[#allocation35_spill] sm:$0xff] %v5213_v51 }
 0x294   : > { %v5182_v45 = vpop.permute.xlu0 %1742  ;;  %v5217_v24 = vpop.eup %4590 }
 0x295   : > { %4540 = vset.pattern.permute.xlu1 %v7317_v52  ;;  %7327 = vst [vmem:[#allocation36_spill] sm:$0xff] %v5217_v24  ;;  %v5221_v53 = vpop.permute.xlu1 %1986 }
 0x296   : > { %902 = vperm.xlu1 %4540, %v5180_v42   ;;  %7328 = vst [vmem:[#allocation37_spill] sm:$0xff] %v5221_v53 }
 0x299   : > { %v5192_v23 = vpop.permute.xlu0 %2738 }
 0x29a   : > { %7319 = vst [vmem:[#allocation31_spill] sm:$0xff] %v5192_v23  ;;  %4541 = vset.pattern.permute.xlu1 %v7320_v55  ;;  %v665_v55 = vmul.f32 1.442695, %v654_v7 }
 0x29b   : > { %1054 = vperm.xlu1 %4541, %v5190_v13  }
 0x29c   : > { %4592 = vpow2.f32 %v665_v55 }
 0x29d   : > { %v5200_v52 = vpop.permute.xlu0 %2750 }
 0x29e   : > { %7322 = vst [vmem:[#allocation33_spill] sm:$0xff] %v5200_v52 }
 0x29f   : > { %4543 = vset.pattern.permute.xlu1 %v7323_v1  ;;  %v663_v1 = vmul.f32 1.442695, %v653_v29 }
 0x2a0   : > { %1486 = vperm.xlu1 %4543, %v5180_v42  }
 0x2a1   : > { %v684_v31 = vpop.permute.xlu0 %683  ;;  %4594 = vpow2.f32 %v663_v1  ;;  %v2993_v1 = vld [vmem:[%s5261_s22] sm:$0xff] }
 0x2a2   : > { %v708_v23 = vsel %vm707_vm2, %v684_v31, 0.0  ;;  %4234 = vmatprep.mubr.msk.f32.mxu1 %vm496_vm0, %v2993_v1 }
 0x2a3   : > { %709 = vadd.xlane.f32.xlu0 %v708_v23 }
 0x2a4   : > { %4544 = vset.pattern.permute.xlu1 %v7309_v48  ;;  %v669_v48 = vmul.f32 1.442695, %v656_v56  ;;  %v3033_v56 = vld [vmem:[%s464_s27] sm:$0xff] }
 0x2a5   : > { %1614 = vperm.xlu1 %4544, %v5190_v13   ;;  %v5321_v52 = vpop.permute.xlu0 %2762 }
 0x2a6   : > { %v5225_v7 = vpop.eup %4592  ;;  %4596 = vpow2.f32 %v669_v48  ;;  %v3035_v48 = vld [vmem:[%s464_s27 + $0x10] sm:$0xff] }
 0x2a7   : > { %7329 = vst [vmem:[#allocation38_spill] sm:$0xff] %v5225_v7 }
 0x2a9   : > { %4546 = vset.pattern.permute.xlu1 %v7326_v2 }
 0x2aa   : > { %2506 = vperm.xlu1 %4546, %v4998_v47  }
 0x2ab   : > { %v5229_v47 = vpop.eup %4594 }
 0x2ac   : > { %7330 = vst [vmem:[#allocation39_spill] sm:$0xff] %v5229_v47 }
 0x2ae   : > { %685 = vrot.lane.b32.xlu1 %v5217_v24, %s4669_s30  ;;  %v3004_v24 = vld [vmem:[%s5261_s22 + $0x58] sm:$0xff] }
 0x2af   : > { %4547 = vset.pattern.permute.xlu1 %v7298_v62 }
 0x2b0   : > { %v5243_v29 = vpop.eup %4596 }
 0x2b1   : > { %7334 = vst [vmem:[#allocation43_spill] sm:$0xff] %v5243_v29 }
 0x2b2   : > { %689 = vrot.lane.b32.xlu1 %v5225_v7, %s4669_s30 }
 0x2b3   : > { %v650_v23 = vpop.xlane.xlu1 %649 }
 0x2b4   : > { %v658_v31 = vsub.f32 %v4859_v46, %v650_v23  ;;  %v3034_v23 = vld [vmem:[%s464_s27 + $0x8] sm:$0xff] }
 0x2b6   : > { %687 = vrot.lane.b32.xlu1 %v5229_v47, %s4669_s30  ;;  %v673_v8 = vmul.f32 1.442695, %v658_v31  ;;  %v3036_v31 = vld [vmem:[%s464_s27 + $0x18] sm:$0xff] }
 0x2b7   : > { %v5233_v33 = vpop.permute.xlu1 %1191 }
 0x2b8   : > { %7331 = vst [vmem:[#allocation40_spill] sm:$0xff] %v5233_v33  ;;  %4598 = vpow2.f32 %v673_v8  ;;  %v4344_v8 = vpack.c.bf16 %v3034_v23, %v3033_v56  ;;  %v2997_v56 = vld [vmem:[%s5261_s22 + $0x20] sm:$0xff] }
 0x2ba   : > { %2634 = vperm.xlu1 %4547, %v5142_v59   ;;  %4345 = vmatprep.subr.bf16.mxu1 %v4344_v8 }
 0x2bb   : > { %v5237_v41 = vpop.permute.xlu1 %1730  ;;  %4347 = vmatpush3.bf16.msra.mxu1 %v4344_v8  ;;  %v2999_v8 = vld [vmem:[%s5261_s22 + $0x30] sm:$0xff] }
 0x2bc   : > { %7332 = vst [vmem:[#allocation41_spill] sm:$0xff] %v5237_v41  ;;  %v3001_v41 = vld [vmem:[%s5261_s22 + $0x40] sm:$0xff] }
 0x2be   : > { %4549 = vset.pattern.permute.xlu1 %v7313_v19 }
 0x2bf   : > { %1998 = vperm.xlu1 %4549, %v5180_v42  }
 0x2c0   : > { %v5241_v55 = vpop.permute.xlu1 %2242 }
 0x2c1   : > { %7333 = vst [vmem:[#allocation42_spill] sm:$0xff] %v5241_v55 }
 0x2c2   : > { %v5252_v59 = vpop.eup %4598 }
 0x2c3   : > { %693 = vrot.lane.b32.xlu1 %v5243_v29, %s4669_s30  ;;  %7336 = vst [vmem:[#allocation45_spill] sm:$0xff] %v5252_v59  ;;  %v3003_v29 = vld [vmem:[%s5261_s22 + $0x50] sm:$0xff] }
 0x2c4   : > { %4550 = vset.pattern.permute.xlu1 %v7295_v63 }
 0x2c5   : > { %v5248_v46 = vpop.permute.xlu1 %1044 }
 0x2c6   : > { %7335 = vst [vmem:[#allocation44_spill] sm:$0xff] %v5248_v46  ;;  %v906_v46 = vlaneseq }
 0x2c7   : > { %2126 = vperm.xlu1 %4550, %v5190_v13  }
 0x2c8   : > { %v907_v23 = vshrl.u32 %v906_v46, 7 }
 0x2ca   : > { %v5254_v19 = vpop.permute.xlu1 %1196 }
 0x2cb   : > { %7337 = vst [vmem:[#allocation46_spill] sm:$0xff] %v5254_v19  ;;  %697 = vrot.lane.b32.xlu1 %v5252_v59, %s4669_s30  ;;  %v2994_v19 = vld [vmem:[%s5261_s22 + $0x8] sm:$0xff] }
 0x2cc   : > { %4552 = vset.pattern.permute.xlu1 %v7298_v62 }
 0x2cf   : > { %v5264_v63 = vpop.permute.xlu1 %1478 }
 0x2d0   : > { %7338 = vst [vmem:[#allocation47_spill] sm:$0xff] %v5264_v63  ;;  %v4348_v63 = vpack.c.bf16 %v3036_v31, %v3035_v48  ;;  %v4002_v31 = vld [vmem:[%s7161_s3 + $0x1] ss:$8 sm:$0x7] }
 0x2d2   : > { %4349 = vmatprep.subr.bf16.mxu1 %v4348_v63 }
 0x2d3   : > { %4351 = vmatpush3.bf16.msra.mxu1 %v4348_v63  ;;  %v2998_v63 = vld [vmem:[%s5261_s22 + $0x28] sm:$0xff] }
 0x2d4   : > { %v5273_v2 = vpop.permute.xlu1 %1606 }
 0x2d5   : > { %7339 = vst [vmem:[#allocation48_spill] sm:$0xff] %v5273_v2  ;;  %v2995_v2 = vld [vmem:[%s5261_s22 + $0x10] sm:$0xff] }
 0x2d6   : > { %4235 = vmatmul.mubr.msk.f32.vlgmr.msra.gmra.mrb[0].mxu1 %vm496_vm0, %v2994_v19  ;;  %v5296_v19 = vsub.s32 0, %v907_v23 }
 0x2d7   : > { %4237 = vmatprep.mubr.msk.f32.mxu1 %vm496_vm0, %v2995_v2  ;;  %v5298_v2 = vsub.s32 1, %v907_v23 }
 0x2d8   : > { %v5304_v46 = vrot.slane %v4002_v31, %v5296_v19 }
 0x2d9   : > { %v5275_v62 = vpop.permute.xlu1 %2498 }
 0x2da   : > { %7340 = vst [vmem:[#allocation49_spill] sm:$0xff] %v5275_v62  ;;  %v2996_v62 = vld [vmem:[%s5261_s22 + $0x18] sm:$0xff]  ;;  %7344 = vst [vmem:[#allocation53_spill] sm:$0xff] %v5304_v46 }
 0x2db   : > { %4238 = vmatmul.mubr.msk.f32.gmra.mrb[2].mxu1 %vm496_vm0, %v2996_v62  ;;  %v5307_v62 = vrot.slane %v4002_v31, %v5298_v2 }
 0x2dc   : > { %4240 = vmatprep.mubr.msk.f32.mxu1 %vm496_vm0, %v2997_v56 }
 0x2dd   : > { %7345 = vst [vmem:[#allocation54_spill] sm:$0xff] %v5307_v62 }
 0x2de   : > { %v5277_v1 = vpop.permute.xlu1 %2754 }
 0x2df   : > { %7341 = vst [vmem:[#allocation50_spill] sm:$0xff] %v5277_v1  ;;  %4241 = vmatmul.mubr.msk.f32.gmra.mrb[4].mxu1 %vm496_vm0, %v2998_v63 }
 0x2e0   : > { %4243 = vmatprep.mubr.msk.f32.mxu1 %vm496_vm0, %v2999_v8 }
 0x2e3   : > { %v5281_v55 = vpop.permute.xlu1 %2118 }
 0x2e4   : > { %7342 = vst [vmem:[#allocation51_spill] sm:$0xff] %v5281_v55  ;;  %v5300_v55 = vsub.s32 2, %v907_v23  ;;  %v4003_v23 = vld [vmem:[%s7161_s3 + $0x2] ss:$8 sm:$0x7] }
 0x2e5   : > { %v5327_v16 = vrot.slane %v4003_v23, %v5296_v19  ;;  %v5330_v50 = vrot.slane %v4003_v23, %v5298_v2 }
 0x2e6   : > { %v5310_v56 = vrot.slane %v4002_v31, %v5300_v55  ;;  %v3002_v31 = vld [vmem:[%s5261_s22 + $0x48] sm:$0xff] }
 0x2e7   : > { %7347 = vst [vmem:[#allocation56_spill] sm:$0xff] %v5327_v16  ;;  %7348 = vst [vmem:[#allocation57_spill] sm:$0xff] %v5330_v50 }
 0x2e8   : > { %v5288_v48 = vpop.permute.xlu1 %2246  ;;  %7346 = vst [vmem:[#allocation55_spill] sm:$0xff] %v5310_v56 }
 0x2e9   : > { %7343 = vst [vmem:[#allocation52_spill] sm:$0xff] %v5288_v48  ;;  %v3000_v48 = vld [vmem:[%s5261_s22 + $0x38] sm:$0xff] }
 0x2ea   : > { %4244 = vmatmul.mubr.msk.f32.gmra.mrb[6].mxu1 %vm496_vm0, %v3000_v48 }
 0x2eb   : > { %4246 = vmatprep.mubr.msk.f32.mxu1 %vm496_vm0, %v3001_v41 }
 0x2ed   : > { %v2631_v1 = vpop.permute.xlu1 %2630 }
 0x2ee   : > { %v2656_v63 = vsub.f32 %v2631_v1, %v5304_v46  ;;  %v2657_v33 = vsub.f32 %v2631_v1, %v5307_v62  ;;  %v2658_v59 = vsub.f32 %v2631_v1, %v5310_v56  ;;  %v5333_v1 = vrot.slane %v4003_v23, %v5300_v55  ;;  %4247 = vmatmul.mubr.msk.f32.gmra.mrb[8].mxu1 %vm496_vm0, %v3002_v31  ;;  %v5343_v23 = vpop.permute.xlu0 %2226 }
 0x2ef   : > { %4249 = vmatprep.mubr.msk.f32.mxu1 %vm496_vm0, %v3003_v29  ;;  %7350 = vst [vmem:[#allocation59_spill] sm:$0xff] %v5343_v23 }
 0x2f0   : > { %v2680_v8 = vand.u32 2147483647, %v2656_v63  ;;  %v2681_v53 = vand.u32 2147483647, %v2657_v33  ;;  %v2682_v51 = vand.u32 2147483647, %v2658_v59 }
 0x2f1   : > { %7349 = vst [vmem:[#allocation58_spill] sm:$0xff] %v5333_v1 }
 0x2f2   : > { %v2759_v47 = vpop.permute.xlu1 %2758  ;;  %v2704_v48 = vsub.f32 1.0, %v2680_v8  ;;  %v2705_v41 = vsub.f32 1.0, %v2681_v53  ;;  %v2706_v7 = vsub.f32 1.0, %v2682_v51  ;;  %4250 = vmatmul.mubr.msk.f32.gmra.mrb[10].mxu1 %vm496_vm0, %v3004_v24 }
 0x2f3   : > { %v2784_v63 = vsub.f32 %v2759_v47, %v5327_v16  ;;  %v2785_v33 = vsub.f32 %v2759_v47, %v5330_v50  ;;  %v2786_v59 = vsub.f32 %v2759_v47, %v5333_v1  ;;  %4252 = vmatprep.mubr.msk.f32.mxu1 %vm496_vm0, %v3005_v9 }
 0x2f4   : > { %v2728_v26 = vmax.f32 %v2704_v48, 0.0  ;;  %v2729_v53 = vmax.f32 %v2705_v41, 0.0  ;;  %v5352_v41 = vpop.permute.xlu0 %2230 }
 0x2f5   : > { %v2808_v34 = vand.u32 2147483647, %v2784_v63  ;;  %v2809_v11 = vand.u32 2147483647, %v2785_v33  ;;  %v2810_v8 = vand.u32 2147483647, %v2786_v59 }
 0x2f6   : > { %v3006_v63 = vld [vmem:[%s5261_s22 + $0x68] sm:$0xff]  ;;  %v2730_v33 = vmax.f32 %v2706_v7, 0.0  ;;  %7351 = vst [vmem:[#allocation60_spill] sm:$0xff] %v5352_v41 }
 0x2f7   : > { %v2832_v18 = vsub.f32 1.0, %v2808_v34  ;;  %v2833_v0 = vsub.f32 1.0, %v2809_v11  ;;  %v2834_v60 = vsub.f32 1.0, %v2810_v8  ;;  %v1050_v47 = vpop.permute.xlu1 %1049  ;;  %v3007_v11 = vld [vmem:[%s5261_s22 + $0x70] sm:$0xff]  ;;  %4253 = vmatmul.mubr.msk.f32.gmra.mrb[12].mxu1 %vm496_vm0, %v3006_v63  ;;  %v3010_v63 = vld [vmem:[%s5261_s22 + $0x88] sm:$0xff] }
 0x2f8   : > { %v1091_v51 = vsub.f32 %v1050_v47, %v5304_v46  ;;  %v1092_v29 = vsub.f32 %v1050_v47, %v5307_v62  ;;  %v1093_v31 = vsub.f32 %v1050_v47, %v5310_v56  ;;  %4255 = vmatprep.mubr.msk.f32.mxu1 %vm496_vm0, %v3007_v11 }
 0x2f9   : > { %v2856_v48 = vmax.f32 %v2832_v18, 0.0  ;;  %v2857_v59 = vmax.f32 %v2833_v0, 0.0  ;;  %v2858_v34 = vmax.f32 %v2834_v60, 0.0  ;;  %v3008_v60 = vld [vmem:[%s5261_s22 + $0x78] sm:$0xff] }
 0x2fa   : > { %v1115_v8 = vand.u32 2147483647, %v1091_v51  ;;  %v1116_v23 = vand.u32 2147483647, %v1092_v29  ;;  %v1117_v24 = vand.u32 2147483647, %v1093_v31 }
 0x2fb   : > { %v5354_v10 = vmul.f32 %v2856_v48, %v2728_v26  ;;  %v5356_v20 = vmul.f32 %v2857_v59, %v2729_v53  ;;  %v5358_v47 = vmul.f32 %v2858_v34, %v2730_v33  ;;  %v3009_v26 = vld [vmem:[%s5261_s22 + $0x80] sm:$0xff]  ;;  %4256 = vmatmul.mubr.msk.f32.gmra.mrb[14].mxu1 %vm496_vm0, %v3008_v60  ;;  %v5370_v59 = vpop.permute.xlu0 %2238 }
 0x2fc   : > { %v1202_v9 = vpop.permute.xlu1 %1201  ;;  %v1139_v0 = vsub.f32 1.0, %v1115_v8  ;;  %v1140_v53 = vsub.f32 1.0, %v1116_v23  ;;  %v1141_v29 = vsub.f32 1.0, %v1117_v24  ;;  %4258 = vmatprep.mubr.msk.f32.mxu1 %vm496_vm0, %v3009_v26  ;;  %7355 = vst [vmem:[#allocation64_spill] sm:$0xff] %v5370_v59 }
 0x2fd   : > { %7352 = vst [vmem:[#allocation61_spill] sm:$0xff] %v5354_v10  ;;  %7353 = vst [vmem:[#allocation62_spill] sm:$0xff] %v5356_v20  ;;  %v1243_v18 = vsub.f32 %v1202_v9, %v5327_v16  ;;  %v1244_v7 = vsub.f32 %v1202_v9, %v5330_v50  ;;  %v1245_v51 = vsub.f32 %v1202_v9, %v5333_v1  ;;  %v3011_v10 = vld [vmem:[%s5261_s22 + $0x90] sm:$0xff] }
 0x2fe   : > { %7354 = vst [vmem:[#allocation63_spill] sm:$0xff] %v5358_v47  ;;  %v1163_v34 = vmax.f32 %v1139_v0, 0.0  ;;  %v1164_v47 = vmax.f32 %v1140_v53, 0.0  ;;  %v3012_v0 = vld [vmem:[%s5261_s22 + $0x98] sm:$0xff] }
 0x2ff   : > { %v1267_v31 = vand.u32 2147483647, %v1243_v18  ;;  %v1268_v33 = vand.u32 2147483647, %v1244_v7  ;;  %v1269_v48 = vand.u32 2147483647, %v1245_v51  ;;  %4259 = vmatmul.mubr.msk.f32.gmra.mrb[16].mxu1 %vm496_vm0, %v3010_v63 }
 0x300   : > { %v1165_v18 = vmax.f32 %v1141_v29, 0.0  ;;  %4261 = vmatprep.mubr.msk.f32.mxu1 %vm496_vm0, %v3011_v10  ;;  %v3013_v29 = vld [vmem:[%s5261_s22 + $0xa0] sm:$0xff] }
 0x301   : > { %v1291_v11 = vsub.f32 1.0, %v1267_v31  ;;  %v1292_v8 = vsub.f32 1.0, %v1268_v33  ;;  %v1293_v20 = vsub.f32 1.0, %v1269_v48  ;;  %v1611_v9 = vpop.permute.xlu1 %1610 }
 0x302   : > { %v1635_v23 = vsub.f32 %v1611_v9, %v5304_v46  ;;  %v1636_v24 = vsub.f32 %v1611_v9, %v5307_v62  ;;  %v1637_v60 = vsub.f32 %v1611_v9, %v5310_v56 }
 0x303   : > { %v1315_v7 = vmax.f32 %v1291_v11, 0.0  ;;  %v1316_v51 = vmax.f32 %v1292_v8, 0.0  ;;  %v1317_v26 = vmax.f32 %v1293_v20, 0.0  ;;  %v2251_v8 = vpop.permute.xlu0 %2250  ;;  %4262 = vmatmul.mubr.msk.f32.gmra.mrb[18].mxu1 %vm496_vm0, %v3012_v0 }
 0x304   : > { %v1659_v31 = vand.u32 2147483647, %v1635_v23  ;;  %v1660_v33 = vand.u32 2147483647, %v1636_v24  ;;  %v1661_v48 = vand.u32 2147483647, %v1637_v60  ;;  %4264 = vmatprep.mubr.msk.f32.mxu1 %vm496_vm0, %v3013_v29 }
 0x305   : > { %v5379_v53 = vmul.f32 %v1315_v7, %v1163_v34  ;;  %v5381_v59 = vmul.f32 %v1316_v51, %v1164_v47  ;;  %v5383_v41 = vmul.f32 %v1317_v26, %v1165_v18  ;;  %v3014_v47 = vld [vmem:[%s5261_s22 + $0xa8] sm:$0xff]  ;;  %v3015_v34 = vld [vmem:[%s5261_s22 + $0xb0] sm:$0xff]  ;;  %v2275_v51 = vsub.f32 %v2251_v8, %v5327_v16 }
 0x306   : > { %v1739_v11 = vpop.permute.xlu1 %1738  ;;  %v1683_v23 = vsub.f32 1.0, %v1659_v31  ;;  %v1684_v10 = vsub.f32 1.0, %v1660_v33  ;;  %v1685_v24 = vsub.f32 1.0, %v1661_v48  ;;  %v2276_v26 = vsub.f32 %v2251_v8, %v5330_v50 }
 0x307   : > { %7356 = vst [vmem:[#allocation65_spill] sm:$0xff] %v5379_v53  ;;  %7357 = vst [vmem:[#allocation66_spill] sm:$0xff] %v5381_v59  ;;  %v1763_v20 = vsub.f32 %v1739_v11, %v5327_v16  ;;  %v1764_v63 = vsub.f32 %v1739_v11, %v5330_v50  ;;  %v1765_v9 = vsub.f32 %v1739_v11, %v5333_v1  ;;  %4265 = vmatmul.mubr.msk.f32.gmra.mrb[20].mxu1 %vm496_vm0, %v3014_v47 }
 0x308   : > { %7358 = vst [vmem:[#allocation67_spill] sm:$0xff] %v5383_v41  ;;  %v2277_v11 = vsub.f32 %v2251_v8, %v5333_v1  ;;  %v1707_v48 = vmax.f32 %v1683_v23, 0.0  ;;  %v1708_v29 = vmax.f32 %v1684_v10, 0.0  ;;  %4267 = vmatprep.mubr.msk.f32.mxu1 %vm496_vm0, %v3015_v34  ;;  %v2299_v8 = vand.u32 2147483647, %v2275_v51  ;;  %v3018_v10 = vld [vmem:[%s5261_s22 + $0xc8] sm:$0xff] }
 0x309   : > { %v1787_v60 = vand.u32 2147483647, %v1763_v20  ;;  %v1788_v18 = vand.u32 2147483647, %v1764_v63  ;;  %v1789_v7 = vand.u32 2147483647, %v1765_v9 }
 0x30a   : > { %v3016_v20 = vld [vmem:[%s5261_s22 + $0xb8] sm:$0xff]  ;;  %v1709_v63 = vmax.f32 %v1685_v24, 0.0  ;;  %v3019_v51 = vld [vmem:[%s5261_s22 + $0xd0] sm:$0xff] }
 0x30b   : > { %v1811_v41 = vsub.f32 1.0, %v1787_v60  ;;  %v1812_v0 = vsub.f32 1.0, %v1788_v18  ;;  %v1813_v31 = vsub.f32 1.0, %v1789_v7  ;;  %v5396_v33 = vpop.permute.xlu1 %1994  ;;  %v2300_v60 = vand.u32 2147483647, %v2276_v26  ;;  %4268 = vmatmul.mubr.msk.f32.gmra.mrb[22].mxu1 %vm496_vm0, %v3016_v20  ;;  %v3020_v20 = vld [vmem:[%s5261_s22 + $0xd8] sm:$0xff] }
 0x30c   : > { %7359 = vst [vmem:[#allocation68_spill] sm:$0xff] %v5396_v33  ;;  %v2301_v18 = vand.u32 2147483647, %v2277_v11  ;;  %4270 = vmatprep.mubr.msk.f32.mxu1 %vm496_vm0, %v3017_v39  ;;  %v1247_v39 = vsub.f32 %v5160_v28, %v5330_v50 }
 0x30d   : > { %v1835_v9 = vmax.f32 %v1811_v41, 0.0  ;;  %v1836_v59 = vmax.f32 %v1812_v0, 0.0  ;;  %v1837_v53 = vmax.f32 %v1813_v31, 0.0  ;;  %v2324_v26 = vsub.f32 1.0, %v2300_v60 }
 0x30e   : > { %v2325_v11 = vsub.f32 1.0, %v2301_v18  ;;  %v3021_v18 = vld [vmem:[%s5261_s22 + $0xe0] sm:$0xff] }
 0x30f   : > { %v5402_v7 = vmul.f32 %v1835_v9, %v1707_v48  ;;  %v5404_v33 = vmul.f32 %v1836_v59, %v1708_v29  ;;  %v5406_v47 = vmul.f32 %v1837_v53, %v1709_v63  ;;  %v1246_v59 = vsub.f32 %v5160_v28, %v5327_v16  ;;  %4271 = vmatmul.mubr.msk.f32.gmra.mrb[24].mxu1 %vm496_vm0, %v3018_v10 }
 0x310   : > { %v2123_v23 = vpop.permute.xlu1 %2122  ;;  %v2323_v53 = vsub.f32 1.0, %v2299_v8  ;;  %v1248_v29 = vsub.f32 %v5160_v28, %v5333_v1  ;;  %4273 = vmatprep.mubr.msk.f32.mxu1 %vm496_vm0, %v3019_v51  ;;  %v2348_v10 = vmax.f32 %v2324_v26, 0.0  ;;  %v1271_v28 = vand.u32 2147483647, %v1247_v39 }
 0x311   : > { %7360 = vst [vmem:[#allocation69_spill] sm:$0xff] %v5402_v7  ;;  %7361 = vst [vmem:[#allocation70_spill] sm:$0xff] %v5404_v33  ;;  %v2147_v41 = vsub.f32 %v2123_v23, %v5304_v46  ;;  %v2148_v24 = vsub.f32 %v2123_v23, %v5307_v62  ;;  %v2149_v34 = vsub.f32 %v2123_v23, %v5310_v56  ;;  %v1270_v23 = vand.u32 2147483647, %v1246_v59 }
 0x312   : > { %7362 = vst [vmem:[#allocation71_spill] sm:$0xff] %v5406_v47  ;;  %v1272_v51 = vand.u32 2147483647, %v1248_v29 }
 0x313   : > { %v2171_v0 = vand.u32 2147483647, %v2147_v41  ;;  %v2172_v31 = vand.u32 2147483647, %v2148_v24  ;;  %v2173_v48 = vand.u32 2147483647, %v2149_v34  ;;  %4274 = vmatmul.mubr.msk.f32.gmra.mrb[26].mxu1 %vm496_vm0, %v3020_v20 }
 0x314   : > { %v2347_v41 = vmax.f32 %v2323_v53, 0.0  ;;  %v2349_v24 = vmax.f32 %v2325_v11, 0.0  ;;  %4276 = vmatprep.mubr.msk.f32.mxu1 %vm496_vm0, %v3021_v18  ;;  %v3023_v53 = vld [vmem:[%s5261_s22 + $0xf0] sm:$0xff]  ;;  %v1294_v29 = vsub.f32 1.0, %v1270_v23  ;;  %v1295_v20 = vsub.f32 1.0, %v1271_v28 }
 0x315   : > { %v2195_v63 = vsub.f32 1.0, %v2171_v0  ;;  %v2196_v9 = vsub.f32 1.0, %v2172_v31  ;;  %v2197_v8 = vsub.f32 1.0, %v2173_v48  ;;  %v5424_v60 = vpop.permute.xlu1 %902  ;;  %v3022_v0 = vld [vmem:[%s5261_s22 + $0xe8] sm:$0xff] }
 0x316   : > { %7363 = vst [vmem:[#allocation72_spill] sm:$0xff] %v5424_v60 }
 0x317   : > { %v2219_v34 = vmax.f32 %v2195_v63, 0.0  ;;  %v2220_v47 = vmax.f32 %v2196_v9, 0.0  ;;  %v2221_v33 = vmax.f32 %v2197_v8, 0.0  ;;  %4277 = vmatmul.mubr.msk.f32.gmra.mrb[28].mxu1 %vm496_vm0, %v3022_v0  ;;  %v1296_v9 = vsub.f32 1.0, %v1272_v51  ;;  %v3024_v8 = vld [vmem:[%s5261_s22 + $0xf8] sm:$0xff] }
 0x318   : > { %4279 = vmatprep.mubr.msk.f32.mxu1 %vm496_vm0, %v3023_v53  ;;  %v1318_v53 = vmax.f32 %v1294_v29, 0.0 }
 0x319   : > { %v5430_v31 = vmul.f32 %v2347_v41, %v2219_v34  ;;  %v5432_v48 = vmul.f32 %v2348_v10, %v2220_v47  ;;  %v5434_v59 = vmul.f32 %v2349_v24, %v2221_v33  ;;  %v3025_v47 = vld [vmem:[%s5261_s22 + $0x100] sm:$0xff]  ;;  %v1766_v10 = vsub.f32 %v5182_v45, %v5327_v16 }
 0x31a   : > { %v1055_v26 = vpop.permute.xlu1 %1054  ;;  %v1767_v24 = vsub.f32 %v5182_v45, %v5330_v50  ;;  %v1768_v34 = vsub.f32 %v5182_v45, %v5333_v1 }
 0x31b   : > { %7364 = vst [vmem:[#allocation73_spill] sm:$0xff] %v5430_v31  ;;  %7365 = vst [vmem:[#allocation74_spill] sm:$0xff] %v5432_v48  ;;  %v1094_v11 = vsub.f32 %v1055_v26, %v5304_v46  ;;  %v1095_v63 = vsub.f32 %v1055_v26, %v5307_v62  ;;  %v1096_v39 = vsub.f32 %v1055_v26, %v5310_v56  ;;  %4280 = vmatmul.mubr.msk.f32.gmra.mrb[30].mxu1 %vm496_vm0, %v3024_v8 }
 0x31c   : > { %7366 = vst [vmem:[#allocation75_spill] sm:$0xff] %v5434_v59  ;;  %v1319_v26 = vmax.f32 %v1295_v20, 0.0  ;;  %4282 = vmatprep.mubr.msk.f32.mxu1 %vm496_vm0, %v3025_v47  ;;  %v1790_v59 = vand.u32 2147483647, %v1766_v10  ;;  %v1791_v48 = vand.u32 2147483647, %v1767_v24 }
 0x31d   : > { %v1118_v33 = vand.u32 2147483647, %v1094_v11  ;;  %v1119_v18 = vand.u32 2147483647, %v1095_v63  ;;  %v1120_v41 = vand.u32 2147483647, %v1096_v39 }
 0x31e   : > { %v3026_v11 = vld [vmem:[%s5261_s22 + $0x108] sm:$0xff]  ;;  %v1320_v63 = vmax.f32 %v1296_v9, 0.0  ;;  %v1792_v31 = vand.u32 2147483647, %v1768_v34  ;;  %v1814_v47 = vsub.f32 1.0, %v1790_v59 }
 0x31f   : > { %v1142_v23 = vsub.f32 1.0, %v1118_v33  ;;  %v1143_v28 = vsub.f32 1.0, %v1119_v18  ;;  %v1144_v51 = vsub.f32 1.0, %v1120_v41  ;;  %v5450_v0 = vpop.permute.xlu1 %1486  ;;  %4283 = vmatmul.mubr.msk.f32.gmra.mrb[32].mxu1 %vm496_vm0, %v3026_v11  ;;  %v1815_v41 = vsub.f32 1.0, %v1791_v48 }
 0x320   : > { %7367 = vst [vmem:[#allocation76_spill] sm:$0xff] %v5450_v0  ;;  %v1816_v10 = vsub.f32 1.0, %v1792_v31 }
 0x321   : > { %v1166_v39 = vmax.f32 %v1142_v23, 0.0  ;;  %v1167_v7 = vmax.f32 %v1143_v28, 0.0  ;;  %v1168_v60 = vmax.f32 %v1144_v51, 0.0 }
 0x322   : > { %v1840_v11 = vmax.f32 %v1816_v10, 0.0  ;;  %v2789_v10 = vsub.f32 %v5321_v52, %v5333_v1 }
 0x323   : > { %v5455_v45 = vmul.f32 %v1318_v53, %v1166_v39  ;;  %v5457_v33 = vmul.f32 %v1319_v26, %v1167_v7  ;;  %v5459_v18 = vmul.f32 %v1320_v63, %v1168_v60  ;;  %v1838_v53 = vmax.f32 %v1814_v47, 0.0 }
 0x324   : > { %v1615_v29 = vpop.permute.xlu1 %1614  ;;  %v1839_v26 = vmax.f32 %v1815_v41, 0.0  ;;  %v2788_v41 = vsub.f32 %v5321_v52, %v5330_v50 }
 0x325   : > { %7368 = vst [vmem:[#allocation77_spill] sm:$0xff] %v5455_v45  ;;  %7369 = vst [vmem:[#allocation78_spill] sm:$0xff] %v5457_v33  ;;  %v1638_v20 = vsub.f32 %v1615_v29, %v5304_v46  ;;  %v1639_v8 = vsub.f32 %v1615_v29, %v5307_v62  ;;  %v1640_v9 = vsub.f32 %v1615_v29, %v5310_v56 }
 0x326   : > { %7370 = vst [vmem:[#allocation79_spill] sm:$0xff] %v5459_v18 }
 0x327   : > { %v1662_v24 = vand.u32 2147483647, %v1638_v20  ;;  %v1663_v34 = vand.u32 2147483647, %v1639_v8  ;;  %v1664_v23 = vand.u32 2147483647, %v1640_v9  ;;  %v692_v20 = vpop.permute.xlu0 %691  ;;  %v2787_v8 = vsub.f32 %v5321_v52, %v5327_v16 }
 0x328   : > { %v720_v52 = vsel %vm707_vm2, %v692_v20, 0.0 }
 0x329   : > { %v1686_v28 = vsub.f32 1.0, %v1662_v24  ;;  %v1687_v7 = vsub.f32 1.0, %v1663_v34  ;;  %v1688_v51 = vsub.f32 1.0, %v1664_v23  ;;  %v5465_v60 = vpop.permute.xlu1 %2506 }
 0x32a   : > { %7371 = vst [vmem:[#allocation80_spill] sm:$0xff] %v5465_v60 }
 0x32b   : > { %v1710_v63 = vmax.f32 %v1686_v28, 0.0  ;;  %v1711_v39 = vmax.f32 %v1687_v7, 0.0  ;;  %v1712_v18 = vmax.f32 %v1688_v51, 0.0  ;;  %v696_v34 = vpop.permute.xlu0 %695  ;;  %v2812_v28 = vand.u32 2147483647, %v2788_v41 }
 0x32c   : > { %v2813_v7 = vand.u32 2147483647, %v2789_v10  ;;  %v3027_v10 = vld [vmem:[%s5261_s22 + $0x110] sm:$0xff] }
 0x32d   : > { %v5467_v33 = vmul.f32 %v1838_v53, %v1710_v63  ;;  %v5469_v29 = vmul.f32 %v1839_v26, %v1711_v39  ;;  %v5471_v48 = vmul.f32 %v1840_v11, %v1712_v18  ;;  %v686_v31 = vpop.permute.xlu1 %685  ;;  %v2811_v18 = vand.u32 2147483647, %v2787_v8  ;;  %4285 = vmatprep.mubr.msk.f32.mxu1 %vm496_vm0, %v3027_v10 }
 0x32e   : > { %v711_v59 = vsel %vm707_vm2, %v686_v31, 0.0  ;;  %v2836_v39 = vsub.f32 1.0, %v2812_v28  ;;  %v2837_v31 = vsub.f32 1.0, %v2813_v7 }
 0x32f   : > { %7372 = vst [vmem:[#allocation81_spill] sm:$0xff] %v5467_v33  ;;  %7373 = vst [vmem:[#allocation82_spill] sm:$0xff] %v5469_v29  ;;  %712 = vadd.xlane.f32.xlu1 %v711_v59  ;;  %v2835_v51 = vsub.f32 1.0, %v2811_v18  ;;  %v2255_v59 = vpop.permute.xlu0 %2254  ;;  %v726_v18 = vsel %vm707_vm2, %v696_v34, 0.0 }
 0x330   : > { %7374 = vst [vmem:[#allocation83_spill] sm:$0xff] %v5471_v48  ;;  %v2860_v20 = vmax.f32 %v2836_v39, 0.0  ;;  %v2861_v28 = vmax.f32 %v2837_v31, 0.0  ;;  %v2278_v7 = vsub.f32 %v2255_v59, %v5327_v16  ;;  %v2280_v34 = vsub.f32 %v2255_v59, %v5333_v1  ;;  %v3030_v39 = vld [vmem:[%s5261_s22 + $0x128] sm:$0xff] }
 0x331   : > { %v690_v9 = vpop.permute.xlu1 %689  ;;  %v2859_v41 = vmax.f32 %v2835_v51, 0.0 }
 0x332   : > { %v717_v47 = vsel %vm707_vm2, %v690_v9, 0.0 }
 0x333   : > { %718 = vadd.xlane.f32.xlu1 %v717_v47 }
 0x335   : > { %v688_v24 = vpop.permute.xlu1 %687 }
 0x336   : > { %v714_v23 = vsel %vm707_vm2, %v688_v24, 0.0  ;;  %v3028_v24 = vld [vmem:[%s5261_s22 + $0x118] sm:$0xff] }
 0x337   : > { %715 = vadd.xlane.f32.xlu0 %v714_v23  ;;  %4286 = vmatmul.mubr.msk.f32.gmra.mrb[34].mxu1 %vm496_vm0, %v3028_v24 }
 0x339   : > { %v2635_v53 = vpop.permute.xlu1 %2634 }
 0x33a   : > { %v2659_v26 = vsub.f32 %v2635_v53, %v5304_v46  ;;  %v2660_v11 = vsub.f32 %v2635_v53, %v5307_v62  ;;  %v2661_v63 = vsub.f32 %v2635_v53, %v5310_v56 }
 0x33b   : > { %721 = vadd.xlane.f32.xlu0 %v720_v52  ;;  %v5496_v52 = vpop.permute.xlu0 %2486 }
 0x33c   : > { %v2683_v8 = vand.u32 2147483647, %v2659_v26  ;;  %v2684_v9 = vand.u32 2147483647, %v2660_v11  ;;  %v2685_v47 = vand.u32 2147483647, %v2661_v63  ;;  %v2279_v26 = vsub.f32 %v2255_v59, %v5330_v50 }
 0x33d   : > { %7376 = vst [vmem:[#allocation85_spill] sm:$0xff] %v5496_v52  ;;  %v2302_v59 = vand.u32 2147483647, %v2278_v7 }
 0x33e   : > { %v2707_v23 = vsub.f32 1.0, %v2683_v8  ;;  %v2708_v48 = vsub.f32 1.0, %v2684_v9  ;;  %v2709_v29 = vsub.f32 1.0, %v2685_v47  ;;  %v5489_v53 = vpop.permute.xlu1 %1998  ;;  %v3029_v9 = vld [vmem:[%s5261_s22 + $0x120] sm:$0xff] }
 0x33f   : > { %7375 = vst [vmem:[#allocation84_spill] sm:$0xff] %v5489_v53  ;;  %727 = vadd.xlane.f32.xlu0 %v726_v18  ;;  %4288 = vmatprep.mubr.msk.f32.mxu1 %vm496_vm0, %v3029_v9  ;;  %v2304_v18 = vand.u32 2147483647, %v2280_v34  ;;  %v5515_v7 = vpop.permute.xlu0 %2490 }
 0x340   : > { %v2731_v51 = vmax.f32 %v2707_v23, 0.0  ;;  %v2732_v11 = vmax.f32 %v2708_v48, 0.0  ;;  %v2733_v63 = vmax.f32 %v2709_v29, 0.0  ;;  %v2303_v48 = vand.u32 2147483647, %v2279_v26  ;;  %4289 = vmatmul.mubr.msk.f32.gmra.mrb[36].mxu1 %vm496_vm0, %v3030_v39  ;;  %v3031_v29 = vld [vmem:[%s5261_s22 + $0x130] sm:$0xff] }
 0x341   : > { %v3032_v23 = vld [vmem:[%s5261_s22 + $0x138] sm:$0xff]  ;;  %4291 = vmatprep.mubr.msk.f32.mxu1 %vm496_vm0, %v3031_v29  ;;  %7380 = vst [vmem:[#allocation89_spill] sm:$0xff] %v5515_v7  ;;  %s5892_s22 = scalar_lea.vmem %s7165_s7, %s4771_s24 }
 0x342   : > { %v694_v8 = vpop.permute.xlu1 %693  ;;  %v5500_v31 = vmul.f32 %v2859_v41, %v2731_v51  ;;  %v5502_v47 = vmul.f32 %v2860_v20, %v2732_v11  ;;  %v5504_v10 = vmul.f32 %v2861_v28, %v2733_v63  ;;  %v2326_v51 = vsub.f32 1.0, %v2302_v59 }
 0x343   : > { %v723_v24 = vsel %vm707_vm2, %v694_v8, 0.0  ;;  %v2327_v11 = vsub.f32 1.0, %v2303_v48  ;;  %v2328_v63 = vsub.f32 1.0, %v2304_v18 }
 0x344   : > { %7377 = vst [vmem:[#allocation86_spill] sm:$0xff] %v5500_v31  ;;  %7378 = vst [vmem:[#allocation87_spill] sm:$0xff] %v5502_v47  ;;  %724 = vadd.xlane.f32.xlu1 %v723_v24  ;;  %4292 = vmatmul.mubr.msk.f32.gmra.mrb[38].mxu1 %vm496_vm0, %v3032_v23  ;;  %v2350_v53 = vmax.f32 %v2326_v51, 0.0 }
 0x345   : > { %7379 = vst [vmem:[#allocation88_spill] sm:$0xff] %v5504_v10  ;;  %v2351_v0 = vmax.f32 %v2327_v11, 0.0  ;;  %v710_v10 = vpop.xlane.xlu0 %709 }
 0x346   : > { %v2127_v33 = vpop.permute.xlu1 %2126  ;;  %4600 = vrcp.f32 %v710_v10 }
 0x347   : > { %v2150_v41 = vsub.f32 %v2127_v33, %v5304_v46  ;;  %v2151_v20 = vsub.f32 %v2127_v33, %v5307_v62  ;;  %v2152_v28 = vsub.f32 %v2127_v33, %v5310_v56  ;;  %v2352_v33 = vmax.f32 %v2328_v63, 0.0 }
 0x349   : > { %v2174_v26 = vand.u32 2147483647, %v2150_v41  ;;  %v2175_v34 = vand.u32 2147483647, %v2151_v20  ;;  %v2176_v8 = vand.u32 2147483647, %v2152_v28 }
 0x34a   : > { %v698_v9 = vpop.permute.xlu1 %697  ;;  %v860_v20 = vld [vmem:[%s7161_s3] ss:$8 sm:$0x7] }
 0x34b   : > { %v2198_v39 = vsub.f32 1.0, %v2174_v26  ;;  %v2199_v24 = vsub.f32 1.0, %v2175_v34  ;;  %v2200_v29 = vsub.f32 1.0, %v2176_v8  ;;  %v729_v45 = vsel %vm707_vm2, %v698_v9, 0.0 }
 0x34c   : > { %730 = vadd.xlane.f32.xlu1 %v729_v45  ;;  %v5529_v28 = vrot.slane %v860_v20, %v5296_v19  ;;  %v5532_v45 = vrot.slane %v860_v20, %v5298_v2  ;;  %v5535_v51 = vrot.slane %v860_v20, %v5300_v55  ;;  %v1076_v19 = vsub.f32 %v4990_v38, %v5304_v46 }
 0x34d   : > { %v2222_v59 = vmax.f32 %v2198_v39, 0.0  ;;  %v2223_v48 = vmax.f32 %v2199_v24, 0.0  ;;  %v2224_v18 = vmax.f32 %v2200_v29, 0.0  ;;  %v1077_v55 = vsub.f32 %v4990_v38, %v5307_v62 }
 0x34e   : > { %7384 = vst [vmem:[#allocation93_spill] sm:$0xff] %v5529_v28  ;;  %7385 = vst [vmem:[#allocation94_spill] sm:$0xff] %v5535_v51  ;;  %v926_v10 = vsub.f32 %v4986_v36, %v5535_v51  ;;  %v1492_v34 = vsub.f32 %v4995_v43, %v5529_v28  ;;  %v7247_v8 = vmov 14   ;;  %v1100_v9 = vand.u32 2147483647, %v1076_v19 }
 0x34f   : > { %v5519_v47 = vmul.f32 %v2350_v53, %v2222_v59  ;;  %v5521_v23 = vmul.f32 %v2351_v0, %v2223_v48  ;;  %v5523_v41 = vmul.f32 %v2352_v33, %v2224_v18  ;;  %v924_v0 = vsub.f32 %v4986_v36, %v5529_v28 }
 0x350   : > { %v925_v53 = vsub.f32 %v4986_v36, %v5532_v45  ;;  %v4601_v11 = vpop.eup %4600  ;;  %v950_v26 = vand.u32 2147483647, %v926_v10  ;;  %v1101_v39 = vand.u32 2147483647, %v1077_v55  ;;  %v1494_v24 = vsub.f32 %v4995_v43, %v5535_v51 }
 0x351   : > { %7381 = vst [vmem:[#allocation90_spill] sm:$0xff] %v5519_v47  ;;  %7382 = vst [vmem:[#allocation91_spill] sm:$0xff] %v5521_v23  ;;  %v948_v2 = vand.u32 2147483647, %v924_v0  ;;  %v5554_v36 = vmul.f32 %v4601_v11, %v5054_v44  ;;  %v1516_v33 = vand.u32 2147483647, %v1492_v34  ;;  %v1620_v18 = vsub.f32 %v5001_v49, %v5304_v46 }
 0x352   : > { %7383 = vst [vmem:[#allocation92_spill] sm:$0xff] %v5523_v41  ;;  %v949_v63 = vand.u32 2147483647, %v925_v53  ;;  %v974_v59 = vsub.f32 1.0, %v950_v26  ;;  %v1124_v20 = vsub.f32 1.0, %v1100_v9  ;;  %v1125_v0 = vsub.f32 1.0, %v1101_v39 }
 0x353   : > { %v972_v29 = vsub.f32 1.0, %v948_v2  ;;  %v1622_v53 = vsub.f32 %v5001_v49, %v5310_v56  ;;  %v1518_v11 = vand.u32 2147483647, %v1494_v24  ;;  %v2004_v55 = vsub.f32 %v5008_v58, %v5529_v28 }
 0x354   : > { %v973_v44 = vsub.f32 1.0, %v949_v63  ;;  %v5579_v2 = vmax.f32 %v974_v59, 0.0  ;;  %v5583_v34 = vmax.f32 %v1124_v20, 0.0  ;;  %v2132_v39 = vsub.f32 %v5014_v61, %v5304_v46 }
 0x355   : > { %2502 = vperm.xlu0 %4551, %v4924_v12   ;;  %v1078_v12 = vsub.f32 %v4990_v38, %v5310_v56  ;;  %v5573_v19 = vmax.f32 %v972_v29, 0.0  ;;  %v1646_v9 = vand.u32 2147483647, %v1622_v53  ;;  %v2006_v29 = vsub.f32 %v5008_v58, %v5535_v51 }
 0x356   : > { %7388 = vst [vmem:[#allocation97_spill] sm:$0xff] %v5579_v2  ;;  %v2028_v59 = vand.u32 2147483647, %v2004_v55 }
 0x357   : > { %v1102_v38 = vand.u32 2147483647, %v1078_v12  ;;  %7386 = vst [vmem:[#allocation95_spill] sm:$0xff] %v5573_v19  ;;  %v1540_v12 = vsub.f32 1.0, %v1516_v33  ;;  %v2133_v33 = vsub.f32 %v5014_v61, %v5307_v62  ;;  %v5609_v55 = vand.u32 2147483647, %v2006_v29 }
 0x359   : > { %2510 = vperm.xlu0 %4551, %v5180_v42   ;;  %v1493_v42 = vsub.f32 %v4995_v43, %v5532_v45  ;;  %v7243_v43 = vmov 15   ;;  %v1126_v10 = vsub.f32 1.0, %v1102_v38  ;;  %v7245_v38 = vmov 12  }
 0x35b   : > { %v1517_v48 = vand.u32 2147483647, %v1493_v42  ;;  %v5585_v42 = vmax.f32 %v1125_v0, 0.0  ;;  %v5590_v24 = vmax.f32 %v1126_v10, 0.0 }
 0x35d   : > { %2638 = vperm.xlu1 %4552, %v5190_v13   ;;  %4560 = vset.pattern.permute.xlu0 %v7247_v8  ;;  %v1621_v13 = vsub.f32 %v5001_v49, %v5307_v62  ;;  %v1644_v49 = vand.u32 2147483647, %v1620_v18  ;;  %v1541_v26 = vsub.f32 1.0, %v1517_v48  ;;  %v2134_v48 = vsub.f32 %v5014_v61, %v5310_v56 }
 0x35e   : > { %2354 = vperm.xlu0 %4560, %v5554_v36   ;;  %v1626_v18 = vsub.f32 %v4964_v21, %v5304_v46  ;;  %v2157_v61 = vand.u32 2147483647, %v2133_v33 }
 0x35f   : > { %v1645_v63 = vand.u32 2147483647, %v1621_v13  ;;  %v5601_v13 = vmax.f32 %v1540_v12, 0.0  ;;  %v1668_v20 = vsub.f32 1.0, %v1644_v49  ;;  %v5603_v10 = vmax.f32 %v1541_v26, 0.0 }
 0x360   : > { %v2644_v12 = vsub.f32 %v5019_v3, %v5304_v46  ;;  %v2645_v49 = vsub.f32 %v5019_v3, %v5307_v62  ;;  %v1650_v26 = vand.u32 2147483647, %v1626_v18  ;;  %v2181_v31 = vsub.f32 1.0, %v2157_v61 }
 0x361   : > { %4553 = vset.pattern.permute.xlu1 %v7293_v32  ;;  %v5577_v32 = vmax.f32 %v973_v44, 0.0  ;;  %v1542_v44 = vsub.f32 1.0, %v1518_v11  ;;  %7389 = vst [vmem:[#allocation98_spill] sm:$0xff] %v5601_v13  ;;  %v1669_v0 = vsub.f32 1.0, %v1645_v63  ;;  %7390 = vst [vmem:[#allocation99_spill] sm:$0xff] %v5603_v10  ;;  %v1628_v11 = vsub.f32 %v4964_v21, %v5310_v56 }
 0x362   : > { %2766 = vperm.xlu1 %4553, %v5022_v4   ;;  %4561 = vset.pattern.permute.xlu0 %v7243_v43  ;;  %v2005_v4 = vsub.f32 %v5008_v58, %v5532_v45  ;;  %v1670_v58 = vsub.f32 1.0, %v1646_v9  ;;  %v2156_v43 = vand.u32 2147483647, %v2132_v39  ;;  %v2158_v63 = vand.u32 2147483647, %v2134_v48 }
 0x363   : > { %2866 = vperm.xlu0 %4561, %v5554_v36   ;;  %7387 = vst [vmem:[#allocation96_spill] sm:$0xff] %v5577_v32  ;;  %v2052_v9 = vsub.f32 1.0, %v2028_v59  ;;  %v5617_v39 = vmax.f32 %v1668_v20, 0.0  ;;  %v5619_v8 = vmax.f32 %v1669_v0, 0.0  ;;  %v1652_v47 = vand.u32 2147483647, %v1628_v11 }
 0x364   : > { %v2029_v53 = vand.u32 2147483647, %v2005_v4  ;;  %v2646_v4 = vsub.f32 %v5019_v3, %v5310_v56  ;;  %v5623_v33 = vmax.f32 %v1670_v58, 0.0  ;;  %v2180_v41 = vsub.f32 1.0, %v2156_v43 }
 0x365   : > { %7391 = vst [vmem:[#allocation100_spill] sm:$0xff] %v5617_v39  ;;  %7392 = vst [vmem:[#allocation101_spill] sm:$0xff] %v5619_v8  ;;  %v2668_v10 = vand.u32 2147483647, %v2644_v12  ;;  %v2669_v48 = vand.u32 2147483647, %v2645_v49  ;;  %v1074_v0 = vsub.f32 %v5027_v6, %v5307_v62  ;;  %v1623_v43 = vsub.f32 %v4966_v22, %v5304_v46 }
 0x366   : > { %4554 = vset.pattern.permute.xlu1 %v7245_v38  ;;  %v2053_v29 = vsub.f32 1.0, %v2029_v53  ;;  %7394 = vst [vmem:[#allocation103_spill] sm:$0xff] %v5623_v33  ;;  %v2054_v13 = vsub.f32 1.0, %v5609_v55  ;;  %v2182_v3 = vsub.f32 1.0, %v2158_v63  ;;  %v2670_v18 = vand.u32 2147483647, %v2646_v4 }
 0x367   : > { %4562 = vset.pattern.permute.xlu0 %v7245_v38  ;;  %v1627_v38 = vsub.f32 %v4964_v21, %v5307_v62  ;;  %v5621_v21 = vmax.f32 %v1542_v44, 0.0  ;;  %v1674_v59 = vsub.f32 1.0, %v1650_v26  ;;  %v5626_v20 = vmax.f32 %v2052_v9, 0.0 }
 0x368   : > { %v1073_v44 = vsub.f32 %v5027_v6, %v5304_v46  ;;  %v5636_v53 = vmax.f32 %v2180_v41, 0.0  ;;  %v1075_v58 = vsub.f32 %v5027_v6, %v5310_v56  ;;  %v1624_v55 = vsub.f32 %v4966_v22, %v5307_v62 }
 0x369   : > { %7393 = vst [vmem:[#allocation102_spill] sm:$0xff] %v5621_v21  ;;  %v1651_v23 = vand.u32 2147483647, %v1627_v38  ;;  %7395 = vst [vmem:[#allocation104_spill] sm:$0xff] %v5626_v20  ;;  %v5634_v38 = vmax.f32 %v2053_v29, 0.0  ;;  %v5642_v61 = vmax.f32 %v2181_v31, 0.0  ;;  %v1625_v41 = vsub.f32 %v4966_v22, %v5310_v56 }
 0x36a   : > { %7397 = vst [vmem:[#allocation106_spill] sm:$0xff] %v5636_v53  ;;  %v2692_v12 = vsub.f32 1.0, %v2668_v10  ;;  %v2693_v49 = vsub.f32 1.0, %v2669_v48  ;;  %v1676_v63 = vsub.f32 1.0, %v1652_v47  ;;  %v5644_v4 = vmax.f32 %v2182_v3, 0.0 }
 0x36b   : > { %7396 = vst [vmem:[#allocation105_spill] sm:$0xff] %v5634_v38  ;;  %v1675_v11 = vsub.f32 1.0, %v1651_v23  ;;  %7398 = vst [vmem:[#allocation107_spill] sm:$0xff] %v5642_v61  ;;  %v2694_v26 = vsub.f32 1.0, %v2670_v18  ;;  %v5646_v9 = vmax.f32 %v1674_v59, 0.0  ;;  %v1489_v20 = vsub.f32 %v5031_v5, %v5529_v28 }
 0x36c   : > { %7399 = vst [vmem:[#allocation108_spill] sm:$0xff] %v5644_v4  ;;  %v1097_v29 = vand.u32 2147483647, %v1073_v44  ;;  %v1098_v38 = vand.u32 2147483647, %v1074_v0  ;;  %v5654_v48 = vmax.f32 %v2692_v12, 0.0  ;;  %v1490_v3 = vsub.f32 %v5031_v5, %v5532_v45 }
 0x36d   : > { %v1647_v6 = vand.u32 2147483647, %v1623_v43  ;;  %v1099_v23 = vand.u32 2147483647, %v1075_v58  ;;  %v5652_v31 = vmax.f32 %v1675_v11, 0.0  ;;  %v5656_v47 = vmax.f32 %v2693_v49, 0.0 }
 0x36e   : > { %v1648_v10 = vand.u32 2147483647, %v1624_v55  ;;  %v5660_v18 = vmax.f32 %v1676_v63, 0.0  ;;  %v5662_v22 = vmax.f32 %v2694_v26, 0.0  ;;  %v1491_v59 = vsub.f32 %v5031_v5, %v5535_v51 }
 0x36f   : > { %v1617_v44 = vsub.f32 %v5039_v14, %v5304_v46  ;;  %v1649_v0 = vand.u32 2147483647, %v1625_v41  ;;  %v1121_v43 = vsub.f32 1.0, %v1097_v29  ;;  %v1122_v58 = vsub.f32 1.0, %v1098_v38 }
 0x370   : > { %v1618_v11 = vsub.f32 %v5039_v14, %v5307_v62  ;;  %v1671_v55 = vsub.f32 1.0, %v1647_v6  ;;  %v1123_v12 = vsub.f32 1.0, %v1099_v23  ;;  %v1513_v49 = vand.u32 2147483647, %v1489_v20 }
 0x371   : > { %v1619_v63 = vsub.f32 %v5039_v14, %v5310_v56  ;;  %v1672_v26 = vsub.f32 1.0, %v1648_v10  ;;  %v1514_v21 = vand.u32 2147483647, %v1490_v3  ;;  %v2001_v5 = vsub.f32 %v5043_v17, %v5529_v28 }
 0x372   : > { %v2002_v32 = vsub.f32 %v5043_v17, %v5532_v45  ;;  %v5676_v41 = vmax.f32 %v2054_v13, 0.0  ;;  %v1515_v38 = vand.u32 2147483647, %v1491_v59  ;;  %v1641_v29 = vand.u32 2147483647, %v1617_v44 }
 0x373   : > { %v2003_v6 = vsub.f32 %v5043_v17, %v5535_v51  ;;  %v1673_v23 = vsub.f32 1.0, %v1649_v0  ;;  %v5680_v20 = vmax.f32 %v1121_v43, 0.0  ;;  %v5682_v19 = vmax.f32 %v1122_v58, 0.0 }
 0x374   : > { %7400 = vst [vmem:[#allocation109_spill] sm:$0xff] %v5676_v41  ;;  %v1642_v14 = vand.u32 2147483647, %v1618_v11  ;;  %v2129_v10 = vsub.f32 %v5048_v40, %v5304_v46  ;;  %v5686_v3 = vmax.f32 %v1123_v12, 0.0  ;;  %v1643_v2 = vand.u32 2147483647, %v1619_v63 }
 0x375   : > { %v2130_v13 = vsub.f32 %v5048_v40, %v5307_v62  ;;  %v1537_v59 = vsub.f32 1.0, %v1513_v49  ;;  %v2025_v44 = vand.u32 2147483647, %v2001_v5  ;;  %v2026_v41 = vand.u32 2147483647, %v2002_v32 }
 0x376   : > { %v5690_v60 = vmax.f32 %v1671_v55, 0.0  ;;  %v1538_v17 = vsub.f32 1.0, %v1514_v21  ;;  %v1665_v0 = vsub.f32 1.0, %v1641_v29  ;;  %v2027_v43 = vand.u32 2147483647, %v2003_v6 }
 0x377   : > { %v2131_v58 = vsub.f32 %v5048_v40, %v5310_v56  ;;  %v1539_v11 = vsub.f32 1.0, %v1515_v38  ;;  %v1666_v7 = vsub.f32 1.0, %v1642_v14  ;;  %v2153_v52 = vand.u32 2147483647, %v2129_v10 }
 0x378   : > { %7401 = vst [vmem:[#allocation110_spill] sm:$0xff] %v5690_v60  ;;  %v2513_v12 = vsub.f32 %v5060_v54, %v5529_v28  ;;  %v5696_v63 = vmax.f32 %v1672_v26, 0.0  ;;  %v1667_v4 = vsub.f32 1.0, %v1643_v2  ;;  %v2154_v49 = vand.u32 2147483647, %v2130_v13 }
 0x379   : > { %v5698_v5 = vmax.f32 %v1673_v23, 0.0  ;;  %v5700_v32 = vmax.f32 %v1537_v59, 0.0  ;;  %v2514_v21 = vsub.f32 %v5060_v54, %v5532_v45  ;;  %v2049_v55 = vsub.f32 1.0, %v2025_v44 }
 0x37a   : > { %7402 = vst [vmem:[#allocation111_spill] sm:$0xff] %v5696_v63  ;;  %v2050_v29 = vsub.f32 1.0, %v2026_v41  ;;  %v5704_v40 = vmax.f32 %v1538_v17, 0.0  ;;  %v5706_v38 = vmax.f32 %v1665_v0, 0.0  ;;  %v2155_v6 = vand.u32 2147483647, %v2131_v58 }
 0x37b   : > { %7403 = vst [vmem:[#allocation112_spill] sm:$0xff] %v5698_v5  ;;  %7404 = vst [vmem:[#allocation113_spill] sm:$0xff] %v5700_v32  ;;  %v2051_v14 = vsub.f32 1.0, %v2027_v43  ;;  %v5708_v10 = vmax.f32 %v1539_v11, 0.0  ;;  %v5710_v26 = vmax.f32 %v1666_v7, 0.0  ;;  %v2177_v2 = vsub.f32 1.0, %v2153_v52 }
 0x37c   : > { %7405 = vst [vmem:[#allocation114_spill] sm:$0xff] %v5704_v40  ;;  %7406 = vst [vmem:[#allocation115_spill] sm:$0xff] %v5706_v38  ;;  %v2515_v23 = vsub.f32 %v5060_v54, %v5535_v51  ;;  %v2537_v13 = vand.u32 2147483647, %v2513_v12  ;;  %v5714_v59 = vmax.f32 %v1667_v4, 0.0  ;;  %v2178_v32 = vsub.f32 1.0, %v2154_v49 }
 0x37d   : > { %7407 = vst [vmem:[#allocation116_spill] sm:$0xff] %v5708_v10  ;;  %7408 = vst [vmem:[#allocation117_spill] sm:$0xff] %v5710_v26  ;;  %v2772_v41 = vsub.f32 %v5073_v57, %v5327_v16  ;;  %v2773_v44 = vsub.f32 %v5073_v57, %v5330_v50  ;;  %v2538_v17 = vand.u32 2147483647, %v2514_v21  ;;  %v2641_v0 = vsub.f32 %v5069_v15, %v5304_v46 }
 0x37e   : > { %7409 = vst [vmem:[#allocation118_spill] sm:$0xff] %v5714_v59  ;;  %v5722_v7 = vmax.f32 %v2049_v55, 0.0  ;;  %v5724_v52 = vmax.f32 %v2050_v29, 0.0  ;;  %v2179_v43 = vsub.f32 1.0, %v2155_v6  ;;  %v2642_v54 = vsub.f32 %v5069_v15, %v5307_v62 }
 0x37f   : > { %v2643_v4 = vsub.f32 %v5069_v15, %v5310_v56  ;;  %v5730_v58 = vmax.f32 %v2051_v14, 0.0  ;;  %v5732_v11 = vmax.f32 %v2177_v2, 0.0  ;;  %v2539_v12 = vand.u32 2147483647, %v2515_v23 }
 0x380   : > { %7410 = vst [vmem:[#allocation119_spill] sm:$0xff] %v5722_v7  ;;  %7411 = vst [vmem:[#allocation120_spill] sm:$0xff] %v5724_v52  ;;  %v2774_v49 = vsub.f32 %v5073_v57, %v5333_v1  ;;  %v2561_v21 = vsub.f32 1.0, %v2537_v13  ;;  %v5736_v55 = vmax.f32 %v2178_v32, 0.0  ;;  %v2796_v29 = vand.u32 2147483647, %v2772_v41 }
 0x381   : > { %7412 = vst [vmem:[#allocation121_spill] sm:$0xff] %v5730_v58  ;;  %7413 = vst [vmem:[#allocation122_spill] sm:$0xff] %v5732_v11  ;;  %v2797_v10 = vand.u32 2147483647, %v2773_v44  ;;  %v1085_v6 = vsub.f32 %v4970_v25, %v5304_v46  ;;  %v2665_v40 = vand.u32 2147483647, %v2641_v0  ;;  %v1086_v15 = vsub.f32 %v4970_v25, %v5307_v62 }
 0x382   : > { %7414 = vst [vmem:[#allocation123_spill] sm:$0xff] %v5736_v55  ;;  %v1087_v14 = vsub.f32 %v4970_v25, %v5310_v56  ;;  %v2562_v2 = vsub.f32 1.0, %v2538_v17  ;;  %v5744_v23 = vmax.f32 %v2179_v43, 0.0  ;;  %v2666_v58 = vand.u32 2147483647, %v2642_v54 }
 0x383   : > { %v2667_v57 = vand.u32 2147483647, %v2643_v4  ;;  %v1501_v32 = vsub.f32 %v4974_v27, %v5529_v28  ;;  %v2798_v13 = vand.u32 2147483647, %v2774_v49  ;;  %v1502_v41 = vsub.f32 %v4974_v27, %v5532_v45 }
 0x384   : > { %7415 = vst [vmem:[#allocation124_spill] sm:$0xff] %v5744_v23  ;;  %v2563_v44 = vsub.f32 1.0, %v2539_v12  ;;  %v5750_v0 = vmax.f32 %v2561_v21, 0.0  ;;  %v2820_v52 = vsub.f32 1.0, %v2796_v29  ;;  %v2821_v7 = vsub.f32 1.0, %v2797_v10 }
 0x385   : > { %v1109_v61 = vand.u32 2147483647, %v1085_v6  ;;  %v1503_v25 = vsub.f32 %v4974_v27, %v5535_v51  ;;  %v2689_v17 = vsub.f32 1.0, %v2665_v40  ;;  %v1110_v43 = vand.u32 2147483647, %v1086_v15 }
 0x386   : > { %7416 = vst [vmem:[#allocation125_spill] sm:$0xff] %v5750_v0  ;;  %v1111_v54 = vand.u32 2147483647, %v1087_v14  ;;  %v5754_v4 = vmax.f32 %v2562_v2, 0.0  ;;  %v2690_v53 = vsub.f32 1.0, %v2666_v58  ;;  %v2691_v23 = vsub.f32 1.0, %v2667_v57 }
 0x387   : > { %v1525_v49 = vand.u32 2147483647, %v1501_v32  ;;  %v2141_v55 = vsub.f32 %v4978_v30, %v5304_v46  ;;  %v2822_v12 = vsub.f32 1.0, %v2798_v13  ;;  %v1526_v21 = vand.u32 2147483647, %v1502_v41 }
 0x388   : > { %7417 = vst [vmem:[#allocation126_spill] sm:$0xff] %v5754_v4  ;;  %v2142_v10 = vsub.f32 %v4978_v30, %v5307_v62  ;;  %v5760_v29 = vmax.f32 %v2563_v44, 0.0  ;;  %v2844_v6 = vmax.f32 %v2820_v52, 0.0  ;;  %v2845_v27 = vmax.f32 %v2821_v7, 0.0 }
 0x389   : > { %v1133_v40 = vsub.f32 1.0, %v1109_v61  ;;  %v1527_v15 = vand.u32 2147483647, %v1503_v25  ;;  %v5762_v14 = vmax.f32 %v2689_v17, 0.0  ;;  %v1134_v2 = vsub.f32 1.0, %v1110_v43 }
 0x38a   : > { %7418 = vst [vmem:[#allocation127_spill] sm:$0xff] %v5760_v29  ;;  %v1135_v58 = vsub.f32 1.0, %v1111_v54  ;;  %v2143_v57 = vsub.f32 %v4978_v30, %v5310_v56  ;;  %v5766_v32 = vmax.f32 %v2690_v53, 0.0  ;;  %v5768_v13 = vmax.f32 %v2691_v23, 0.0 }
 0x38b   : > { %7419 = vst [vmem:[#allocation128_spill] sm:$0xff] %v5762_v14  ;;  %v2165_v41 = vand.u32 2147483647, %v2141_v55  ;;  %v1549_v4 = vsub.f32 1.0, %v1525_v49  ;;  %v5770_v0 = vmax.f32 %v2822_v12, 0.0  ;;  %v2653_v61 = vsub.f32 %v4984_v35, %v5304_v46 }
 0x38c   : > { %7420 = vst [vmem:[#allocation129_spill] sm:$0xff] %v5766_v32  ;;  %7421 = vst [vmem:[#allocation130_spill] sm:$0xff] %v5768_v13  ;;  %v2166_v44 = vand.u32 2147483647, %v2142_v10  ;;  %v1550_v7 = vsub.f32 1.0, %v1526_v21  ;;  %v5774_v52 = vmax.f32 %v1133_v40, 0.0  ;;  %v5777_v25 = vmul.f32 %v2844_v6, %v5654_v48 }
 0x38d   : > { %v5780_v30 = vmul.f32 %v2845_v27, %v5656_v47  ;;  %v1551_v53 = vsub.f32 1.0, %v1527_v15  ;;  %v5782_v23 = vmax.f32 %v1134_v2, 0.0  ;;  %v5784_v55 = vmax.f32 %v1135_v58, 0.0  ;;  %v7429_v40 = vld [vmem:[#allocation2_spill] sm:$0xff] }
 0x38e   : > { %7422 = vst [vmem:[#allocation131_spill] sm:$0xff] %v5774_v52  ;;  %7423 = vst [vmem:[#allocation132_spill] sm:$0xff] %v5777_v25  ;;  %v2167_v17 = vand.u32 2147483647, %v2143_v57  ;;  %v2654_v43 = vsub.f32 %v4984_v35, %v5307_v62  ;;  %v2189_v54 = vsub.f32 1.0, %v2165_v41  ;;  %v2655_v49 = vsub.f32 %v4984_v35, %v5310_v56  ;;  %v7431_v41 = vld [vmem:[#allocation3_spill] sm:$0xff] }
 0x38f   : > { %7424 = vst [vmem:[#allocation133_spill] sm:$0xff] %v5780_v30  ;;  %7425 = vst [vmem:[#allocation134_spill] sm:$0xff] %v5782_v23  ;;  %v2007_v48 = vsub.f32 %v4988_v37, %v5529_v28  ;;  %v5792_v12 = vmax.f32 %v1549_v4, 0.0  ;;  %v2190_v47 = vsub.f32 1.0, %v2166_v44  ;;  %v2677_v21 = vand.u32 2147483647, %v2653_v61 }
 0x390   : > { %7426 = vst [vmem:[#allocation135_spill] sm:$0xff] %v5784_v55  ;;  %v2008_v10 = vsub.f32 %v4988_v37, %v5532_v45  ;;  %v5796_v6 = vmax.f32 %v1550_v7, 0.0  ;;  %v2009_v27 = vsub.f32 %v4988_v37, %v5535_v51  ;;  %v2016_v15 = vsub.f32 %v7429_v40, %v5529_v28  ;;  %v7434_v23 = vld [vmem:[#allocation4_spill] sm:$0xff] }
 0x391   : > { %7427 = vst [vmem:[#allocation136_spill] sm:$0xff] %v5792_v12  ;;  %v2017_v35 = vsub.f32 %v7429_v40, %v5532_v45  ;;  %v5804_v2 = vmax.f32 %v1551_v53, 0.0  ;;  %v2191_v4 = vsub.f32 1.0, %v2167_v17  ;;  %v2678_v58 = vand.u32 2147483647, %v2654_v43 }
 0x392   : > { %7428 = vst [vmem:[#allocation137_spill] sm:$0xff] %v5796_v6  ;;  %v2018_v57 = vsub.f32 %v7429_v40, %v5535_v51  ;;  %v921_v44 = vsub.f32 %v7431_v41, %v5529_v28  ;;  %v5810_v61 = vmax.f32 %v2189_v54, 0.0  ;;  %v2679_v7 = vand.u32 2147483647, %v2655_v49 }
 0x393   : > { %7430 = vst [vmem:[#allocation2_spill] sm:$0xff] %v5804_v2  ;;  %v2031_v37 = vand.u32 2147483647, %v2007_v48  ;;  %v922_v12 = vsub.f32 %v7431_v41, %v5532_v45  ;;  %v5814_v6 = vmax.f32 %v2190_v47, 0.0  ;;  %v2701_v55 = vsub.f32 1.0, %v2677_v21 }
 0x394   : > { %7432 = vst [vmem:[#allocation3_spill] sm:$0xff] %v5810_v61  ;;  %v2032_v53 = vand.u32 2147483647, %v2008_v10  ;;  %v923_v17 = vsub.f32 %v7431_v41, %v5535_v51  ;;  %v2033_v43 = vand.u32 2147483647, %v2009_v27  ;;  %v936_v29 = vsub.f32 %v7434_v23, %v5529_v28 }
 0x395   : > { %7433 = vst [vmem:[#allocation138_spill] sm:$0xff] %v5814_v6  ;;  %v2040_v2 = vand.u32 2147483647, %v2016_v15  ;;  %v2041_v40 = vand.u32 2147483647, %v2017_v35  ;;  %v2702_v54 = vsub.f32 1.0, %v2678_v58  ;;  %v937_v48 = vsub.f32 %v7434_v23, %v5532_v45 }
 0x396   : > { %v2042_v61 = vand.u32 2147483647, %v2018_v57  ;;  %v945_v49 = vand.u32 2147483647, %v921_v44  ;;  %v5822_v30 = vmax.f32 %v2191_v4, 0.0  ;;  %v2703_v47 = vsub.f32 1.0, %v2679_v7 }
 0x397   : > { %v2055_v21 = vsub.f32 1.0, %v2031_v37  ;;  %v946_v10 = vand.u32 2147483647, %v922_v12  ;;  %v5824_v6 = vmax.f32 %v2701_v55, 0.0  ;;  %v2056_v41 = vsub.f32 1.0, %v2032_v53  ;;  %v7440_v12 = vld [vmem:[#allocation7_spill] sm:$0xff] }
 0x398   : > { %7435 = vst [vmem:[#allocation4_spill] sm:$0xff] %v5822_v30  ;;  %v947_v27 = vand.u32 2147483647, %v923_v17  ;;  %v938_v15 = vsub.f32 %v7434_v23, %v5535_v51  ;;  %v2057_v35 = vsub.f32 1.0, %v2033_v43  ;;  %v2064_v25 = vsub.f32 1.0, %v2040_v2 }
 0x399   : > { %7436 = vst [vmem:[#allocation139_spill] sm:$0xff] %v5824_v6  ;;  %v2065_v58 = vsub.f32 1.0, %v2041_v40  ;;  %v960_v57 = vand.u32 2147483647, %v936_v29  ;;  %v5828_v44 = vmax.f32 %v2702_v54, 0.0  ;;  %v2066_v52 = vsub.f32 1.0, %v2042_v61 }
 0x39a   : > { %v969_v11 = vsub.f32 1.0, %v945_v49  ;;  %v961_v4 = vand.u32 2147483647, %v937_v48  ;;  %v5830_v30 = vmax.f32 %v2703_v47, 0.0  ;;  %v5832_v7 = vmax.f32 %v2055_v21, 0.0 }
 0x39b   : > { %7437 = vst [vmem:[#allocation140_spill] sm:$0xff] %v5828_v44  ;;  %v970_v55 = vsub.f32 1.0, %v946_v10  ;;  %v930_v37 = vsub.f32 %v7440_v12, %v5529_v28  ;;  %v5836_v53 = vmax.f32 %v2056_v41, 0.0  ;;  %v971_v23 = vsub.f32 1.0, %v947_v27  ;;  %v7448_v41 = vld [vmem:[#allocation8_spill] sm:$0xff] }
 0x39c   : > { %7438 = vst [vmem:[#allocation141_spill] sm:$0xff] %v5830_v30  ;;  %7439 = vst [vmem:[#allocation142_spill] sm:$0xff] %v5832_v7  ;;  %v962_v17 = vand.u32 2147483647, %v938_v15  ;;  %v931_v29 = vsub.f32 %v7440_v12, %v5532_v45  ;;  %v5840_v2 = vmax.f32 %v2057_v35, 0.0  ;;  %v5842_v61 = vmax.f32 %v2064_v25, 0.0 }
 0x39d   : > { %7441 = vst [vmem:[#allocation7_spill] sm:$0xff] %v5836_v53  ;;  %v5844_v43 = vmax.f32 %v2065_v58, 0.0  ;;  %v984_v40 = vsub.f32 1.0, %v960_v57  ;;  %v5846_v54 = vmax.f32 %v2066_v52, 0.0  ;;  %v5848_v49 = vmax.f32 %v969_v11, 0.0  ;;  %v7451_v57 = vld [vmem:[#allocation9_spill] sm:$0xff] }
 0x39e   : > { %7442 = vst [vmem:[#allocation143_spill] sm:$0xff] %v5840_v2  ;;  %7443 = vst [vmem:[#allocation144_spill] sm:$0xff] %v5842_v61  ;;  %v985_v48 = vsub.f32 1.0, %v961_v4  ;;  %v932_v47 = vsub.f32 %v7440_v12, %v5535_v51  ;;  %v5852_v21 = vmax.f32 %v970_v55, 0.0  ;;  %v954_v10 = vand.u32 2147483647, %v930_v37 }
 0x39f   : > { %7444 = vst [vmem:[#allocation145_spill] sm:$0xff] %v5844_v43  ;;  %7445 = vst [vmem:[#allocation146_spill] sm:$0xff] %v5846_v54  ;;  %v1082_v27 = vsub.f32 %v7448_v41, %v5304_v46  ;;  %v1083_v25 = vsub.f32 %v7448_v41, %v5307_v62  ;;  %v5858_v15 = vmax.f32 %v971_v23, 0.0  ;;  %v986_v35 = vsub.f32 1.0, %v962_v17  ;;  %v7453_v17 = vld [vmem:[#allocation10_spill] sm:$0xff]  ;;  %v7454_v43 = vld [vmem:[#allocation11_spill] sm:$0xff] }
 0x3a0   : > { %7446 = vst [vmem:[#allocation147_spill] sm:$0xff] %v5848_v49  ;;  %7447 = vst [vmem:[#allocation148_spill] sm:$0xff] %v5852_v21  ;;  %v955_v52 = vand.u32 2147483647, %v931_v29  ;;  %v1084_v11 = vsub.f32 %v7448_v41, %v5310_v56  ;;  %v5862_v58 = vmax.f32 %v984_v40, 0.0  ;;  %v1498_v4 = vsub.f32 %v7451_v57, %v5529_v28  ;;  %v7459_v7 = vld [vmem:[#allocation12_spill] sm:$0xff] }
 0x3a1   : > { %7449 = vst [vmem:[#allocation8_spill] sm:$0xff] %v5858_v15  ;;  %v1499_v55 = vsub.f32 %v7451_v57, %v5532_v45  ;;  %v1500_v12 = vsub.f32 %v7451_v57, %v5535_v51  ;;  %v5870_v37 = vmax.f32 %v985_v48, 0.0  ;;  %v956_v23 = vand.u32 2147483647, %v932_v47  ;;  %v5901_v53 = vld [vmem:[%s5892_s22] ss:$0 sm:$0xff] }
 0x3a2   : > { %7450 = vst [vmem:[#allocation149_spill] sm:$0xff] %v5862_v58  ;;  %v2010_v29 = vsub.f32 %v7453_v17, %v5529_v28  ;;  %v2011_v41 = vsub.f32 %v7453_v17, %v5532_v45  ;;  %v1106_v40 = vand.u32 2147483647, %v1082_v27  ;;  %v1107_v30 = vand.u32 2147483647, %v1083_v25 }
 0x3a3   : > { %7452 = vst [vmem:[#allocation9_spill] sm:$0xff] %v5870_v37  ;;  %v2012_v44 = vsub.f32 %v7453_v17, %v5535_v51  ;;  %v978_v6 = vsub.f32 1.0, %v954_v10  ;;  %v1108_v54 = vand.u32 2147483647, %v1084_v11  ;;  %v2138_v57 = vsub.f32 %v7454_v43, %v5304_v46 }
 0x3a4   : > { %v2139_v48 = vsub.f32 %v7454_v43, %v5307_v62  ;;  %v979_v47 = vsub.f32 1.0, %v955_v52  ;;  %v1522_v61 = vand.u32 2147483647, %v1498_v4  ;;  %v1523_v37 = vand.u32 2147483647, %v1499_v55 }
 0x3a5   : > { %v1524_v58 = vand.u32 2147483647, %v1500_v12  ;;  %v5884_v27 = vmul.f32 %v5770_v0, %v5662_v22  ;;  %v5886_v25 = vmax.f32 %v986_v35, 0.0  ;;  %v2034_v2 = vand.u32 2147483647, %v2010_v29 }
 0x3a6   : > { %v2035_v17 = vand.u32 2147483647, %v2011_v41  ;;  %v980_v10 = vsub.f32 1.0, %v956_v23  ;;  %v1130_v11 = vsub.f32 1.0, %v1106_v40  ;;  %v1131_v52 = vsub.f32 1.0, %v1107_v30 }
 0x3a7   : > { %7455 = vst [vmem:[#allocation10_spill] sm:$0xff] %v5884_v27  ;;  %7456 = vst [vmem:[#allocation11_spill] sm:$0xff] %v5886_v25  ;;  %v2036_v4 = vand.u32 2147483647, %v2012_v44  ;;  %v2140_v55 = vsub.f32 %v7454_v43, %v5310_v56  ;;  %v1132_v12 = vsub.f32 1.0, %v1108_v54  ;;  %v5896_v35 = vmax.f32 %v978_v6, 0.0 }
 0x3a8   : > { %v2162_v22 = vand.u32 2147483647, %v2138_v57  ;;  %v2163_v0 = vand.u32 2147483647, %v2139_v48  ;;  %v5898_v29 = vmax.f32 %v979_v47, 0.0  ;;  %v1546_v23 = vsub.f32 1.0, %v1522_v61 }
 0x3a9   : > { %7457 = vst [vmem:[#allocation150_spill] sm:$0xff] %v5896_v35  ;;  %v1547_v41 = vsub.f32 1.0, %v1523_v37  ;;  %v1548_v25 = vsub.f32 1.0, %v1524_v58  ;;  %v2522_v40 = vsub.f32 %v7459_v7, %v5529_v28  ;;  %v5905_v30 = vmax.f32 %v980_v10, 0.0  ;;  %v4236_v10 = vpop.f32.mrb[0].mxu1 }
 0x3aa   : > { %7458 = vst [vmem:[#allocation151_spill] sm:$0xff] %v5898_v29  ;;  %v2058_v44 = vsub.f32 1.0, %v2034_v2  ;;  %v2059_v15 = vsub.f32 1.0, %v2035_v17  ;;  %v5907_v43 = vmax.f32 %v1130_v11, 0.0  ;;  %v5909_v54 = vmax.f32 %v1131_v52, 0.0 }
 0x3ab   : > { %7460 = vst [vmem:[#allocation12_spill] sm:$0xff] %v5905_v30  ;;  %v2164_v6 = vand.u32 2147483647, %v2140_v55  ;;  %v2060_v57 = vsub.f32 1.0, %v2036_v4  ;;  %v5911_v48 = vmax.f32 %v1132_v12, 0.0  ;;  %v2186_v61 = vsub.f32 1.0, %v2162_v22 }
 0x3ac   : > { %7461 = vst [vmem:[#allocation152_spill] sm:$0xff] %v5907_v43  ;;  %7462 = vst [vmem:[#allocation153_spill] sm:$0xff] %v5909_v54  ;;  %v2187_v37 = vsub.f32 1.0, %v2163_v0  ;;  %v2523_v58 = vsub.f32 %v7459_v7, %v5532_v45  ;;  %v2524_v47 = vsub.f32 %v7459_v7, %v5535_v51  ;;  %v5917_v30 = vmax.f32 %v1546_v23, 0.0  ;;  %v3230_v4 = vpop.f32.mrb[1].mxu1  ;;  %v7469_v0 = vld [vmem:[#allocation13_spill] sm:$0xff] }
 0x3ad   : > { %7463 = vst [vmem:[#allocation154_spill] sm:$0xff] %v5911_v48  ;;  %v5919_v2 = vmax.f32 %v1547_v41, 0.0  ;;  %v5921_v17 = vmax.f32 %v1548_v25, 0.0  ;;  %v2546_v11 = vand.u32 2147483647, %v2522_v40  ;;  %v3236_v52 = vadd.f32 %v4236_v10, %v5901_v53 }
 0x3ae   : > { %7464 = vst [vmem:[#allocation155_spill] sm:$0xff] %v5917_v30  ;;  %v5924_v55 = vmax.f32 %v2058_v44, 0.0  ;;  %v5926_v12 = vmax.f32 %v2059_v15, 0.0  ;;  %v2188_v22 = vsub.f32 1.0, %v2164_v6  ;;  %v2650_v29 = vsub.f32 %v7469_v0, %v5304_v46  ;;  %v7473_v6 = vld [vmem:[#allocation14_spill] sm:$0xff] }
 0x3af   : > { %7465 = vst [vmem:[#allocation156_spill] sm:$0xff] %v5919_v2  ;;  %7466 = vst [vmem:[#allocation157_spill] sm:$0xff] %v5921_v17  ;;  %v3231_v7 = vadd.f32 %v5901_v53, %v3230_v4  ;;  %v5931_v23 = vmax.f32 %v2060_v57, 0.0  ;;  %v5933_v41 = vmax.f32 %v2186_v61, 0.0  ;;  %v5935_v25 = vmax.f32 %v2187_v37, 0.0  ;;  %v4239_v4 = vpop.f32.mrb[2].mxu1 }
 0x3b0   : > { %7467 = vst [vmem:[#allocation158_spill] sm:$0xff] %v5924_v55  ;;  %7468 = vst [vmem:[#allocation159_spill] sm:$0xff] %v5926_v12  ;;  %v2547_v40 = vand.u32 2147483647, %v2523_v58  ;;  %v2651_v10 = vsub.f32 %v7469_v0, %v5307_v62  ;;  %v2548_v44 = vand.u32 2147483647, %v2524_v47  ;;  %v2652_v15 = vsub.f32 %v7469_v0, %v5310_v56 }
 0x3b1   : > { %7470 = vst [vmem:[#allocation13_spill] sm:$0xff] %v5931_v23  ;;  %7471 = vst [vmem:[#allocation160_spill] sm:$0xff] %v5933_v41  ;;  %v927_v17 = vsub.f32 %v7473_v6, %v5529_v28  ;;  %v5943_v2 = vpack.c.bf16 %v3236_v52, %v3231_v7  ;;  %v928_v57 = vsub.f32 %v7473_v6, %v5532_v45  ;;  %v3240_v58 = vpop.f32.mrb[3].mxu1  ;;  %v2570_v30 = vsub.f32 1.0, %v2546_v11  ;;  %v7474_v23 = vld [vmem:[#allocation17_spill] sm:$0xff] }
 0x3b2   : > { %7472 = vst [vmem:[#allocation161_spill] sm:$0xff] %v5935_v25  ;;  %v929_v61 = vsub.f32 %v7473_v6, %v5535_v51  ;;  %v3246_v37 = vadd.f32 %v4239_v4, %v5901_v53  ;;  %v2674_v47 = vand.u32 2147483647, %v2650_v29  ;;  %v1079_v0 = vsub.f32 %v7474_v23, %v5304_v46  ;;  %v4242_v29 = vpop.f32.mrb[4].mxu1 }
 0x3b3   : > { %v1080_v12 = vsub.f32 %v7474_v23, %v5307_v62  ;;  %v3241_v7 = vadd.f32 %v5901_v53, %v3240_v58  ;;  %v2675_v55 = vand.u32 2147483647, %v2651_v10  ;;  %v1081_v21 = vsub.f32 %v7474_v23, %v5310_v56  ;;  %v3250_v13 = vpop.f32.mrb[5].mxu1 }
 0x3b4   : > { %v2571_v6 = vsub.f32 1.0, %v2547_v40  ;;  %v2676_v49 = vand.u32 2147483647, %v2652_v15  ;;  %v951_v4 = vand.u32 2147483647, %v927_v17  ;;  %v2572_v11 = vsub.f32 1.0, %v2548_v44 }
 0x3b5   : > { %v5957_v35 = vpack.c.bf16 %v3246_v37, %v3241_v7  ;;  %v5959_v27 = vmax.f32 %v2188_v22, 0.0  ;;  %v952_v25 = vand.u32 2147483647, %v928_v57  ;;  %v953_v41 = vand.u32 2147483647, %v929_v61 }
 0x3b6   : > { %v3256_v5 = vadd.f32 %v4242_v29, %v5901_v53  ;;  %v2698_v58 = vsub.f32 1.0, %v2674_v47  ;;  %v1103_v10 = vand.u32 2147483647, %v1079_v0  ;;  %v1104_v32 = vand.u32 2147483647, %v1080_v12 }
 0x3b7   : > { %7475 = vst [vmem:[#allocation14_spill] sm:$0xff] %v5959_v27  ;;  %v3251_v23 = vadd.f32 %v5901_v53, %v3250_v13  ;;  %v2699_v40 = vsub.f32 1.0, %v2675_v55  ;;  %v1105_v15 = vand.u32 2147483647, %v1081_v21  ;;  %v5963_v17 = vmax.f32 %v2570_v30, 0.0  ;;  %v7481_v55 = vld [vmem:[#allocation19_spill] sm:$0xff] }
 0x3b8   : > { %v2700_v37 = vsub.f32 1.0, %v2676_v49  ;;  %v5967_v57 = vmax.f32 %v2571_v6, 0.0  ;;  %v5969_v61 = vmax.f32 %v2572_v11, 0.0  ;;  %v975_v12 = vsub.f32 1.0, %v951_v4 }
 0x3b9   : > { %7476 = vst [vmem:[#allocation17_spill] sm:$0xff] %v5963_v17  ;;  %v5965_v44 = vpack.c.bf16 %v3256_v5, %v3251_v23  ;;  %v977_v7 = vsub.f32 1.0, %v953_v41  ;;  %v5972_v13 = vmax.f32 %v2698_v58, 0.0  ;;  %v1127_v21 = vsub.f32 1.0, %v1103_v10 }
 0x3ba   : > { %7477 = vst [vmem:[#allocation162_spill] sm:$0xff] %v5967_v57  ;;  %7478 = vst [vmem:[#allocation163_spill] sm:$0xff] %v5969_v61  ;;  %v5975_v49 = vmax.f32 %v2699_v40, 0.0  ;;  %v1129_v5 = vsub.f32 1.0, %v1105_v15  ;;  %v1495_v6 = vsub.f32 %v7481_v55, %v5529_v28  ;;  %v1496_v29 = vsub.f32 %v7481_v55, %v5532_v45 }
 0x3bb   : > { %7479 = vst [vmem:[#allocation164_spill] sm:$0xff] %v5972_v13  ;;  %v5981_v11 = vmax.f32 %v2700_v37, 0.0  ;;  %v1497_v41 = vsub.f32 %v7481_v55, %v5535_v51  ;;  %v5990_v15 = vmax.f32 %v975_v12, 0.0  ;;  %v5996_v37 = vmax.f32 %v1127_v21, 0.0  ;;  %v7488_v55 = vld [vmem:[#allocation36_spill] sm:$0xff] }
 0x3bc   : > { %v713_v52 = vpop.xlane.xlu1 %712  ;;  %7480 = vst [vmem:[#allocation165_spill] sm:$0xff] %v5975_v49  ;;  %v1519_v17 = vand.u32 2147483647, %v1495_v6 }
 0x3bd   : > { %4602 = vrcp.f32 %v713_v52  ;;  %v4245_v22 = vpop.f32.mrb[6].mxu1  ;;  %v976_v52 = vsub.f32 1.0, %v952_v25  ;;  %7482 = vst [vmem:[#allocation19_spill] sm:$0xff] %v5981_v11  ;;  %v7483_v25 = vld [vmem:[#allocation21_spill] sm:$0xff] }
 0x3be   : > { %v3266_v47 = vadd.f32 %v4245_v22, %v5901_v53  ;;  %v3260_v0 = vpop.f32.mrb[7].mxu1  ;;  %v2135_v4 = vsub.f32 %v7483_v25, %v5304_v46  ;;  %7484 = vst [vmem:[#allocation21_spill] sm:$0xff] %v5990_v15  ;;  %v2136_v12 = vsub.f32 %v7483_v25, %v5307_v62  ;;  %v1543_v49 = vsub.f32 1.0, %v1519_v17 }
 0x3bf   : > { %v3261_v30 = vadd.f32 %v5901_v53, %v3260_v0  ;;  %v5992_v22 = vmax.f32 %v976_v52, 0.0  ;;  %v5994_v0 = vmax.f32 %v977_v7, 0.0  ;;  %v1521_v52 = vand.u32 2147483647, %v1497_v41 }
 0x3c0   : > { %v719_v63 = vpop.xlane.xlu1 %718  ;;  %v2137_v7 = vsub.f32 %v7483_v25, %v5310_v56  ;;  %v2159_v21 = vand.u32 2147483647, %v2135_v4  ;;  %v7491_v4 = vld [vmem:[#allocation25_spill] sm:$0xff]  ;;  %v2160_v27 = vand.u32 2147483647, %v2136_v12  ;;  %v6037_v39 = vmax.f32 %v1543_v49, 0.0 }
 0x3c1   : > { %4604 = vrcp.f32 %v719_v63  ;;  %v1128_v63 = vsub.f32 1.0, %v1104_v32  ;;  %v5987_v32 = vpack.c.bf16 %v3266_v47, %v3261_v30  ;;  %v4248_v58 = vpop.f32.mrb[8].mxu1  ;;  %7485 = vst [vmem:[#allocation166_spill] sm:$0xff] %v5992_v22  ;;  %7486 = vst [vmem:[#allocation167_spill] sm:$0xff] %v5994_v0  ;;  %v6004_v30 = vmax.f32 %v1129_v5, 0.0 }
 0x3c2   : > { %v3276_v23 = vadd.f32 %v4248_v58, %v5901_v53  ;;  %v3270_v40 = vpop.f32.mrb[9].mxu1  ;;  %v1520_v58 = vand.u32 2147483647, %v1496_v29  ;;  %v1754_v22 = vsub.f32 %v7491_v4, %v5327_v16  ;;  %v1755_v11 = vsub.f32 %v7491_v4, %v5330_v50 }
 0x3c3   : > { %v5998_v61 = vmax.f32 %v1128_v63, 0.0  ;;  %v3271_v47 = vadd.f32 %v5901_v53, %v3270_v40  ;;  %7489 = vst [vmem:[#allocation36_spill] sm:$0xff] %v6004_v30  ;;  %v7490_v40 = vld [vmem:[#allocation24_spill] sm:$0xff]  ;;  %v2161_v14 = vand.u32 2147483647, %v2137_v7  ;;  %v1756_v12 = vsub.f32 %v7491_v4, %v5333_v1 }
 0x3c4   : > { %v2647_v5 = vsub.f32 %v7490_v40, %v5304_v46  ;;  %v2648_v6 = vsub.f32 %v7490_v40, %v5307_v62  ;;  %v716_v29 = vpop.xlane.xlu0 %715  ;;  %v2649_v25 = vsub.f32 %v7490_v40, %v5310_v56  ;;  %v1544_v13 = vsub.f32 1.0, %v1520_v58  ;;  %7493 = vst [vmem:[#allocation24_spill] sm:$0xff] %v6037_v39 }
 0x3c5   : > { %7487 = vst [vmem:[#allocation168_spill] sm:$0xff] %v5998_v61  ;;  %v6011_v63 = vpack.c.bf16 %v3276_v23, %v3271_v47  ;;  %v7492_v23 = vld [vmem:[#allocation38_spill] sm:$0xff]  ;;  %4606 = vrcp.f32 %v716_v29  ;;  %v2184_v8 = vsub.f32 1.0, %v2160_v27  ;;  %v7509_v61 = vmov 12  }
 0x3c6   : > { %v2671_v33 = vand.u32 2147483647, %v2647_v5  ;;  %v2672_v7 = vand.u32 2147483647, %v2648_v6  ;;  %v2673_v29 = vand.u32 2147483647, %v2649_v25 }
 0x3c7   : > { %v4603_v10 = vpop.eup %4602  ;;  %v7495_v5 = vmov 14   ;;  %v1780_v25 = vand.u32 2147483647, %v1756_v12  ;;  %v7499_v12 = vld [vmem:[#allocation29_spill] sm:$0xff] }
 0x3c8   : > { %v6001_v57 = vmul.f32 %v4603_v10, %v7488_v55  ;;  %v4251_v10 = vpop.f32.mrb[10].mxu1  ;;  %v6048_v27 = vpop.xlane.xlu0 %721  ;;  %v2696_v49 = vsub.f32 1.0, %v2672_v7  ;;  %v1753_v7 = vsub.f32 %v7499_v12, %v5333_v1 }
 0x3c9   : > { %v3286_v0 = vadd.f32 %v4251_v10, %v5901_v53  ;;  %v3280_v41 = vpop.f32.mrb[11].mxu1  ;;  %v7252_v10 = vmov 13  }
 0x3ca   : > { %1328 = vperm.xlu1 %4554, %v6001_v57   ;;  %v3281_v15 = vadd.f32 %v5901_v53, %v3280_v41  ;;  %v4254_v60 = vpop.f32.mrb[12].mxu1  ;;  %v1778_v41 = vand.u32 2147483647, %v1754_v22  ;;  %v2695_v22 = vsub.f32 1.0, %v2671_v33 }
 0x3cb   : > { %v4605_v55 = vpop.eup %4604  ;;  %v3296_v17 = vadd.f32 %v4254_v60, %v5901_v53  ;;  %v3290_v58 = vpop.f32.mrb[13].mxu1 }
 0x3cc   : > { %v6023_v47 = vmul.f32 %v4605_v55, %v7492_v23  ;;  %v6030_v40 = vpack.c.bf16 %v3286_v0, %v3281_v15  ;;  %v1545_v55 = vsub.f32 1.0, %v1521_v52  ;;  %v2183_v23 = vsub.f32 1.0, %v2159_v21  ;;  %v728_v26 = vpop.xlane.xlu0 %727 }
 0x3cd   : > { %v1779_v15 = vand.u32 2147483647, %v1755_v11  ;;  %v6039_v52 = vmax.f32 %v1544_v13, 0.0  ;;  %v2185_v21 = vsub.f32 1.0, %v2161_v14  ;;  %v2697_v11 = vsub.f32 1.0, %v2673_v29  ;;  %v7501_v29 = vld [vmem:[#allocation15_spill] sm:$0xff] }
 0x3ce   : > { %4555 = vset.pattern.permute.xlu1 %v7252_v10  ;;  %1338 = vperm.xlu0 %4562, %v6023_v47   ;;  %v3291_v10 = vadd.f32 %v5901_v53, %v3290_v58  ;;  %v4257_v60 = vpop.f32.mrb[14].mxu1  ;;  %v6044_v59 = vmax.f32 %v1545_v55, 0.0  ;;  %v6046_v6 = vmax.f32 %v2183_v23, 0.0  ;;  %v6055_v23 = vmax.f32 %v2184_v8, 0.0 }
 0x3cf   : > { %1846 = vperm.xlu1 %4555, %v6001_v57   ;;  %7494 = vst [vmem:[#allocation25_spill] sm:$0xff] %v6039_v52  ;;  %v3306_v14 = vadd.f32 %v4257_v60, %v5901_v53  ;;  %v3300_v13 = vpop.f32.mrb[15].mxu1  ;;  %v1803_v33 = vsub.f32 1.0, %v1779_v15  ;;  %v1752_v58 = vsub.f32 %v7499_v12, %v5330_v50  ;;  %v6069_v8 = vmax.f32 %v2695_v22, 0.0  ;;  %v4607_v39 = vpop.eup %4606 }
 0x3d0   : > { %v6042_v4 = vpack.c.bf16 %v3296_v17, %v3291_v10  ;;  %7496 = vst [vmem:[#allocation38_spill] sm:$0xff] %v6044_v59  ;;  %7497 = vst [vmem:[#allocation169_spill] sm:$0xff] %v6046_v6  ;;  %v1802_v10 = vsub.f32 1.0, %v1778_v41  ;;  %v3301_v55 = vadd.f32 %v5901_v53, %v3300_v13  ;;  %v1751_v17 = vsub.f32 %v7499_v12, %v5327_v16 }
 0x3d1   : > { %v725_v0 = vpop.xlane.xlu1 %724  ;;  %7498 = vst [vmem:[#allocation170_spill] sm:$0xff] %v6055_v23  ;;  %v939_v41 = vsub.f32 %v7501_v29, %v5529_v28  ;;  %7502 = vst [vmem:[#allocation15_spill] sm:$0xff] %v6069_v8  ;;  %v1804_v15 = vsub.f32 1.0, %v1780_v25  ;;  %v940_v59 = vsub.f32 %v7501_v29, %v5532_v45  ;;  %v941_v52 = vsub.f32 %v7501_v29, %v5535_v51  ;;  %v7506_v29 = vld [vmem:[#allocation30_spill] sm:$0xff] }
 0x3d2   : > { %4608 = vrcp.f32 %v725_v0  ;;  %4563 = vset.pattern.permute.xlu0 %v7495_v5  ;;  %v6061_v0 = vmax.f32 %v2185_v21, 0.0  ;;  %v6067_v60 = vpack.c.bf16 %v3306_v14, %v3301_v55  ;;  %v4260_v13 = vpop.f32.mrb[16].mxu1  ;;  %v7503_v21 = vmov 15  }
 0x3d3   : > { %4556 = vset.pattern.permute.xlu1 %v7495_v5  ;;  %2366 = vperm.xlu0 %4563, %v6023_v47   ;;  %v6078_v12 = vmax.f32 %v2697_v11, 0.0  ;;  %v1826_v23 = vmax.f32 %v1802_v10, 0.0  ;;  %v3316_v22 = vadd.f32 %v4260_v13, %v5901_v53  ;;  %v3310_v25 = vpop.f32.mrb[17].mxu1  ;;  %v1827_v14 = vmax.f32 %v1803_v33, 0.0  ;;  %v7507_v33 = vld [vmem:[#allocation39_spill] sm:$0xff] }
 0x3d4   : > { %2358 = vperm.xlu1 %4556, %v6001_v57   ;;  %7500 = vst [vmem:[#allocation29_spill] sm:$0xff] %v6061_v0  ;;  %v6076_v0 = vmax.f32 %v2696_v49, 0.0  ;;  %v1775_v55 = vand.u32 2147483647, %v1751_v17  ;;  %v1776_v8 = vand.u32 2147483647, %v1752_v58  ;;  %v2263_v6 = vsub.f32 %v7506_v29, %v5327_v16 }
 0x3d5   : > { %7505 = vst [vmem:[#allocation172_spill] sm:$0xff] %v6078_v12  ;;  %v1777_v49 = vand.u32 2147483647, %v1753_v7  ;;  %v963_v11 = vand.u32 2147483647, %v939_v41  ;;  %v2264_v10 = vsub.f32 %v7506_v29, %v5330_v50  ;;  %v3311_v12 = vadd.f32 %v5901_v53, %v3310_v25 }
 0x3d6   : > { %7504 = vst [vmem:[#allocation171_spill] sm:$0xff] %v6076_v0  ;;  %v4263_v0 = vpop.f32.mrb[18].mxu1  ;;  %v1828_v38 = vmax.f32 %v1804_v15, 0.0  ;;  %v964_v13 = vand.u32 2147483647, %v940_v59  ;;  %v6090_v17 = vmul.f32 %v4607_v39, %v7507_v33  ;;  %v2265_v43 = vsub.f32 %v7506_v29, %v5333_v1 }
 0x3d7   : > { %4564 = vset.pattern.permute.xlu0 %v7503_v21  ;;  %v965_v48 = vand.u32 2147483647, %v941_v52  ;;  %v3320_v58 = vpop.f32.mrb[19].mxu1  ;;  %4610 = vrcp.f32 %v728_v26  ;;  %v4352_v7 = vpack.c.bf16 %v3316_v22, %v3311_v12  ;;  %v3326_v41 = vadd.f32 %v4263_v0, %v5901_v53  ;;  %v7511_v26 = vld [vmem:[#allocation16_spill] sm:$0xff] }
 0x3d8   : > { %4557 = vset.pattern.permute.xlu1 %v7503_v21  ;;  %2878 = vperm.xlu0 %4564, %v6023_v47   ;;  %v1799_v30 = vsub.f32 1.0, %v1775_v55  ;;  %v2287_v25 = vand.u32 2147483647, %v2263_v6  ;;  %v3321_v39 = vadd.f32 %v5901_v53, %v3320_v58  ;;  %v6100_v59 = vmul.f32 %v1826_v23, %v5646_v9  ;;  %v7513_v55 = vld [vmem:[#allocation43_spill] sm:$0xff] }
 0x3d9   : > { %2870 = vperm.xlu1 %4557, %v6001_v57   ;;  %v7508_v57 = vmov 13   ;;  %v1800_v52 = vsub.f32 1.0, %v1776_v8  ;;  %v2288_v15 = vand.u32 2147483647, %v2264_v10  ;;  %v1507_v29 = vsub.f32 %v7511_v26, %v5529_v28  ;;  %4353 = vmatprep.subr.bf16.mxu0 %v4352_v7 }
 0x3da   : > { %7510 = vst [vmem:[#allocation30_spill] sm:$0xff] %v6100_v59  ;;  %v4266_v12 = vpop.f32.mrb[20].mxu1  ;;  %v6106_v0 = vmul.f32 %v1827_v14, %v5652_v31  ;;  %v1801_v6 = vsub.f32 1.0, %v1777_v49  ;;  %v1508_v22 = vsub.f32 %v7511_v26, %v5532_v45  ;;  %v4356_v9 = vpack.c.bf16 %v3326_v41, %v3321_v39  ;;  %4400 = vmatprep.subr.bf16.mxu1 %v4352_v7 }
 0x3db   : > { %v3330_v23 = vpop.f32.mrb[21].mxu1  ;;  %v987_v8 = vsub.f32 1.0, %v963_v11  ;;  %v988_v10 = vsub.f32 1.0, %v964_v13  ;;  %v989_v58 = vsub.f32 1.0, %v965_v48  ;;  %v2289_v59 = vand.u32 2147483647, %v2265_v43  ;;  %4355 = vmatpush3.bf16.msra.mxu0 %v5943_v2  ;;  %4408 = vmatpush3.bf16.msra.mxu1 %v5943_v2 }
 0x3dc   : > { %v4609_v54 = vpop.eup %4608  ;;  %4566 = vset.pattern.permute.xlu0 %v7508_v57  ;;  %7512 = vst [vmem:[#allocation39_spill] sm:$0xff] %v6106_v0  ;;  %v6115_v31 = vmax.f32 %v1799_v30, 0.0  ;;  %v2311_v14 = vsub.f32 1.0, %v2287_v25  ;;  %v1509_v49 = vsub.f32 %v7511_v26, %v5535_v51  ;;  %v2312_v7 = vsub.f32 1.0, %v2288_v15  ;;  %4357 = vmatprep.subr.bf16.mxu0 %v4356_v9 }
 0x3dd   : > { %4558 = vset.pattern.permute.xlu1 %v7509_v61  ;;  %1850 = vperm.xlu0 %4566, %v6090_v17   ;;  %v6111_v33 = vmul.f32 %v4609_v54, %v7513_v55  ;;  %v7514_v54 = vld [vmem:[#allocation32_spill] sm:$0xff]  ;;  %v3336_v43 = vadd.f32 %v4266_v12, %v5901_v53  ;;  %v3331_v2 = vadd.f32 %v5901_v53, %v3330_v23  ;;  %v6127_v11 = vmax.f32 %v1800_v52, 0.0 }
 0x3de   : > { %1323 = vperm.xlu1 %4558, %v5554_v36   ;;  %v2775_v41 = vsub.f32 %v7514_v54, %v5327_v16  ;;  %v2776_v48 = vsub.f32 %v7514_v54, %v5330_v50  ;;  %v4269_v30 = vpop.f32.mrb[22].mxu1  ;;  %v1531_v13 = vand.u32 2147483647, %v1507_v29  ;;  %v1532_v25 = vand.u32 2147483647, %v1508_v22  ;;  %4401 = vmatprep.subr.bf16.mxu1 %v4356_v9 }
 0x3df   : > { %v3340_v39 = vpop.f32.mrb[23].mxu1  ;;  %v6131_v15 = vmul.f32 %v1828_v38, %v5660_v18  ;;  %v6133_v26 = vmax.f32 %v1801_v6, 0.0  ;;  %v6135_v55 = vmax.f32 %v987_v8, 0.0  ;;  %v6137_v0 = vmax.f32 %v988_v10, 0.0  ;;  %4359 = vmatpush3.bf16.msra.mxu0 %v5957_v35  ;;  %4409 = vmatpush3.bf16.msra.mxu1 %v5957_v35 }
 0x3e0   : > { %v2313_v12 = vsub.f32 1.0, %v2289_v59  ;;  %v6140_v52 = vmax.f32 %v989_v58, 0.0  ;;  %v6142_v29 = vand.u32 2147483647, %v1509_v49  ;;  %v2799_v22 = vand.u32 2147483647, %v2775_v41 }
 0x3e1   : > { %1862 = vperm.xlu0 %4566, %v6111_v33   ;;  %7515 = vst [vmem:[#allocation16_spill] sm:$0xff] %v6131_v15  ;;  %7516 = vst [vmem:[#allocation43_spill] sm:$0xff] %v6135_v55  ;;  %v4611_v18 = vpop.eup %4610  ;;  %v6148_v38 = vmax.f32 %v2311_v14, 0.0  ;;  %v6150_v6 = vmax.f32 %v2312_v7, 0.0  ;;  %v2800_v59 = vand.u32 2147483647, %v2776_v48  ;;  %v4360_v9 = vpack.c.bf16 %v3336_v43, %v3331_v2 }
 0x3e2   : > { %4559 = vset.pattern.permute.xlu1 %v7508_v57  ;;  %7517 = vst [vmem:[#allocation32_spill] sm:$0xff] %v6137_v0  ;;  %7518 = vst [vmem:[#allocation173_spill] sm:$0xff] %v6140_v52  ;;  %v4272_v23 = vpop.f32.mrb[24].mxu1  ;;  %v1555_v8 = vsub.f32 1.0, %v1531_v13  ;;  %v1556_v10 = vsub.f32 1.0, %v1532_v25  ;;  %v7520_v58 = vld [vmem:[#allocation18_spill] sm:$0xff]  ;;  %v3341_v14 = vadd.f32 %v5901_v53, %v3340_v39  ;;  %4612 = vrcp.f32 %v6048_v27 }
 0x3e3   : > { %1842 = vperm.xlu1 %4559, %v5554_v36   ;;  %7519 = vst [vmem:[#allocation174_spill] sm:$0xff] %v6142_v29  ;;  %v2777_v36 = vsub.f32 %v7514_v54, %v5333_v1  ;;  %v1225_v49 = vsub.f32 %v7520_v58, %v5327_v16  ;;  %v3346_v54 = vadd.f32 %v4269_v30, %v5901_v53  ;;  %v3350_v35 = vpop.f32.mrb[25].mxu1  ;;  %v6157_v41 = vmax.f32 %v2313_v12, 0.0  ;;  %v7521_v25 = vld [vmem:[#allocation6_spill] sm:$0xff] }
 0x3e4   : > { %4361 = vmatprep.subr.bf16.mxu0 %v4360_v9  ;;  %4402 = vmatprep.subr.bf16.mxu1 %v4360_v9  ;;  %v3356_v7 = vadd.f32 %v4272_v23, %v5901_v53  ;;  %v3351_v48 = vadd.f32 %v5901_v53, %v3350_v35  ;;  %v2823_v13 = vsub.f32 1.0, %v2799_v22  ;;  %v6164_v52 = vmul.f32 %v4611_v18, %v7521_v25  ;;  %v7525_v35 = vld [vmem:[#allocation20_spill] sm:$0xff]  ;;  %v7528_v43 = vld [vmem:[#allocation34_spill] sm:$0xff] }
 0x3e5   : > { %4571 = vset.pattern.permute.xlu0 %v7503_v21  ;;  %v2801_v2 = vand.u32 2147483647, %v2777_v36  ;;  %4363 = vmatpush3.bf16.msra.mxu0 %v5965_v44  ;;  %v1226_v30 = vsub.f32 %v7520_v58, %v5330_v50  ;;  %v4364_v39 = vpack.c.bf16 %v3346_v54, %v3341_v14  ;;  %v6171_v23 = vmax.f32 %v1555_v8, 0.0 }
 0x3e6   : > { %2886 = vperm.xlu0 %4571, %v6111_v33   ;;  %7522 = vst [vmem:[#allocation18_spill] sm:$0xff] %v6164_v52  ;;  %4410 = vmatpush3.bf16.msra.mxu1 %v5965_v44  ;;  %v4368_v12 = vpack.c.bf16 %v3356_v7, %v3351_v48  ;;  %v4275_v9 = vpop.f32.mrb[26].mxu1  ;;  %v6173_v36 = vmax.f32 %v1556_v10, 0.0  ;;  %v1227_v22 = vsub.f32 %v7520_v58, %v5333_v1  ;;  %v6186_v14 = vmax.f32 %v2823_v13, 0.0  ;;  %v7526_v48 = vld [vmem:[#allocation22_spill] sm:$0xff] }
 0x3e7   : > { %1854 = vperm.xlu1 %4559, %v6023_v47   ;;  %v2824_v47 = vsub.f32 1.0, %v2800_v59  ;;  %7523 = vst [vmem:[#allocation6_spill] sm:$0xff] %v6171_v23  ;;  %v3366_v44 = vadd.f32 %v4275_v9, %v5901_v53  ;;  %v3360_v18 = vpop.f32.mrb[27].mxu1  ;;  %v1249_v59 = vand.u32 2147483647, %v1225_v49  ;;  %v1228_v54 = vsub.f32 %v7525_v35, %v5327_v16  ;;  %4365 = vmatprep.subr.bf16.mxu0 %v4364_v39 }
 0x3e8   : > { %7524 = vst [vmem:[#allocation175_spill] sm:$0xff] %v6173_v36  ;;  %v1229_v8 = vsub.f32 %v7525_v35, %v5330_v50  ;;  %v3361_v10 = vadd.f32 %v5901_v53, %v3360_v18  ;;  %v2825_v58 = vsub.f32 1.0, %v2801_v2  ;;  %v1230_v7 = vsub.f32 %v7525_v35, %v5333_v1  ;;  %4403 = vmatprep.subr.bf16.mxu1 %v4364_v39 }
 0x3e9   : > { %v1231_v49 = vsub.f32 %v7526_v48, %v5327_v16  ;;  %4367 = vmatpush3.bf16.msra.mxu0 %v5987_v32  ;;  %v6193_v25 = vmax.f32 %v2824_v47, 0.0  ;;  %v1250_v9 = vand.u32 2147483647, %v1226_v30  ;;  %v933_v36 = vsub.f32 %v7528_v43, %v5529_v28 }
 0x3ea   : > { %4580 = vset.pattern.permute.xlu0 %v7495_v5  ;;  %4411 = vmatpush3.bf16.msra.mxu1 %v5987_v32  ;;  %v4372_v2 = vpack.c.bf16 %v3366_v44, %v3361_v10  ;;  %v4278_v13 = vpop.f32.mrb[28].mxu1  ;;  %v1251_v18 = vand.u32 2147483647, %v1227_v22  ;;  %v934_v35 = vsub.f32 %v7528_v43, %v5532_v45  ;;  %v1232_v39 = vsub.f32 %v7526_v48, %v5330_v50 }
 0x3eb   : > { %4565 = vset.pattern.permute.xlu1 %v7509_v61  ;;  %2378 = vperm.xlu0 %4580, %v6164_v52   ;;  %7527 = vst [vmem:[#allocation20_spill] sm:$0xff] %v6193_v25  ;;  %v3376_v47 = vadd.f32 %v4278_v13, %v5901_v53  ;;  %v3370_v30 = vpop.f32.mrb[29].mxu1  ;;  %v1273_v23 = vsub.f32 1.0, %v1249_v59  ;;  %v1252_v29 = vand.u32 2147483647, %v1228_v54  ;;  %v6207_v22 = vmax.f32 %v2825_v58, 0.0 }
 0x3ec   : > { %1333 = vperm.xlu1 %4565, %v6090_v17   ;;  %4369 = vmatprep.subr.bf16.mxu0 %v4368_v12  ;;  %v1253_v0 = vand.u32 2147483647, %v1229_v8  ;;  %v3371_v32 = vadd.f32 %v5901_v53, %v3370_v30  ;;  %v1254_v44 = vand.u32 2147483647, %v1230_v7  ;;  %v1233_v10 = vsub.f32 %v7526_v48, %v5333_v1 }
 0x3ed   : > { %4404 = vmatprep.subr.bf16.mxu1 %v4368_v12  ;;  %7529 = vst [vmem:[#allocation22_spill] sm:$0xff] %v6207_v22  ;;  %v1255_v55 = vand.u32 2147483647, %v1231_v49  ;;  %4371 = vmatpush3.bf16.msra.mxu0 %v6011_v63  ;;  %v1274_v12 = vsub.f32 1.0, %v1250_v9  ;;  %v935_v59 = vsub.f32 %v7528_v43, %v5535_v51  ;;  %v6215_v54 = vand.u32 2147483647, %v933_v36 }
 0x3ee   : > { %4412 = vmatpush3.bf16.msra.mxu1 %v6011_v63  ;;  %v4376_v8 = vpack.c.bf16 %v3376_v47, %v3371_v32  ;;  %4373 = vmatprep.subr.bf16.mxu0 %v4372_v2  ;;  %v4281_v58 = vpop.f32.mrb[30].mxu1  ;;  %v1275_v7 = vsub.f32 1.0, %v1251_v18  ;;  %v6218_v13 = vand.u32 2147483647, %v934_v35  ;;  %v1256_v48 = vand.u32 2147483647, %v1232_v39 }
 0x3ef   : > { %4581 = vset.pattern.permute.xlu0 %v7503_v21  ;;  %4405 = vmatprep.subr.bf16.mxu1 %v4372_v2  ;;  %v3386_v49 = vadd.f32 %v4281_v58, %v5901_v53  ;;  %v3380_v30 = vpop.f32.mrb[31].mxu1  ;;  %v1297_v22 = vmax.f32 %v1273_v23, 0.0  ;;  %v1276_v9 = vsub.f32 1.0, %v1252_v29  ;;  %v1277_v15 = vsub.f32 1.0, %v1253_v0  ;;  %v7530_v63 = vld [vmem:[#allocation35_spill] sm:$0xff] }
 0x3f0   : > { %4567 = vset.pattern.permute.xlu1 %v7495_v5  ;;  %2890 = vperm.xlu0 %4581, %v6164_v52   ;;  %v3381_v43 = vadd.f32 %v5901_v53, %v3380_v30  ;;  %v1278_v36 = vsub.f32 1.0, %v1254_v44  ;;  %v1257_v52 = vand.u32 2147483647, %v1233_v10  ;;  %v1279_v25 = vsub.f32 1.0, %v1255_v55  ;;  %v7531_v18 = vld [vmem:[#allocation23_spill] sm:$0xff] }
 0x3f1   : > { %2362 = vperm.xlu1 %4567, %v6090_v17   ;;  %v1629_v47 = vsub.f32 %v7530_v63, %v5304_v46  ;;  %4375 = vmatpush3.bf16.msra.mxu0 %v6030_v40  ;;  %v1630_v2 = vsub.f32 %v7530_v63, %v5307_v62  ;;  %v1234_v23 = vsub.f32 %v7531_v18, %v5327_v16  ;;  %v1298_v55 = vmax.f32 %v1274_v12, 0.0 }
 0x3f2   : > { %4413 = vmatpush3.bf16.msra.mxu1 %v6030_v40  ;;  %v4380_v0 = vpack.c.bf16 %v3386_v49, %v3381_v43  ;;  %v1280_v29 = vsub.f32 1.0, %v1256_v48  ;;  %v1631_v35 = vsub.f32 %v7530_v63, %v5310_v56  ;;  %v1235_v39 = vsub.f32 %v7531_v18, %v5330_v50  ;;  %4377 = vmatprep.subr.bf16.mxu0 %v4376_v8 }
 0x3f3   : > { %4406 = vmatprep.subr.bf16.mxu1 %v4376_v8  ;;  %v1299_v32 = vmax.f32 %v1275_v7, 0.0  ;;  %v6238_v44 = vmul.f32 %v1297_v22, %v5680_v20  ;;  %v6240_v27 = vand.u32 2147483647, %v935_v59  ;;  %v1301_v10 = vmax.f32 %v1277_v15, 0.0  ;;  %v7534_v8 = vld [vmem:[#allocation26_spill] sm:$0xff] }
 0x3f4   : > { %v1302_v40 = vmax.f32 %v1278_v36, 0.0  ;;  %v1281_v58 = vsub.f32 1.0, %v1257_v52  ;;  %v1653_v12 = vand.u32 2147483647, %v1629_v47  ;;  %v1303_v48 = vmax.f32 %v1279_v25, 0.0 }
 0x3f5   : > { %4568 = vset.pattern.permute.xlu1 %v7503_v21  ;;  %4379 = vmatpush3.bf16.msra.mxu0 %v6042_v4  ;;  %v1654_v49 = vand.u32 2147483647, %v1630_v2  ;;  %v1236_v30 = vsub.f32 %v7531_v18, %v5333_v1  ;;  %v1258_v43 = vand.u32 2147483647, %v1234_v23  ;;  %v6248_v20 = vmul.f32 %v1298_v55, %v5682_v19  ;;  %v7536_v18 = vld [vmem:[#allocation168_spill] sm:$0xff]  ;;  %v4613_v55 = vpop.eup %4612 }
 0x3f6   : > { %2874 = vperm.xlu1 %4568, %v6090_v17   ;;  %v1300_v17 = vmax.f32 %v1276_v9, 0.0  ;;  %4414 = vmatpush3.bf16.msra.mxu1 %v6042_v4  ;;  %v1304_v22 = vmax.f32 %v1280_v29, 0.0  ;;  %v1655_v15 = vand.u32 2147483647, %v1631_v35  ;;  %v1259_v59 = vand.u32 2147483647, %v1235_v39 }
 0x3f7   : > { %7532 = vst [vmem:[#allocation34_spill] sm:$0xff] %v6248_v20  ;;  %4381 = vmatprep.subr.bf16.mxu0 %v4380_v0  ;;  %v6252_v52 = vmul.f32 %v1299_v32, %v5686_v3  ;;  %v1745_v7 = vsub.f32 %v7534_v8, %v5327_v16  ;;  %v1746_v4 = vsub.f32 %v7534_v8, %v5330_v50  ;;  %v1305_v36 = vmax.f32 %v1281_v58, 0.0  ;;  %v7538_v29 = vld [vmem:[#allocation37_spill] sm:$0xff]  ;;  %v7539_v32 = vld [vmem:[#allocation27_spill] sm:$0xff] }
 0x3f8   : > { %v6255_v25 = vmul.f32 %v1300_v17, %v5583_v34  ;;  %4407 = vmatprep.subr.bf16.mxu1 %v4380_v0  ;;  %v6262_v19 = vmul.f32 %v1301_v10, %v5585_v42  ;;  %v6265_v9 = vmul.f32 %v1302_v40, %v5590_v24  ;;  %v1677_v63 = vsub.f32 1.0, %v1653_v12 }
 0x3f9   : > { %7533 = vst [vmem:[#allocation35_spill] sm:$0xff] %v6252_v52  ;;  %4383 = vmatpush3.bf16.msra.mxu0 %v6067_v60  ;;  %v6269_v34 = vmul.f32 %v1303_v48, %v5996_v37  ;;  %v1678_v3 = vsub.f32 1.0, %v1654_v49  ;;  %v1260_v47 = vand.u32 2147483647, %v1236_v30  ;;  %v1282_v2 = vsub.f32 1.0, %v1258_v43  ;;  %v7560_v52 = vld [vmem:[#allocation117_spill] sm:$0xff] }
 0x3fa   : > { %4569 = vset.pattern.permute.xlu1 %v7509_v61  ;;  %4415 = vmatpush3.bf16.msra.mxu1 %v6067_v60  ;;  %v6273_v23 = vmul.f32 %v1304_v22, %v7536_v18  ;;  %v1679_v42 = vsub.f32 1.0, %v1655_v15  ;;  %v1283_v0 = vsub.f32 1.0, %v1259_v59  ;;  %v1747_v24 = vsub.f32 %v7534_v8, %v5333_v1  ;;  %v7543_v15 = vld [vmem:[#allocation5_spill] sm:$0xff] }
 0x3fb   : > { %1348 = vperm.xlu1 %4569, %v6111_v33   ;;  %7535 = vst [vmem:[#allocation23_spill] sm:$0xff] %v6269_v34  ;;  %v2013_v37 = vsub.f32 %v7538_v29, %v5529_v28  ;;  %v1769_v35 = vand.u32 2147483647, %v1745_v7  ;;  %v1770_v39 = vand.u32 2147483647, %v1746_v4  ;;  %v1748_v17 = vsub.f32 %v7539_v32, %v5327_v16 }
 0x3fc   : > { %7537 = vst [vmem:[#allocation26_spill] sm:$0xff] %v6273_v23  ;;  %v6283_v60 = vmax.f32 %v1677_v63, 0.0  ;;  %v2014_v10 = vsub.f32 %v7538_v29, %v5532_v45  ;;  %v1749_v40 = vsub.f32 %v7539_v32, %v5330_v50  ;;  %v1750_v58 = vsub.f32 %v7539_v32, %v5333_v1 }
 0x3fd   : > { %v6291_v12 = vmax.f32 %v1678_v3, 0.0  ;;  %v1284_v48 = vsub.f32 1.0, %v1260_v47  ;;  %v1306_v49 = vmax.f32 %v1282_v2, 0.0  ;;  %v2015_v30 = vsub.f32 %v7538_v29, %v5535_v51  ;;  %v7545_v3 = vld [vmem:[#allocation36_spill] sm:$0xff] }
 0x3fe   : > { %7540 = vst [vmem:[#allocation168_spill] sm:$0xff] %v6283_v60  ;;  %v6295_v43 = vmax.f32 %v1679_v42, 0.0  ;;  %v1771_v22 = vand.u32 2147483647, %v1747_v24  ;;  %v6298_v59 = vmul.f32 %v4613_v55, %v7543_v15  ;;  %v6300_v8 = vand.u32 2147483647, %v2013_v37 }
 0x3ff   : > { %4570 = vset.pattern.permute.xlu1 %v7495_v5  ;;  %7541 = vst [vmem:[#allocation37_spill] sm:$0xff] %v6291_v12  ;;  %v1793_v7 = vsub.f32 1.0, %v1769_v35  ;;  %v1794_v4 = vsub.f32 1.0, %v1770_v39  ;;  %v1772_v63 = vand.u32 2147483647, %v1748_v17  ;;  %v6304_v47 = vmul.f32 %v1305_v36, %v7545_v3  ;;  %v7548_v24 = vld [vmem:[#allocation152_spill] sm:$0xff] }
 0x400   : > { %2374 = vperm.xlu1 %4570, %v6111_v33   ;;  %7542 = vst [vmem:[#allocation27_spill] sm:$0xff] %v6295_v43  ;;  %v1307_v33 = vmax.f32 %v1283_v0, 0.0  ;;  %7544 = vst [vmem:[#allocation5_spill] sm:$0xff] %v6300_v8  ;;  %v6306_v2 = vand.u32 2147483647, %v2014_v10  ;;  %v1308_v0 = vmax.f32 %v1284_v48, 0.0  ;;  %v6310_v55 = vmul.f32 %v1306_v49, %v7548_v24 }
 0x401   : > { %7546 = vst [vmem:[#allocation36_spill] sm:$0xff] %v6304_v47  ;;  %v1773_v18 = vand.u32 2147483647, %v1749_v40  ;;  %v1774_v42 = vand.u32 2147483647, %v1750_v58  ;;  %v7551_v37 = vld [vmem:[#allocation31_spill] sm:$0xff]  ;;  %v731_v58 = vpop.xlane.xlu1 %730 }
 0x402   : > { %7547 = vst [vmem:[#allocation176_spill] sm:$0xff] %v6306_v2  ;;  %7549 = vst [vmem:[#allocation152_spill] sm:$0xff] %v6310_v55  ;;  %v6312_v29 = vand.u32 2147483647, %v2015_v30  ;;  %v2769_v35 = vsub.f32 %v7551_v37, %v5327_v16  ;;  %v7552_v39 = vld [vmem:[#allocation153_spill] sm:$0xff]  ;;  %v1795_v36 = vsub.f32 1.0, %v1771_v22  ;;  %v2771_v22 = vsub.f32 %v7551_v37, %v5333_v1 }
 0x403   : > { %v6317_v32 = vmul.f32 %v1307_v33, %v7552_v39  ;;  %v7554_v17 = vld [vmem:[#allocation28_spill] sm:$0xff]  ;;  %v1817_v48 = vmax.f32 %v1793_v7, 0.0  ;;  %v1818_v15 = vmax.f32 %v1794_v4, 0.0  ;;  %v1796_v49 = vsub.f32 1.0, %v1772_v63  ;;  %v7555_v43 = vld [vmem:[#allocation33_spill] sm:$0xff]  ;;  %v7556_v4 = vld [vmem:[#allocation154_spill] sm:$0xff] }
 0x404   : > { %4572 = vset.pattern.permute.xlu1 %v7509_v61  ;;  %7550 = vst [vmem:[#allocation177_spill] sm:$0xff] %v6312_v29  ;;  %v1760_v10 = vsub.f32 %v7554_v17, %v5327_v16  ;;  %v1761_v40 = vsub.f32 %v7554_v17, %v5330_v50  ;;  %v1762_v30 = vsub.f32 %v7554_v17, %v5333_v1  ;;  %v1797_v3 = vsub.f32 1.0, %v1773_v18  ;;  %v7558_v60 = vld [vmem:[#allocation115_spill] sm:$0xff]  ;;  %v7616_v29 = vld [vmem:[#allocation108_spill] sm:$0xff] }
 0x405   : > { %1343 = vperm.xlu1 %4572, %v6298_v59   ;;  %7553 = vst [vmem:[#allocation31_spill] sm:$0xff] %v6317_v32  ;;  %v1798_v24 = vsub.f32 1.0, %v1774_v42  ;;  %v2770_v33 = vsub.f32 %v7551_v37, %v5330_v50  ;;  %v2793_v39 = vand.u32 2147483647, %v2769_v35  ;;  %v2778_v12 = vsub.f32 %v7555_v43, %v5327_v16 }
 0x406   : > { %v2779_v7 = vsub.f32 %v7555_v43, %v5330_v50  ;;  %4614 = vrcp.f32 %v731_v58  ;;  %v6336_v63 = vmul.f32 %v1308_v0, %v7556_v4  ;;  %v1819_v18 = vmax.f32 %v1795_v36, 0.0 }
 0x407   : > { %v1784_v42 = vand.u32 2147483647, %v1760_v10  ;;  %v1785_v17 = vand.u32 2147483647, %v1761_v40  ;;  %v6339_v37 = vmul.f32 %v1817_v48, %v7558_v60  ;;  %v1820_v47 = vmax.f32 %v1796_v49, 0.0  ;;  %v4284_v10 = vpop.f32.mrb[32].mxu1 }
 0x408   : > { %7557 = vst [vmem:[#allocation153_spill] sm:$0xff] %v6336_v63  ;;  %v1786_v35 = vand.u32 2147483647, %v1762_v30  ;;  %v2780_v23 = vsub.f32 %v7555_v43, %v5333_v1  ;;  %v1821_v34 = vmax.f32 %v1797_v3, 0.0  ;;  %v1822_v32 = vmax.f32 %v1798_v24, 0.0  ;;  %v7562_v60 = vld [vmem:[#allocation118_spill] sm:$0xff] }
 0x409   : > { %4573 = vset.pattern.permute.xlu1 %v7508_v57  ;;  %7559 = vst [vmem:[#allocation28_spill] sm:$0xff] %v6339_v37  ;;  %v2794_v55 = vand.u32 2147483647, %v2770_v33  ;;  %v2795_v58 = vand.u32 2147483647, %v2771_v22  ;;  %v6344_v20 = vmul.f32 %v1818_v15, %v7560_v52  ;;  %v2817_v0 = vsub.f32 1.0, %v2793_v39 }
 0x40a   : > { %1858 = vperm.xlu1 %4573, %v6298_v59   ;;  %v2802_v4 = vand.u32 2147483647, %v2778_v12  ;;  %v2803_v36 = vand.u32 2147483647, %v2779_v7  ;;  %v6348_v40 = vmul.f32 %v1819_v18, %v7562_v60  ;;  %v1808_v48 = vsub.f32 1.0, %v1784_v42  ;;  %v3390_v30 = vpop.f32.mrb[33].mxu1 }
 0x40b   : > { %7561 = vst [vmem:[#allocation33_spill] sm:$0xff] %v6344_v20  ;;  %v1809_v49 = vsub.f32 1.0, %v1785_v17  ;;  %v3396_v43 = vadd.f32 %v4284_v10, %v5901_v53  ;;  %v7564_v3 = vld [vmem:[#allocation100_spill] sm:$0xff]  ;;  %v1810_v52 = vsub.f32 1.0, %v1786_v35  ;;  %v2804_v15 = vand.u32 2147483647, %v2780_v23 }
 0x40c   : > { %7563 = vst [vmem:[#allocation154_spill] sm:$0xff] %v6348_v40  ;;  %v6353_v24 = vmul.f32 %v1820_v47, %v7564_v3  ;;  %v3391_v12 = vadd.f32 %v5901_v53, %v3390_v30  ;;  %v7565_v33 = vld [vmem:[#allocation101_spill] sm:$0xff]  ;;  %v7566_v39 = vld [vmem:[#allocation103_spill] sm:$0xff]  ;;  %v2818_v18 = vsub.f32 1.0, %v2794_v55  ;;  %v2819_v42 = vsub.f32 1.0, %v2795_v58  ;;  %v4287_v55 = vpop.f32.mrb[34].mxu1 }
 0x40d   : > { %v6357_v22 = vmul.f32 %v1821_v34, %v7565_v33  ;;  %v6360_v7 = vmul.f32 %v1822_v32, %v7566_v39  ;;  %v2841_v17 = vmax.f32 %v2817_v0, 0.0  ;;  %v2826_v60 = vsub.f32 1.0, %v2802_v4  ;;  %v7568_v53 = vld [vmem:[#allocation59_spill] sm:$0xff]  ;;  %v7569_v3 = vld [vmem:[#allocation110_spill] sm:$0xff]  ;;  %v7574_v63 = vld [vmem:[#allocation45_spill] sm:$0xff] }
 0x40e   : > { %4574 = vset.pattern.permute.xlu1 %v7495_v5  ;;  %v2827_v10 = vsub.f32 1.0, %v2803_v36  ;;  %v6362_v40 = vpack.c.bf16 %v3396_v43, %v3391_v12  ;;  %v6364_v47 = vmax.f32 %v1808_v48, 0.0  ;;  %v6366_v35 = vmax.f32 %v1809_v49, 0.0  ;;  %v4616_v36 = vld [vmem:[%s5892_s22] ss:$0 sm:$0xff]  ;;  %v3400_v49 = vpop.f32.mrb[35].mxu1 }
 0x40f   : > { %2370 = vperm.xlu1 %4574, %v6298_v59   ;;  %v2257_v23 = vsub.f32 %v7568_v53, %v5327_v16  ;;  %v2258_v34 = vsub.f32 %v7568_v53, %v5330_v50  ;;  %v6373_v58 = vmax.f32 %v1810_v52, 0.0  ;;  %v2828_v0 = vsub.f32 1.0, %v2804_v15  ;;  %v7571_v52 = vld [vmem:[#allocation128_spill] sm:$0xff] }
 0x410   : > { %7567 = vst [vmem:[#allocation115_spill] sm:$0xff] %v6362_v40  ;;  %v4615_v32 = vpop.eup %4614  ;;  %v2259_v4 = vsub.f32 %v7568_v53, %v5333_v1  ;;  %v3406_v48 = vadd.f32 %v4616_v36, %v4287_v55  ;;  %4385 = vmatprep.subr.bf16.mxu0 %v6362_v40  ;;  %v2842_v43 = vmax.f32 %v2818_v18, 0.0  ;;  %v2843_v30 = vmax.f32 %v2819_v42, 0.0  ;;  %v7572_v53 = vld [vmem:[#allocation111_spill] sm:$0xff] }
 0x411   : > { %v6382_v12 = vmul.f32 %v6115_v31, %v7569_v3  ;;  %v3401_v33 = vadd.f32 %v4616_v36, %v3400_v49  ;;  %v6385_v39 = vmul.f32 %v2841_v17, %v7571_v52  ;;  %v2850_v15 = vmax.f32 %v2826_v60, 0.0  ;;  %v7576_v49 = vld [vmem:[#allocation60_spill] sm:$0xff]  ;;  %v7577_v52 = vld [vmem:[#allocation129_spill] sm:$0xff] }
 0x412   : > { %v2851_v20 = vmax.f32 %v2827_v10, 0.0  ;;  %v2281_v55 = vand.u32 2147483647, %v2257_v23  ;;  %v2282_v37 = vand.u32 2147483647, %v2258_v34  ;;  %v6392_v40 = vmul.f32 %v4615_v32, %v7574_v63  ;;  %v7579_v23 = vld [vmem:[#allocation130_spill] sm:$0xff] }
 0x413   : > { %4575 = vset.pattern.permute.xlu1 %v7503_v21  ;;  %7570 = vst [vmem:[#allocation117_spill] sm:$0xff] %v6382_v12  ;;  %v6394_v18 = vpack.c.bf16 %v3406_v48, %v3401_v33  ;;  %v4290_v42 = vpop.f32.mrb[36].mxu1  ;;  %v2852_v31 = vmax.f32 %v2828_v0, 0.0  ;;  %v2283_v3 = vand.u32 2147483647, %v2259_v4  ;;  %v2260_v17 = vsub.f32 %v7576_v49, %v5327_v16  ;;  %v7581_v0 = vld [vmem:[#allocation164_spill] sm:$0xff] }
 0x414   : > { %2882 = vperm.xlu1 %4575, %v6298_v59   ;;  %v6389_v59 = vmul.f32 %v6127_v11, %v7572_v53  ;;  %v3416_v60 = vadd.f32 %v4616_v36, %v4290_v42  ;;  %v3410_v10 = vpop.f32.mrb[37].mxu1  ;;  %v6400_v11 = vmul.f32 %v2842_v43, %v7577_v52  ;;  %v6403_v34 = vmul.f32 %v2843_v30, %v7579_v23  ;;  %v7583_v48 = vld [vmem:[#allocation165_spill] sm:$0xff]  ;;  %v7585_v43 = vld [vmem:[#allocation112_spill] sm:$0xff] }
 0x415   : > { %7575 = vst [vmem:[#allocation100_spill] sm:$0xff] %v6394_v18  ;;  %v2261_v63 = vsub.f32 %v7576_v49, %v5330_v50  ;;  %v3411_v32 = vadd.f32 %v4616_v36, %v3410_v10  ;;  %v6409_v4 = vmul.f32 %v2850_v15, %v7581_v0  ;;  %v6412_v33 = vmul.f32 %v2851_v20, %v7583_v48  ;;  %v7587_v23 = vld [vmem:[#allocation169_spill] sm:$0xff]  ;;  %v7590_v0 = vld [vmem:[#allocation19_spill] sm:$0xff] }
 0x416   : > { %7573 = vst [vmem:[#allocation118_spill] sm:$0xff] %v6389_v59  ;;  %7578 = vst [vmem:[#allocation101_spill] sm:$0xff] %v6400_v11  ;;  %v2262_v53 = vsub.f32 %v7576_v49, %v5333_v1  ;;  %v6418_v42 = vmul.f32 %v6133_v26, %v7585_v43  ;;  %v2305_v30 = vsub.f32 1.0, %v2281_v55  ;;  %v2306_v52 = vsub.f32 1.0, %v2282_v37  ;;  %v7592_v26 = vld [vmem:[#allocation64_spill] sm:$0xff]  ;;  %v7593_v37 = vld [vmem:[#allocation170_spill] sm:$0xff] }
 0x417   : > { %7580 = vst [vmem:[#allocation103_spill] sm:$0xff] %v6403_v34  ;;  %7582 = vst [vmem:[#allocation59_spill] sm:$0xff] %v6409_v4  ;;  %v6422_v18 = vmul.f32 %v6148_v38, %v7587_v23  ;;  %v6424_v10 = vpack.c.bf16 %v3416_v60, %v3411_v32  ;;  %v4293_v15 = vpop.f32.mrb[38].mxu1  ;;  %v6427_v59 = vmul.f32 %v2852_v31, %v7590_v0  ;;  %v2307_v20 = vsub.f32 1.0, %v2283_v3  ;;  %v7595_v23 = vld [vmem:[#allocation29_spill] sm:$0xff] }
 0x418   : > { %4576 = vset.pattern.permute.xlu1 %v7509_v61  ;;  %7584 = vst [vmem:[#allocation110_spill] sm:$0xff] %v6412_v33  ;;  %7586 = vst [vmem:[#allocation128_spill] sm:$0xff] %v6418_v42  ;;  %v2284_v48 = vand.u32 2147483647, %v2260_v17  ;;  %v3426_v12 = vadd.f32 %v4616_v36, %v4293_v15  ;;  %v3420_v49 = vpop.f32.mrb[39].mxu1  ;;  %v2266_v43 = vsub.f32 %v7592_v26, %v5327_v16  ;;  %v981_v31 = vsub.f32 1.0, %v6215_v54 }
 0x419   : > { %1358 = vperm.xlu1 %4576, %v6392_v40   ;;  %7588 = vst [vmem:[#allocation111_spill] sm:$0xff] %v6422_v18  ;;  %7589 = vst [vmem:[#allocation45_spill] sm:$0xff] %v6424_v10  ;;  %v2285_v33 = vand.u32 2147483647, %v2261_v63  ;;  %v6434_v38 = vmul.f32 %v6150_v6, %v7593_v37  ;;  %v3421_v55 = vadd.f32 %v4616_v36, %v3420_v49  ;;  %v2286_v60 = vand.u32 2147483647, %v2262_v53 }
 0x41a   : > { %7591 = vst [vmem:[#allocation60_spill] sm:$0xff] %v6427_v59  ;;  %v982_v3 = vsub.f32 1.0, %v6218_v13  ;;  %v983_v17 = vsub.f32 1.0, %v6240_v27  ;;  %v2329_v63 = vmax.f32 %v2305_v30, 0.0  ;;  %v2330_v32 = vmax.f32 %v2306_v52, 0.0  ;;  %v7598_v49 = vld [vmem:[#allocation15_spill] sm:$0xff] }
 0x41b   : > { %7594 = vst [vmem:[#allocation129_spill] sm:$0xff] %v6434_v38  ;;  %v6442_v15 = vmul.f32 %v6157_v41, %v7595_v23  ;;  %v6444_v0 = vpack.c.bf16 %v3426_v12, %v3421_v55  ;;  %v2331_v6 = vmax.f32 %v2307_v20, 0.0  ;;  %v2308_v37 = vsub.f32 1.0, %v2284_v48  ;;  %v7600_v30 = vld [vmem:[#allocation171_spill] sm:$0xff]  ;;  %v7601_v52 = vld [vmem:[#allocation20_spill] sm:$0xff]  ;;  %v7634_v18 = vld [vmem:[#allocation14_spill] sm:$0xff] }
 0x41c   : > { %v2267_v36 = vsub.f32 %v7592_v26, %v5330_v50  ;;  %v2268_v54 = vsub.f32 %v7592_v26, %v5333_v1  ;;  %v2309_v53 = vsub.f32 1.0, %v2285_v33  ;;  %v2290_v13 = vand.u32 2147483647, %v2266_v43  ;;  %v7606_v26 = vld [vmem:[#allocation122_spill] sm:$0xff]  ;;  %v7607_v43 = vld [vmem:[#allocation123_spill] sm:$0xff]  ;;  %v7614_v10 = vld [vmem:[#allocation44_spill] sm:$0xff] }
 0x41d   : > { %4577 = vset.pattern.permute.xlu1 %v7508_v57  ;;  %7596 = vst [vmem:[#allocation130_spill] sm:$0xff] %v6442_v15  ;;  %7597 = vst [vmem:[#allocation164_spill] sm:$0xff] %v6444_v0  ;;  %v6452_v27 = vmul.f32 %v6186_v14, %v7598_v49  ;;  %v6456_v41 = vmul.f32 %v7601_v52, %v7600_v30  ;;  %v2310_v12 = vsub.f32 1.0, %v2286_v60  ;;  %v6459_v20 = vmax.f32 %v981_v31, 0.0  ;;  %v7608_v14 = vld [vmem:[#allocation18_spill] sm:$0xff]  ;;  %v7609_v30 = vld [vmem:[#allocation124_spill] sm:$0xff] }
 0x41e   : > { %1870 = vperm.xlu1 %4577, %v6392_v40   ;;  %v6461_v48 = vmax.f32 %v982_v3, 0.0  ;;  %v6463_v55 = vmax.f32 %v983_v17, 0.0  ;;  %v6466_v33 = vmul.f32 %v2329_v63, %v7606_v26  ;;  %v6469_v23 = vmul.f32 %v2330_v32, %v7607_v43  ;;  %v7610_v63 = vld [vmem:[#allocation40_spill] sm:$0xff]  ;;  %v7611_v60 = vld [vmem:[#allocation41_spill] sm:$0xff] }
 0x41f   : > { %7599 = vst [vmem:[#allocation165_spill] sm:$0xff] %v6452_v27  ;;  %7602 = vst [vmem:[#allocation112_spill] sm:$0xff] %v6456_v41  ;;  %v2332_v31 = vmax.f32 %v2308_v37, 0.0  ;;  %v2291_v3 = vand.u32 2147483647, %v2267_v36  ;;  %v2333_v17 = vmax.f32 %v2309_v53, 0.0  ;;  %v1237_v26 = vsub.f32 %v7610_v63, %v5327_v16 }
 0x420   : > { %7603 = vst [vmem:[#allocation169_spill] sm:$0xff] %v6459_v20  ;;  %7604 = vst [vmem:[#allocation19_spill] sm:$0xff] %v6461_v48  ;;  %v2292_v52 = vand.u32 2147483647, %v2268_v54  ;;  %v2314_v20 = vsub.f32 1.0, %v2290_v13  ;;  %v1238_v32 = vsub.f32 %v7610_v63, %v5330_v50  ;;  %v2334_v43 = vmax.f32 %v2310_v12, 0.0 }
 0x421   : > { %7605 = vst [vmem:[#allocation64_spill] sm:$0xff] %v6463_v55  ;;  %v1239_v49 = vsub.f32 %v7610_v63, %v5333_v1  ;;  %v1757_v55 = vsub.f32 %v7611_v60, %v5327_v16  ;;  %v1759_v37 = vsub.f32 %v7611_v60, %v5333_v1  ;;  %v7612_v36 = vld [vmem:[#allocation42_spill] sm:$0xff]  ;;  %v2315_v63 = vsub.f32 1.0, %v2291_v3 }
 0x422   : > { %4578 = vset.pattern.permute.xlu1 %v7509_v61  ;;  %v6475_v61 = vmul.f32 %v2331_v6, %v7609_v30  ;;  %v1758_v6 = vsub.f32 %v7611_v60, %v5330_v50  ;;  %v2269_v54 = vsub.f32 %v7612_v36, %v5327_v16  ;;  %v2270_v53 = vsub.f32 %v7612_v36, %v5330_v50  ;;  %v7613_v12 = vld [vmem:[#allocation106_spill] sm:$0xff] }
 0x423   : > { %1353 = vperm.xlu1 %4578, %v7608_v14   ;;  %v6496_v30 = vmul.f32 %v2332_v31, %v7613_v12  ;;  %v2316_v48 = vsub.f32 1.0, %v2292_v52  ;;  %v2271_v2 = vsub.f32 %v7612_v36, %v5333_v1  ;;  %v2338_v60 = vmax.f32 %v2314_v20, 0.0  ;;  %v7615_v12 = vld [vmem:[#allocation107_spill] sm:$0xff] }
 0x424   : > { %v1261_v8 = vand.u32 2147483647, %v1237_v26  ;;  %v1262_v0 = vand.u32 2147483647, %v1238_v32  ;;  %v1088_v41 = vsub.f32 %v7614_v10, %v5304_v46  ;;  %v1263_v27 = vand.u32 2147483647, %v1239_v49 }
 0x425   : > { %v1782_v59 = vand.u32 2147483647, %v1758_v6  ;;  %v1089_v31 = vsub.f32 %v7614_v10, %v5307_v62  ;;  %v6506_v3 = vmul.f32 %v2333_v17, %v7615_v12  ;;  %v1783_v52 = vand.u32 2147483647, %v1759_v37  ;;  %v7617_v12 = vld [vmem:[#allocation160_spill] sm:$0xff] }
 0x426   : > { %v2293_v13 = vand.u32 2147483647, %v2269_v54  ;;  %v2294_v36 = vand.u32 2147483647, %v2270_v53  ;;  %v2339_v20 = vmax.f32 %v2315_v63, 0.0  ;;  %v1090_v32 = vsub.f32 %v7614_v10, %v5310_v56 }
 0x427   : > { %4579 = vset.pattern.permute.xlu1 %v7508_v57  ;;  %v1781_v57 = vand.u32 2147483647, %v1757_v55  ;;  %v2295_v26 = vand.u32 2147483647, %v2271_v2  ;;  %v2340_v55 = vmax.f32 %v2316_v48, 0.0  ;;  %v1285_v49 = vsub.f32 1.0, %v1261_v8 }
 0x428   : > { %1866 = vperm.xlu1 %4579, %v7608_v14   ;;  %v6509_v14 = vmul.f32 %v2334_v43, %v7616_v29  ;;  %v1286_v6 = vsub.f32 1.0, %v1262_v0  ;;  %v1112_v15 = vand.u32 2147483647, %v1088_v41  ;;  %v1287_v17 = vsub.f32 1.0, %v1263_v27  ;;  %v7620_v0 = vld [vmem:[#allocation161_spill] sm:$0xff] }
 0x429   : > { %v1805_v37 = vsub.f32 1.0, %v1781_v57  ;;  %v1806_v54 = vsub.f32 1.0, %v1782_v59  ;;  %v1113_v53 = vand.u32 2147483647, %v1089_v31  ;;  %v6516_v29 = vmul.f32 %v2338_v60, %v7617_v12 }
 0x42a   : > { %v1807_v43 = vsub.f32 1.0, %v1783_v52  ;;  %v2317_v2 = vsub.f32 1.0, %v2293_v13  ;;  %v2318_v63 = vsub.f32 1.0, %v2294_v36  ;;  %v2319_v38 = vsub.f32 1.0, %v2295_v26 }
 0x42b   : > { %7618 = vst [vmem:[#allocation170_spill] sm:$0xff] %v6516_v29  ;;  %v1114_v10 = vand.u32 2147483647, %v1090_v32  ;;  %v6523_v41 = vmul.f32 %v2339_v20, %v7620_v0  ;;  %v6525_v27 = vmax.f32 %v1285_v49, 0.0  ;;  %v6527_v59 = vmax.f32 %v1286_v6, 0.0 }
 0x42c   : > { %4582 = vset.pattern.permute.xlu1 %v7495_v5  ;;  %v7619_v5 = vld [vmem:[#allocation85_spill] sm:$0xff]  ;;  %v1136_v60 = vsub.f32 1.0, %v1112_v15  ;;  %v6530_v13 = vmax.f32 %v1287_v17, 0.0  ;;  %v6532_v57 = vmax.f32 %v1805_v37, 0.0  ;;  %v6534_v31 = vmax.f32 %v1806_v54, 0.0  ;;  %v7630_v37 = vld [vmem:[#allocation46_spill] sm:$0xff] }
 0x42d   : > { %2382 = vperm.xlu1 %4582, %v6392_v40   ;;  %v2516_v48 = vsub.f32 %v7619_v5, %v5529_v28  ;;  %v2517_v8 = vsub.f32 %v7619_v5, %v5532_v45  ;;  %7621 = vst [vmem:[#allocation29_spill] sm:$0xff] %v6523_v41  ;;  %7622 = vst [vmem:[#allocation15_spill] sm:$0xff] %v6527_v59  ;;  %v1137_v52 = vsub.f32 1.0, %v1113_v53  ;;  %v6537_v36 = vmax.f32 %v1807_v43, 0.0  ;;  %v7631_v43 = vld [vmem:[#allocation48_spill] sm:$0xff] }
 0x42e   : > { %7623 = vst [vmem:[#allocation171_spill] sm:$0xff] %v6530_v13  ;;  %7624 = vst [vmem:[#allocation20_spill] sm:$0xff] %v6532_v57  ;;  %v6539_v20 = vmax.f32 %v2317_v2, 0.0  ;;  %v6541_v26 = vmax.f32 %v2318_v63, 0.0  ;;  %v2518_v15 = vsub.f32 %v7619_v5, %v5535_v51  ;;  %v6545_v32 = vmax.f32 %v2319_v38, 0.0  ;;  %v7632_v5 = vld [vmem:[#allocation89_spill] sm:$0xff] }
 0x42f   : > { %7625 = vst [vmem:[#allocation122_spill] sm:$0xff] %v6534_v31  ;;  %7626 = vst [vmem:[#allocation123_spill] sm:$0xff] %v6537_v36  ;;  %v2540_v49 = vand.u32 2147483647, %v2516_v48  ;;  %v2541_v6 = vand.u32 2147483647, %v2517_v8  ;;  %v1240_v54 = vsub.f32 %v7630_v37, %v5327_v16  ;;  %v1242_v53 = vsub.f32 %v7630_v37, %v5333_v1 }
 0x430   : > { %7627 = vst [vmem:[#allocation18_spill] sm:$0xff] %v6539_v20  ;;  %7628 = vst [vmem:[#allocation124_spill] sm:$0xff] %v6541_v26  ;;  %v6547_v17 = vmax.f32 %v1136_v60, 0.0  ;;  %v6555_v12 = vmax.f32 %v1137_v52, 0.0  ;;  %v1632_v38 = vsub.f32 %v7631_v43, %v5304_v46  ;;  %v1633_v2 = vsub.f32 %v7631_v43, %v5307_v62  ;;  %v6569_v60 = vpop.permute.xlu0 %2502  ;;  %v7633_v26 = vld [vmem:[#allocation47_spill] sm:$0xff] }
 0x431   : > { %4583 = vset.pattern.permute.xlu1 %v7503_v21  ;;  %7629 = vst [vmem:[#allocation40_spill] sm:$0xff] %v6545_v32  ;;  %v1138_v21 = vsub.f32 1.0, %v1114_v10  ;;  %v1634_v63 = vsub.f32 %v7631_v43, %v5310_v56  ;;  %v2542_v10 = vand.u32 2147483647, %v2518_v15  ;;  %v2519_v48 = vsub.f32 %v7632_v5, %v5529_v28 }
 0x432   : > { %2894 = vperm.xlu1 %4583, %v6392_v40   ;;  %v1241_v40 = vsub.f32 %v7630_v37, %v5330_v50  ;;  %v2520_v8 = vsub.f32 %v7632_v5, %v5532_v45  ;;  %v2521_v0 = vsub.f32 %v7632_v5, %v5535_v51  ;;  %v2564_v37 = vsub.f32 1.0, %v2540_v49 }
 0x433   : > { %v6571_v52 = vmax.f32 %v1138_v21, 0.0  ;;  %v2565_v32 = vsub.f32 1.0, %v2541_v6  ;;  %v1504_v20 = vsub.f32 %v7633_v26, %v5529_v28  ;;  %v1264_v43 = vand.u32 2147483647, %v1240_v54 }
 0x434   : > { %v1265_v15 = vand.u32 2147483647, %v1241_v40  ;;  %v1266_v36 = vand.u32 2147483647, %v1242_v53  ;;  %v1505_v31 = vsub.f32 %v7633_v26, %v5532_v45  ;;  %v1506_v57 = vsub.f32 %v7633_v26, %v5535_v51  ;;  %v6586_v26 = vpop.permute.xlu0 %2510 }
 0x435   : > { %v1656_v13 = vand.u32 2147483647, %v1632_v38  ;;  %v1657_v5 = vand.u32 2147483647, %v1633_v2  ;;  %v1658_v59 = vand.u32 2147483647, %v1634_v63  ;;  %v6580_v21 = vmul.f32 %v2340_v55, %v7634_v18 }
 0x436   : > { %v2543_v49 = vand.u32 2147483647, %v2519_v48  ;;  %v2544_v6 = vand.u32 2147483647, %v2520_v8  ;;  %v2545_v42 = vand.u32 2147483647, %v2521_v0 }
 0x437   : > { %7635 = vst [vmem:[#allocation41_spill] sm:$0xff] %v6580_v21  ;;  %v2566_v4 = vsub.f32 1.0, %v2542_v10  ;;  %v6582_v41 = vmax.f32 %v2564_v37, 0.0  ;;  %v6584_v54 = vmax.f32 %v2565_v32, 0.0  ;;  %v1528_v40 = vand.u32 2147483647, %v1504_v20  ;;  %v6590_v37 = vpop.permute.xlu1 %2638 }
 0x438   : > { %v1288_v53 = vsub.f32 1.0, %v1264_v43  ;;  %v1289_v29 = vsub.f32 1.0, %v1265_v15  ;;  %v1290_v34 = vsub.f32 1.0, %v1266_v36  ;;  %v1529_v11 = vand.u32 2147483647, %v1505_v31  ;;  %7636 = vst [vmem:[#allocation42_spill] sm:$0xff] %v6586_v26  ;;  %v6606_v21 = vpop.permute.xlu0 %2354 }
 0x439   : > { %v1530_v38 = vand.u32 2147483647, %v1506_v57  ;;  %v1680_v2 = vsub.f32 1.0, %v1656_v13  ;;  %v1681_v63 = vsub.f32 1.0, %v1657_v5  ;;  %v1682_v18 = vsub.f32 1.0, %v1658_v59  ;;  %v7637_v10 = vld [vmem:[#allocation49_spill] sm:$0xff] }
 0x43a   : > { %v2567_v55 = vsub.f32 1.0, %v2543_v49  ;;  %v2568_v48 = vsub.f32 1.0, %v2544_v6  ;;  %v2569_v8 = vsub.f32 1.0, %v2545_v42  ;;  %v2525_v0 = vsub.f32 %v7637_v10, %v5529_v28  ;;  %7638 = vst [vmem:[#allocation106_spill] sm:$0xff] %v6590_v37 }
 0x43b   : > { %v6592_v32 = vmax.f32 %v2566_v4, 0.0  ;;  %v2526_v36 = vsub.f32 %v7637_v10, %v5532_v45  ;;  %v2527_v31 = vsub.f32 %v7637_v10, %v5535_v51  ;;  %v1552_v57 = vsub.f32 1.0, %v1528_v40 }
 0x43c   : > { %v1312_v13 = vmax.f32 %v1288_v53, 0.0  ;;  %v1313_v20 = vmax.f32 %v1289_v29, 0.0  ;;  %v1314_v59 = vmax.f32 %v1290_v34, 0.0  ;;  %v1553_v43 = vsub.f32 1.0, %v1529_v11  ;;  %v7643_v11 = vld [vmem:[#allocation50_spill] sm:$0xff] }
 0x43d   : > { %v1704_v15 = vmax.f32 %v1680_v2, 0.0  ;;  %v1705_v42 = vmax.f32 %v1681_v63, 0.0  ;;  %v1706_v5 = vmax.f32 %v1682_v18, 0.0  ;;  %v1554_v49 = vsub.f32 1.0, %v1530_v38  ;;  %v7644_v2 = vld [vmem:[#allocation51_spill] sm:$0xff]  ;;  %v6622_v18 = vpop.permute.xlu1 %2766 }
 0x43e   : > { %v6598_v6 = vmax.f32 %v2567_v55, 0.0  ;;  %v6600_v26 = vmax.f32 %v2568_v48, 0.0  ;;  %v6602_v4 = vmax.f32 %v2569_v8, 0.0  ;;  %v6604_v37 = vand.u32 2147483647, %v2525_v0  ;;  %7645 = vst [vmem:[#allocation85_spill] sm:$0xff] %v6622_v18 }
 0x43f   : > { %v6608_v10 = vand.u32 2147483647, %v2526_v36  ;;  %v6610_v40 = vand.u32 2147483647, %v2527_v31  ;;  %v2781_v34 = vsub.f32 %v7643_v11, %v5327_v16  ;;  %v6614_v29 = vmax.f32 %v1552_v57, 0.0 }
 0x440   : > { %7639 = vst [vmem:[#allocation44_spill] sm:$0xff] %v6602_v4  ;;  %7640 = vst [vmem:[#allocation107_spill] sm:$0xff] %v6604_v37  ;;  %v2782_v53 = vsub.f32 %v7643_v11, %v5330_v50  ;;  %v2783_v38 = vsub.f32 %v7643_v11, %v5333_v1  ;;  %v2144_v63 = vsub.f32 %v7644_v2, %v5304_v46  ;;  %v6624_v55 = vmax.f32 %v1553_v43, 0.0  ;;  %v7651_v43 = vld [vmem:[#allocation68_spill] sm:$0xff] }
 0x441   : > { %7641 = vst [vmem:[#allocation108_spill] sm:$0xff] %v6608_v10  ;;  %7642 = vst [vmem:[#allocation160_spill] sm:$0xff] %v6610_v40  ;;  %v6626_v48 = vmax.f32 %v1554_v49, 0.0  ;;  %v6629_v8 = vmul.f32 %v6364_v47, %v1704_v15  ;;  %v6632_v0 = vmul.f32 %v6366_v35, %v1705_v42  ;;  %v6635_v36 = vmul.f32 %v6373_v58, %v1706_v5  ;;  %v7664_v40 = vld [vmem:[#allocation95_spill] sm:$0xff] }
 0x442   : > { %7646 = vst [vmem:[#allocation161_spill] sm:$0xff] %v6624_v55  ;;  %v2145_v31 = vsub.f32 %v7644_v2, %v5307_v62  ;;  %v2146_v57 = vsub.f32 %v7644_v2, %v5310_v56  ;;  %v2019_v11 = vsub.f32 %v7651_v43, %v5529_v28  ;;  %v6644_v49 = vmul.f32 %v1312_v13, %v6547_v17  ;;  %v7659_v17 = vld [vmem:[#allocation52_spill] sm:$0xff] }
 0x443   : > { %7647 = vst [vmem:[#allocation46_spill] sm:$0xff] %v6626_v48  ;;  %7648 = vst [vmem:[#allocation48_spill] sm:$0xff] %v6629_v8  ;;  %v6646_v47 = vand.u32 2147483647, %v2781_v34  ;;  %v2020_v35 = vsub.f32 %v7651_v43, %v5532_v45  ;;  %v6651_v58 = vmul.f32 %v1313_v20, %v6555_v12  ;;  %v6654_v15 = vmul.f32 %v1314_v59, %v6571_v52  ;;  %v6664_v34 = vpop.permute.xlu0 %2866  ;;  %v7660_v52 = vld [vmem:[#allocation80_spill] sm:$0xff]  ;;  %v7661_v59 = vld [vmem:[#allocation97_spill] sm:$0xff] }
 0x444   : > { %7649 = vst [vmem:[#allocation89_spill] sm:$0xff] %v6632_v0  ;;  %7650 = vst [vmem:[#allocation47_spill] sm:$0xff] %v6635_v36  ;;  %v6656_v42 = vand.u32 2147483647, %v2782_v53  ;;  %v6658_v5 = vand.u32 2147483647, %v2783_v38  ;;  %v2272_v13 = vsub.f32 %v7659_v17, %v5327_v16  ;;  %v2273_v56 = vsub.f32 %v7659_v17, %v5330_v50 }
 0x445   : > { %7652 = vst [vmem:[#allocation14_spill] sm:$0xff] %v6644_v49  ;;  %7653 = vst [vmem:[#allocation49_spill] sm:$0xff] %v6646_v47  ;;  %v6660_v2 = vand.u32 2147483647, %v2144_v63  ;;  %v2021_v12 = vsub.f32 %v7651_v43, %v5535_v51  ;;  %v2531_v20 = vsub.f32 %v7660_v52, %v5529_v28  ;;  %v6673_v38 = vand.u32 2147483647, %v2145_v31 }
 0x446   : > { %7654 = vst [vmem:[#allocation50_spill] sm:$0xff] %v6651_v58  ;;  %7655 = vst [vmem:[#allocation51_spill] sm:$0xff] %v6654_v15  ;;  %v6675_v63 = vand.u32 2147483647, %v2146_v57  ;;  %v2043_v62 = vand.u32 2147483647, %v2019_v11  ;;  %v2532_v50 = vsub.f32 %v7660_v52, %v5532_v45  ;;  %v2274_v31 = vsub.f32 %v7659_v17, %v5333_v1 }
 0x447   : > { %7656 = vst [vmem:[#allocation68_spill] sm:$0xff] %v6656_v42  ;;  %7657 = vst [vmem:[#allocation178_spill] sm:$0xff] %v6658_v5  ;;  %v7662_v16 = vld [vmem:[#allocation131_spill] sm:$0xff]  ;;  %v2044_v4 = vand.u32 2147483647, %v2020_v35  ;;  %v7666_v11 = vld [vmem:[#allocation96_spill] sm:$0xff]  ;;  %v2533_v35 = vsub.f32 %v7660_v52, %v5535_v51 }
 0x448   : > { %7658 = vst [vmem:[#allocation179_spill] sm:$0xff] %v6660_v2  ;;  %v6679_v46 = vmul.f32 %v6525_v27, %v7662_v16  ;;  %v6688_v57 = vand.u32 2147483647, %v2272_v13  ;;  %v6693_v16 = vand.u32 2147483647, %v2273_v56  ;;  %v7669_v17 = vld [vmem:[#allocation99_spill] sm:$0xff] }
 0x449   : > { %v1329_v18 = vpop.permute.xlu1 %1328  ;;  %v2045_v27 = vand.u32 2147483647, %v2021_v12  ;;  %v7670_v1 = vld [vmem:[#allocation102_spill] sm:$0xff]  ;;  %v2556_v47 = vand.u32 2147483647, %v2532_v50  ;;  %v7703_v49 = vld [vmem:[#allocation113_spill] sm:$0xff] }
 0x44a   : > { %v1366_v53 = vmul.f32 %v1329_v18, %v7661_v59  ;;  %7663 = vst [vmem:[#allocation52_spill] sm:$0xff] %v6679_v46  ;;  %v1364_v43 = vmul.f32 %v1329_v18, %v7664_v40  ;;  %7665 = vst [vmem:[#allocation80_spill] sm:$0xff] %v6688_v57  ;;  %v1365_v59 = vmul.f32 %v1329_v18, %v7666_v11  ;;  %v2555_v40 = vand.u32 2147483647, %v2531_v20  ;;  %v7705_v36 = vld [vmem:[#allocation24_spill] sm:$0xff] }
 0x44b   : > { %7667 = vst [vmem:[#allocation97_spill] sm:$0xff] %v6693_v16  ;;  %v2067_v18 = vsub.f32 1.0, %v2043_v62  ;;  %v2068_v11 = vsub.f32 1.0, %v2044_v4  ;;  %v2557_v58 = vand.u32 2147483647, %v2533_v35  ;;  %v7719_v16 = vld [vmem:[#allocation38_spill] sm:$0xff] }
 0x44c   : > { %v1414_v10 = vmul.f32 %v6265_v9, %v1366_v53  ;;  %v2530_v9 = vsub.f32 %v6569_v60, %v5535_v51  ;;  %v7668_v53 = vld [vmem:[#allocation98_spill] sm:$0xff]  ;;  %v1412_v56 = vmul.f32 %v6255_v25, %v1364_v43  ;;  %v1413_v12 = vmul.f32 %v6262_v19, %v1365_v59  ;;  %v7671_v43 = vld [vmem:[#allocation104_spill] sm:$0xff]  ;;  %v7696_v19 = vld [vmem:[#allocation101_spill] sm:$0xff] }
 0x44d   : > { %v6691_v5 = vpop.permute.xlu0 %1338  ;;  %v6707_v51 = vand.u32 2147483647, %v2274_v31  ;;  %v2580_v59 = vsub.f32 1.0, %v2556_v47  ;;  %v6717_v31 = vmax.f32 %v2068_v11, 0.0  ;;  %v7674_v11 = vld [vmem:[#allocation119_spill] sm:$0xff] }
 0x44e   : > { %v1847_v46 = vpop.permute.xlu1 %1846  ;;  %v2554_v62 = vand.u32 2147483647, %v2530_v9  ;;  %v2581_v9 = vsub.f32 1.0, %v2557_v58 }
 0x44f   : > { %v1876_v37 = vmul.f32 %v1847_v46, %v7668_v53  ;;  %v1877_v13 = vmul.f32 %v1847_v46, %v7669_v17  ;;  %v1878_v42 = vmul.f32 %v1847_v46, %v7670_v1  ;;  %v2069_v53 = vsub.f32 1.0, %v2045_v27  ;;  %v7673_v27 = vld [vmem:[#allocation109_spill] sm:$0xff] }
 0x450   : > { %v2579_v46 = vsub.f32 1.0, %v2555_v40  ;;  %v2528_v40 = vsub.f32 %v6569_v60, %v5529_v28 }
 0x451   : > { %v1924_v52 = vmul.f32 %v6353_v24, %v1876_v37  ;;  %v1925_v20 = vmul.f32 %v6357_v22, %v1877_v13  ;;  %v1926_v15 = vmul.f32 %v6360_v7, %v1878_v42  ;;  %v7672_v37 = vld [vmem:[#allocation105_spill] sm:$0xff]  ;;  %v6715_v42 = vmax.f32 %v2067_v18, 0.0  ;;  %v7692_v7 = vld [vmem:[#allocation34_spill] sm:$0xff] }
 0x452   : > { %v6709_v17 = vpop.permute.xlu0 %2366  ;;  %v6724_v13 = vmax.f32 %v2069_v53, 0.0  ;;  %v6727_v18 = vmax.f32 %v2579_v46, 0.0 }
 0x453   : > { %v1948_v1 = vadd.f32 %v1924_v52, %v1412_v56  ;;  %v1949_v50 = vadd.f32 %v1925_v20, %v1413_v12  ;;  %v1950_v4 = vadd.f32 %v1926_v15, %v1414_v10  ;;  %v2359_v25 = vpop.permute.xlu1 %2358  ;;  %v2578_v56 = vsub.f32 1.0, %v2554_v62  ;;  %v7675_v20 = vld [vmem:[#allocation120_spill] sm:$0xff] }
 0x454   : > { %v2388_v24 = vmul.f32 %v2359_v25, %v7671_v43  ;;  %v2389_v22 = vmul.f32 %v2359_v25, %v7672_v37  ;;  %v2390_v35 = vmul.f32 %v2359_v25, %v7673_v27  ;;  %v2385_v52 = vmul.f32 %v6606_v21, %v7674_v11 }
 0x455   : > { %v2386_v25 = vmul.f32 %v6606_v21, %v7675_v20  ;;  %v6740_v62 = vand.u32 2147483647, %v2528_v40  ;;  %v2602_v27 = vmax.f32 %v2578_v56, 0.0  ;;  %v7680_v40 = vld [vmem:[#allocation125_spill] sm:$0xff]  ;;  %v7682_v56 = vld [vmem:[#allocation127_spill] sm:$0xff] }
 0x456   : > { %v2436_v10 = vmul.f32 %v6496_v30, %v2388_v24  ;;  %v2437_v15 = vmul.f32 %v6506_v3, %v2389_v22  ;;  %v2438_v47 = vmul.f32 %v6509_v14, %v2390_v35  ;;  %v6733_v30 = vmax.f32 %v2580_v59, 0.0  ;;  %v7676_v35 = vld [vmem:[#allocation132_spill] sm:$0xff]  ;;  %v7677_v59 = vld [vmem:[#allocation133_spill] sm:$0xff] }
 0x457   : > { %v2879_v12 = vpop.permute.xlu0 %2878  ;;  %v6742_v24 = vmax.f32 %v2581_v9, 0.0  ;;  %v6751_v11 = vmul.f32 %v6469_v23, %v2386_v25  ;;  %v2897_v9 = vmul.f32 %v6664_v34, %v7680_v40  ;;  %v7686_v23 = vld [vmem:[#allocation148_spill] sm:$0xff] }
 0x458   : > { %v2871_v43 = vpop.permute.xlu1 %2870  ;;  %v2461_v37 = vadd.f32 %v2437_v15, %v1949_v50  ;;  %v2462_v3 = vadd.f32 %v2438_v47, %v1950_v4  ;;  %v2460_v22 = vadd.f32 %v2436_v10, %v1948_v1  ;;  %v7678_v4 = vld [vmem:[#allocation10_spill] sm:$0xff] }
 0x459   : > { %v2900_v58 = vmul.f32 %v2871_v43, %v6582_v41  ;;  %v2901_v53 = vmul.f32 %v2871_v43, %v6584_v54  ;;  %v2902_v14 = vmul.f32 %v2871_v43, %v6592_v32  ;;  %v7679_v41 = vld [vmem:[#allocation121_spill] sm:$0xff]  ;;  %v2433_v32 = vmul.f32 %v6466_v33, %v2385_v52  ;;  %v7681_v1 = vld [vmem:[#allocation126_spill] sm:$0xff]  ;;  %v7685_v33 = vld [vmem:[#allocation147_spill] sm:$0xff] }
 0x45a   : > { %v2387_v54 = vmul.f32 %v6606_v21, %v7679_v41  ;;  %v2898_v10 = vmul.f32 %v6664_v34, %v7681_v1  ;;  %v2899_v43 = vmul.f32 %v6664_v34, %v7682_v56  ;;  %v7688_v41 = vld [vmem:[#allocation151_spill] sm:$0xff]  ;;  %v7689_v1 = vld [vmem:[#allocation12_spill] sm:$0xff]  ;;  %v7690_v56 = vld [vmem:[#allocation158_spill] sm:$0xff] }
 0x45b   : > { %v2948_v50 = vmul.f32 %v7676_v35, %v2900_v58  ;;  %v2949_v15 = vmul.f32 %v7677_v59, %v2901_v53  ;;  %v2950_v47 = vmul.f32 %v7678_v4, %v2902_v14  ;;  %v7683_v58 = vld [vmem:[#allocation150_spill] sm:$0xff]  ;;  %v7687_v35 = vld [vmem:[#allocation8_spill] sm:$0xff]  ;;  %v1371_v40 = vmul.f32 %v6691_v5, %v7688_v41 }
 0x45c   : > { %v1851_v20 = vpop.permute.xlu0 %1850  ;;  %v1370_v53 = vmul.f32 %v6691_v5, %v7683_v58  ;;  %v1372_v34 = vmul.f32 %v6691_v5, %v7689_v1  ;;  %v2394_v58 = vmul.f32 %v6709_v17, %v7690_v56  ;;  %v2435_v41 = vmul.f32 %v6475_v61, %v2387_v54  ;;  %v7694_v1 = vld [vmem:[#allocation13_spill] sm:$0xff] }
 0x45d   : > { %v6761_v14 = vadd.f32 %v2950_v47, %v2462_v3  ;;  %v1324_v21 = vpop.permute.xlu1 %1323  ;;  %v6766_v4 = vadd.f32 %v2949_v15, %v2461_v37  ;;  %v6774_v3 = vadd.f32 %v2948_v50, %v2460_v22  ;;  %v7691_v47 = vld [vmem:[#allocation159_spill] sm:$0xff]  ;;  %v2945_v5 = vmul.f32 %v6385_v39, %v2897_v9  ;;  %v7695_v22 = vld [vmem:[#allocation17_spill] sm:$0xff]  ;;  %v7702_v39 = vld [vmem:[#allocation170_spill] sm:$0xff] }
 0x45e   : > { %v1361_v52 = vmul.f32 %v1324_v21, %v7685_v33  ;;  %v1362_v25 = vmul.f32 %v1324_v21, %v7686_v23  ;;  %v1363_v59 = vmul.f32 %v1324_v21, %v7687_v35  ;;  %v2395_v33 = vmul.f32 %v6709_v17, %v7691_v47  ;;  %v7693_v37 = vld [vmem:[#allocation35_spill] sm:$0xff]  ;;  %v7701_v61 = vld [vmem:[#allocation153_spill] sm:$0xff] }
 0x45f   : > { %7684 = vst [vmem:[#allocation131_spill] sm:$0xff] %v6761_v14  ;;  %v2396_v56 = vmul.f32 %v6709_v17, %v7694_v1  ;;  %v2906_v50 = vmul.f32 %v2879_v12, %v7695_v22  ;;  %v2946_v46 = vmul.f32 %v7696_v19, %v2898_v10  ;;  %v7697_v47 = vld [vmem:[#allocation103_spill] sm:$0xff]  ;;  %v1420_v54 = vmul.f32 %v7701_v61, %v1372_v34  ;;  %v7704_v1 = vld [vmem:[#allocation29_spill] sm:$0xff]  ;;  %v7706_v10 = vld [vmem:[#allocation114_spill] sm:$0xff] }
 0x460   : > { %v1409_v23 = vmul.f32 %v6238_v44, %v1361_v52  ;;  %v1410_v21 = vmul.f32 %v7692_v7, %v1362_v25  ;;  %v1411_v15 = vmul.f32 %v7693_v37, %v1363_v59  ;;  %v6781_v35 = vpop.permute.xlu0 %1862  ;;  %v6790_v14 = vmul.f32 %v7697_v47, %v2899_v43  ;;  %v7698_v44 = vld [vmem:[#allocation152_spill] sm:$0xff]  ;;  %v7699_v52 = vld [vmem:[#allocation162_spill] sm:$0xff]  ;;  %v7700_v37 = vld [vmem:[#allocation31_spill] sm:$0xff] }
 0x461   : > { %v1418_v7 = vmul.f32 %v7698_v44, %v1370_v53  ;;  %v2907_v25 = vmul.f32 %v2879_v12, %v7699_v52  ;;  %v1419_v28 = vmul.f32 %v7700_v37, %v1371_v40  ;;  %v2442_v9 = vmul.f32 %v7702_v39, %v2394_v58  ;;  %v7707_v47 = vld [vmem:[#allocation116_spill] sm:$0xff]  ;;  %v7708_v53 = vld [vmem:[#allocation41_spill] sm:$0xff]  ;;  %v7709_v52 = vld [vmem:[#allocation163_spill] sm:$0xff] }
 0x462   : > { %v1843_v59 = vpop.permute.xlu1 %1842  ;;  %v2443_v22 = vmul.f32 %v7704_v1, %v2395_v33  ;;  %v1879_v19 = vmul.f32 %v1851_v20, %v7705_v36  ;;  %v6803_v44 = vmul.f32 %v7708_v53, %v2396_v56  ;;  %v6806_v8 = vmul.f32 %v2879_v12, %v7709_v52  ;;  %v7710_v40 = vld [vmem:[#allocation59_spill] sm:$0xff]  ;;  %v7711_v58 = vld [vmem:[#allocation28_spill] sm:$0xff]  ;;  %v7713_v33 = vld [vmem:[#allocation110_spill] sm:$0xff] }
 0x463   : > { %v1873_v17 = vmul.f32 %v1843_v59, %v7703_v49  ;;  %v1874_v43 = vmul.f32 %v1843_v59, %v7706_v10  ;;  %v1875_v0 = vmul.f32 %v1843_v59, %v7707_v47  ;;  %v6809_v34 = vmul.f32 %v7710_v40, %v2906_v50  ;;  %v7714_v36 = vld [vmem:[#allocation25_spill] sm:$0xff]  ;;  %v7716_v59 = vld [vmem:[#allocation154_spill] sm:$0xff]  ;;  %v7717_v52 = vld [vmem:[#allocation155_spill] sm:$0xff] }
 0x464   : > { %v2955_v61 = vmul.f32 %v7713_v33, %v2907_v25  ;;  %v1880_v39 = vmul.f32 %v1851_v20, %v7714_v36  ;;  %v7715_v1 = vld [vmem:[#allocation33_spill] sm:$0xff]  ;;  %v7718_v50 = vld [vmem:[#allocation156_spill] sm:$0xff]  ;;  %v7721_v36 = vld [vmem:[#allocation63_spill] sm:$0xff] }
 0x465   : > { %v1921_v37 = vmul.f32 %v7711_v58, %v1873_v17  ;;  %v6812_v49 = vpop.permute.xlu0 %2886  ;;  %v1922_v10 = vmul.f32 %v7715_v1, %v1874_v43  ;;  %v1923_v47 = vmul.f32 %v7716_v59, %v1875_v0  ;;  %v1881_v17 = vmul.f32 %v1851_v20, %v7719_v16  ;;  %v7720_v58 = vld [vmem:[#allocation117_spill] sm:$0xff]  ;;  %v7723_v1 = vld [vmem:[#allocation30_spill] sm:$0xff]  ;;  %v7725_v59 = vld [vmem:[#allocation39_spill] sm:$0xff] }
 0x466   : > { %7712 = vst [vmem:[#allocation95_spill] sm:$0xff] %v6812_v49  ;;  %v1855_v56 = vpop.permute.xlu1 %1854  ;;  %v2914_v12 = vmul.f32 %v6812_v49, %v2602_v27  ;;  %v1927_v57 = vmul.f32 %v7720_v58, %v1879_v19  ;;  %v7722_v43 = vld [vmem:[#allocation157_spill] sm:$0xff]  ;;  %v7726_v19 = vld [vmem:[#allocation16_spill] sm:$0xff] }
 0x467   : > { %v1945_v53 = vadd.f32 %v1921_v37, %v1409_v23  ;;  %v1882_v48 = vmul.f32 %v1855_v56, %v7717_v52  ;;  %v1883_v40 = vmul.f32 %v1855_v56, %v7718_v50  ;;  %v1946_v2 = vadd.f32 %v1922_v10, %v1410_v21  ;;  %v7724_v37 = vld [vmem:[#allocation118_spill] sm:$0xff]  ;;  %v7729_v58 = vld [vmem:[#allocation73_spill] sm:$0xff] }
 0x468   : > { %v1947_v25 = vadd.f32 %v1923_v47, %v1411_v15  ;;  %v6824_v55 = vmul.f32 %v7721_v36, %v2914_v12  ;;  %v1884_v0 = vmul.f32 %v1855_v56, %v7722_v43  ;;  %v1928_v27 = vmul.f32 %v7724_v37, %v1880_v39  ;;  %v7728_v12 = vld [vmem:[#allocation128_spill] sm:$0xff]  ;;  %v7735_v43 = vld [vmem:[#allocation26_spill] sm:$0xff] }
 0x469   : > { %v2457_v33 = vadd.f32 %v2433_v32, %v1945_v53  ;;  %v1930_v23 = vmul.f32 %v7723_v1, %v1882_v48  ;;  %v1931_v52 = vmul.f32 %v7725_v59, %v1883_v40  ;;  %v2458_v50 = vadd.f32 %v6751_v11, %v1946_v2  ;;  %v7727_v53 = vld [vmem:[#allocation21_spill] sm:$0xff]  ;;  %v7730_v2 = vld [vmem:[#allocation166_spill] sm:$0xff]  ;;  %v7736_v37 = vld [vmem:[#allocation36_spill] sm:$0xff] }
 0x46a   : > { %v2379_v49 = vpop.permute.xlu0 %2378  ;;  %v2459_v16 = vadd.f32 %v2435_v41, %v1947_v25  ;;  %v1932_v21 = vmul.f32 %v7726_v19, %v1884_v0  ;;  %v1929_v40 = vmul.f32 %v7728_v12, %v1881_v17  ;;  %v7731_v41 = vld [vmem:[#allocation167_spill] sm:$0xff] }
 0x46b   : > { %v2969_v20 = vadd.f32 %v2945_v5, %v2457_v33  ;;  %v1954_v15 = vadd.f32 %v1930_v23, %v1418_v7  ;;  %v2403_v32 = vmul.f32 %v2379_v49, %v6715_v42  ;;  %v1334_v10 = vpop.permute.xlu1 %1333  ;;  %v1955_v47 = vadd.f32 %v1931_v52, %v1419_v28  ;;  %v7732_v7 = vld [vmem:[#allocation74_spill] sm:$0xff]  ;;  %v7733_v42 = vld [vmem:[#allocation75_spill] sm:$0xff] }
 0x46c   : > { %v2404_v56 = vmul.f32 %v2379_v49, %v6717_v31  ;;  %v2405_v48 = vmul.f32 %v2379_v49, %v6724_v13  ;;  %v1367_v39 = vmul.f32 %v1334_v10, %v7727_v53  ;;  %v1368_v11 = vmul.f32 %v1334_v10, %v7730_v2  ;;  %v7734_v31 = vld [vmem:[#allocation23_spill] sm:$0xff] }
 0x46d   : > { %v6838_v36 = vmul.f32 %v7729_v58, %v2403_v32  ;;  %v1369_v5 = vmul.f32 %v1334_v10, %v7731_v41  ;;  %v2970_v13 = vadd.f32 %v2946_v46, %v2458_v50  ;;  %v1956_v49 = vadd.f32 %v1932_v21, %v1420_v54  ;;  %v7737_v46 = vld [vmem:[#allocation142_spill] sm:$0xff]  ;;  %v7738_v50 = vld [vmem:[#allocation7_spill] sm:$0xff] }
 0x46e   : > { %v6843_v25 = vmul.f32 %v7732_v7, %v2404_v56  ;;  %v6846_v28 = vmul.f32 %v7733_v42, %v2405_v48  ;;  %v1415_v33 = vmul.f32 %v7734_v31, %v1367_v39  ;;  %v1416_v0 = vmul.f32 %v7735_v43, %v1368_v11  ;;  %v7746_v11 = vld [vmem:[#allocation130_spill] sm:$0xff] }
 0x46f   : > { %v2891_v17 = vpop.permute.xlu0 %2890  ;;  %v2467_v1 = vadd.f32 %v2443_v22, %v1955_v47  ;;  %v2466_v23 = vadd.f32 %v2442_v9, %v1954_v15  ;;  %v1417_v59 = vmul.f32 %v7736_v37, %v1369_v5  ;;  %3518 = vmatprep.mubr.f32.mxu0 %v2970_v13  ;;  %v7739_v9 = vld [vmem:[#allocation86_spill] sm:$0xff]  ;;  %v7740_v15 = vld [vmem:[#allocation87_spill] sm:$0xff]  ;;  %v7747_v5 = vld [vmem:[#allocation100_spill] sm:$0xff]  ;;  %v6876_v7 = vadd.f32 %v6790_v14, %v2459_v16 }
 0x470   : > { %v2915_v52 = vmul.f32 %v2891_v17, %v6727_v18  ;;  %v2916_v19 = vmul.f32 %v2891_v17, %v6733_v30  ;;  %v2917_v32 = vmul.f32 %v2891_v17, %v6742_v24  ;;  %v2363_v10 = vpop.permute.xlu1 %2362  ;;  %v1951_v56 = vadd.f32 %v1927_v57, %v1415_v33  ;;  %3519 = vmatmul.mubr.f32.vlgmr.msra.gmra.mrb[8].mxu0 %v2969_v20  ;;  %v7741_v18 = vld [vmem:[#allocation88_spill] sm:$0xff]  ;;  %v7742_v24 = vld [vmem:[#allocation143_spill] sm:$0xff]  ;;  %v7744_v20 = vld [vmem:[#allocation129_spill] sm:$0xff] }
 0x471   : > { %v1952_v48 = vadd.f32 %v1928_v27, %v1416_v0  ;;  %v2391_v54 = vmul.f32 %v2363_v10, %v7737_v46  ;;  %v2392_v21 = vmul.f32 %v2363_v10, %v7738_v50  ;;  %3523 = vmatprep.mubr.f32.mxu0 %v6766_v4  ;;  %v2393_v53 = vmul.f32 %v2363_v10, %v7742_v24  ;;  %v7743_v57 = vld [vmem:[#allocation111_spill] sm:$0xff]  ;;  %v7748_v33 = vld [vmem:[#allocation60_spill] sm:$0xff]  ;;  %v7758_v10 = vld [vmem:[#allocation97_spill] sm:$0xff] }
 0x472   : > { %v6858_v22 = vmul.f32 %v7739_v9, %v2915_v52  ;;  %v6861_v47 = vmul.f32 %v7740_v15, %v2916_v19  ;;  %v6864_v30 = vmul.f32 %v7741_v18, %v2917_v32  ;;  %v2979_v12 = vadd.f32 %v2955_v61, %v2467_v1  ;;  %v7745_v4 = vld [vmem:[#allocation115_spill] sm:$0xff]  ;;  %v7752_v37 = vld [vmem:[#allocation112_spill] sm:$0xff]  ;;  %v7760_v46 = vld [vmem:[#allocation46_spill] sm:$0xff] }
 0x473   : > { %v2439_v27 = vmul.f32 %v7743_v57, %v2391_v54  ;;  %v2440_v39 = vmul.f32 %v7744_v20, %v2392_v21  ;;  %v6870_v58 = vadd.f32 %v6809_v34, %v2466_v23  ;;  %4387 = vmatpush3.bf16.msra.mxu0 %v7745_v4  ;;  %v1953_v2 = vadd.f32 %v1929_v40, %v1417_v59  ;;  %v7753_v59 = vld [vmem:[#allocation45_spill] sm:$0xff]  ;;  %v7763_v20 = vld [vmem:[#allocation11_spill] sm:$0xff] }
 0x474   : > { %v2441_v41 = vmul.f32 %v7746_v11, %v2393_v53  ;;  %4389 = vmatprep.subr.bf16.mxu0 %v7747_v5  ;;  %v2468_v42 = vadd.f32 %v6803_v44, %v1956_v49  ;;  %v2322_v31 = vsub.f32 1.0, %v6707_v51  ;;  %v2956_v61 = vmul.f32 %v7748_v33, %v6806_v8  ;;  %3524 = vmatmul.mubr.f32.gmra.mrb[10].mxu0 %v6774_v3  ;;  %v7750_v49 = vld [vmem:[#allocation161_spill] sm:$0xff]  ;;  %v7764_v11 = vld [vmem:[#allocation48_spill] sm:$0xff] }
 0x475   : > { %v6883_v34 = vpop.permute.xlu1 %2874  ;;  %v2464_v13 = vadd.f32 %v2440_v39, %v1952_v48  ;;  %v2463_v40 = vadd.f32 %v2439_v27, %v1951_v56  ;;  %v7749_v43 = vsub.f32 %v6569_v60, %v5532_v45  ;;  %v2193_v8 = vsub.f32 1.0, %v6673_v38  ;;  %v7754_v38 = vld [vmem:[#allocation179_spill] sm:$0xff]  ;;  %v7761_v24 = vld [vmem:[#allocation149_spill] sm:$0xff] }
 0x476   : > { %v6888_v17 = vadd.f32 %v2441_v41, %v1953_v2  ;;  %v2903_v14 = vmul.f32 %v6883_v34, %v6598_v6  ;;  %v2904_v51 = vmul.f32 %v6883_v34, %v6600_v26  ;;  %v2194_v3 = vsub.f32 1.0, %v6675_v63  ;;  %v7751_v6 = vld [vmem:[#allocation165_spill] sm:$0xff] }
 0x477   : > { %v2553_v0 = vand.u32 2147483647, %v7749_v43  ;;  %v2576_v44 = vsub.f32 1.0, %v6740_v62  ;;  %4391 = vmatpush3.bf16.msra.mxu0 %v7747_v5  ;;  %v6898_v16 = vadd.f32 %v2956_v61, %v2468_v42  ;;  %v1888_v60 = vmul.f32 %v6781_v35, %v6614_v29  ;;  %v7756_v62 = vld [vmem:[#allocation80_spill] sm:$0xff]  ;;  %v7762_v57 = vld [vmem:[#allocation9_spill] sm:$0xff]  ;;  %v7768_v61 = vld [vmem:[#allocation14_spill] sm:$0xff] }
 0x478   : > { %v1889_v1 = vmul.f32 %v6781_v35, %v7750_v49  ;;  %v2951_v23 = vmul.f32 %v7751_v6, %v2903_v14  ;;  %v2952_v26 = vmul.f32 %v7752_v37, %v2904_v51  ;;  %4393 = vmatprep.subr.bf16.mxu0 %v7753_v59  ;;  %v7755_v63 = vsub.f32 1.0, %v7754_v38  ;;  %v7765_v5 = vld [vmem:[#allocation89_spill] sm:$0xff]  ;;  %v7766_v42 = vld [vmem:[#allocation164_spill] sm:$0xff] }
 0x479   : > { %v7757_v19 = vsub.f32 1.0, %v7756_v62  ;;  %v7759_v56 = vsub.f32 1.0, %v7758_v10  ;;  %v1890_v29 = vmul.f32 %v6781_v35, %v7760_v46  ;;  %v2346_v54 = vmax.f32 %v2322_v31, 0.0  ;;  %v7767_v31 = vld [vmem:[#allocation47_spill] sm:$0xff] }
 0x47a   : > { %v2216_v52 = vmax.f32 %v7755_v63, 0.0  ;;  %v2577_v50 = vsub.f32 1.0, %v2553_v0  ;;  %v1349_v21 = vpop.permute.xlu1 %1348  ;;  %v2976_v9 = vadd.f32 %v2952_v26, %v2464_v13  ;;  %v2975_v15 = vadd.f32 %v2951_v23, %v2463_v40  ;;  %v7769_v40 = vld [vmem:[#allocation50_spill] sm:$0xff]  ;;  %v7770_v0 = vld [vmem:[#allocation51_spill] sm:$0xff]  ;;  %v7773_v63 = vld [vmem:[#allocation145_spill] sm:$0xff] }
 0x47b   : > { %v2344_v32 = vmax.f32 %v7757_v19, 0.0  ;;  %v2345_v48 = vmax.f32 %v7759_v56, 0.0  ;;  %v2217_v18 = vmax.f32 %v2193_v8, 0.0  ;;  %v1376_v53 = vmul.f32 %v1349_v21, %v7761_v24  ;;  %4395 = vmatpush3.bf16.msra.mxu0 %v7753_v59  ;;  %v7772_v59 = vld [vmem:[#allocation144_spill] sm:$0xff]  ;;  %v7774_v19 = vld [vmem:[#allocation146_spill] sm:$0xff]  ;;  %v7778_v46 = vld [vmem:[#allocation15_spill] sm:$0xff] }
 0x47c   : > { %v1377_v27 = vmul.f32 %v1349_v21, %v7762_v57  ;;  %v1378_v39 = vmul.f32 %v1349_v21, %v7763_v20  ;;  %v2218_v4 = vmax.f32 %v2194_v3, 0.0  ;;  %v2600_v2 = vmax.f32 %v2576_v44, 0.0  ;;  %3528 = vmatprep.mubr.f32.mxu0 %v2976_v9  ;;  %4397 = vmatprep.subr.bf16.mxu0 %v7766_v42  ;;  %v7781_v24 = vld [vmem:[#allocation168_spill] sm:$0xff] }
 0x47d   : > { %v1936_v41 = vmul.f32 %v7764_v11, %v1888_v60  ;;  %v1937_v35 = vmul.f32 %v7765_v5, %v1889_v1  ;;  %v1938_v33 = vmul.f32 %v7767_v31, %v1890_v29  ;;  %v1424_v13 = vmul.f32 %v7768_v61, %v1376_v53  ;;  %3529 = vmatmul.mubr.f32.gmra.mrb[12].mxu0 %v2975_v15  ;;  %v7771_v60 = vld [vmem:[#allocation95_spill] sm:$0xff]  ;;  %v7782_v53 = vld [vmem:[#allocation20_spill] sm:$0xff] }
 0x47e   : > { %v1425_v43 = vmul.f32 %v7769_v40, %v1377_v27  ;;  %v1426_v14 = vmul.f32 %v7770_v0, %v1378_v39  ;;  %v2601_v51 = vmax.f32 %v2577_v50, 0.0  ;;  %3533 = vmatprep.mubr.f32.mxu0 %v2979_v12  ;;  %v2424_v8 = vmul.f32 %v2344_v32, %v2216_v52  ;;  %v7775_v12 = vld [vmem:[#allocation49_spill] sm:$0xff]  ;;  %v7776_v32 = vld [vmem:[#allocation68_spill] sm:$0xff]  ;;  %v7780_v50 = vld [vmem:[#allocation171_spill] sm:$0xff] }
 0x47f   : > { %v2425_v3 = vmul.f32 %v2345_v48, %v2217_v18  ;;  %v2426_v44 = vmul.f32 %v2346_v54, %v2218_v4  ;;  %v2912_v49 = vmul.f32 %v7771_v60, %v2600_v2  ;;  %v1960_v1 = vadd.f32 %v1936_v41, %v1424_v13  ;;  %v2375_v37 = vpop.permute.xlu1 %2374  ;;  %4399 = vmatpush3.bf16.msra.mxu0 %v7766_v42  ;;  %v7777_v48 = vld [vmem:[#allocation134_spill] sm:$0xff]  ;;  %v7779_v54 = vld [vmem:[#allocation135_spill] sm:$0xff]  ;;  %v7784_v39 = vld [vmem:[#allocation61_spill] sm:$0xff] }
 0x480   : > { %v1961_v6 = vadd.f32 %v1937_v35, %v1425_v43  ;;  %v1962_v23 = vadd.f32 %v1938_v33, %v1426_v14  ;;  %v2913_v26 = vmul.f32 %v7771_v60, %v2601_v51  ;;  %v2400_v38 = vmul.f32 %v2375_v37, %v7772_v59  ;;  %v7783_v27 = vld [vmem:[#allocation178_spill] sm:$0xff]  ;;  %v7785_v2 = vld [vmem:[#allocation37_spill] sm:$0xff]  ;;  %v7787_v41 = vld [vmem:[#allocation27_spill] sm:$0xff] }
 0x481   : > { %v2401_v62 = vmul.f32 %v2375_v37, %v7773_v63  ;;  %v2402_v10 = vmul.f32 %v2375_v37, %v7774_v19  ;;  %v2829_v52 = vsub.f32 1.0, %v7775_v12  ;;  %v2830_v56 = vsub.f32 1.0, %v7776_v32  ;;  %3534 = vmatmul.mubr.f32.gmra.mrb[14].mxu0 %v6870_v58  ;;  %v7786_v58 = vld [vmem:[#allocation122_spill] sm:$0xff]  ;;  %v7788_v5 = vld [vmem:[#allocation123_spill] sm:$0xff]  ;;  %v7790_v14 = vld [vmem:[#allocation93_spill] sm:$0xff] }
 0x482   : > { %v6937_v29 = vmul.f32 %v7778_v46, %v7777_v48  ;;  %v6941_v21 = vmul.f32 %v7780_v50, %v7779_v54  ;;  %v2448_v9 = vmul.f32 %v2424_v8, %v2400_v38  ;;  %v1909_v57 = vmul.f32 %v7782_v53, %v7781_v24  ;;  %v7789_v42 = vld [vmem:[#allocation62_spill] sm:$0xff]  ;;  %v7791_v51 = vld [vmem:[#allocation72_spill] sm:$0xff]  ;;  %v7800_v48 = vld [vmem:[#allocation3_spill] sm:$0xff] }
 0x483   : > { %v2449_v15 = vmul.f32 %v2425_v3, %v2401_v62  ;;  %v2450_v18 = vmul.f32 %v2426_v44, %v2402_v10  ;;  %v2831_v20 = vsub.f32 1.0, %v7783_v27  ;;  %v2960_v4 = vmul.f32 %v7784_v39, %v2912_v49  ;;  %v7792_v3 = vld [vmem:[#allocation5_spill] sm:$0xff]  ;;  %v7795_v38 = vld [vmem:[#allocation108_spill] sm:$0xff]  ;;  %v7797_v10 = vld [vmem:[#allocation94_spill] sm:$0xff] }
 0x484   : > { %v1910_v11 = vmul.f32 %v7786_v58, %v7785_v2  ;;  %v1911_v35 = vmul.f32 %v7788_v5, %v7787_v41  ;;  %v2961_v31 = vmul.f32 %v7789_v42, %v2913_v26  ;;  %v1344_v61 = vpop.permute.xlu1 %1343  ;;  %v2472_v40 = vadd.f32 %v2448_v9, %v1960_v1  ;;  %v7794_v1 = vld [vmem:[#allocation107_spill] sm:$0xff]  ;;  %v7796_v62 = vld [vmem:[#allocation160_spill] sm:$0xff]  ;;  %v7801_v46 = vld [vmem:[#allocation18_spill] sm:$0xff] }
 0x485   : > { %v2474_v33 = vadd.f32 %v2450_v18, %v1962_v23  ;;  %v2473_v13 = vadd.f32 %v2449_v15, %v1961_v6  ;;  %v2853_v43 = vmax.f32 %v2829_v52, 0.0  ;;  %v2854_v0 = vmax.f32 %v2830_v56, 0.0  ;;  %v7798_v52 = vld [vmem:[#allocation176_spill] sm:$0xff]  ;;  %v7802_v50 = vld [vmem:[#allocation138_spill] sm:$0xff]  ;;  %v7804_v24 = vld [vmem:[#allocation177_spill] sm:$0xff] }
 0x486   : > { %v942_v8 = vsub.f32 %v7791_v51, %v7790_v14  ;;  %v7793_v44 = vsub.f32 1.0, %v7792_v3  ;;  %v943_v49 = vsub.f32 %v7791_v51, %v5532_v45  ;;  %v6960_v59 = vadd.f32 %v2960_v4, %v2472_v40  ;;  %v7803_v9 = vld [vmem:[#allocation124_spill] sm:$0xff]  ;;  %v7808_v2 = vld [vmem:[#allocation139_spill] sm:$0xff] }
 0x487   : > { %v6958_v37 = vadd.f32 %v2961_v31, %v2473_v13  ;;  %v6963_v23 = vadd.f32 %v6824_v55, %v2474_v33  ;;  %v2855_v6 = vmax.f32 %v2831_v20, 0.0  ;;  %v2573_v26 = vsub.f32 1.0, %v7794_v1  ;;  %v7806_v20 = vld [vmem:[#allocation4_spill] sm:$0xff]  ;;  %v7810_v31 = vld [vmem:[#allocation137_spill] sm:$0xff] }
 0x488   : > { %v2085_v60 = vmax.f32 %v7793_v44, 0.0  ;;  %v2574_v63 = vsub.f32 1.0, %v7795_v38  ;;  %v2575_v19 = vsub.f32 1.0, %v7796_v62  ;;  %v944_v12 = vsub.f32 %v7791_v51, %v7797_v10  ;;  %v7807_v39 = vld [vmem:[#allocation40_spill] sm:$0xff]  ;;  %v7812_v51 = vld [vmem:[#allocation2_spill] sm:$0xff] }
 0x489   : > { %v7799_v32 = vsub.f32 1.0, %v7798_v52  ;;  %v2421_v54 = vmul.f32 %v7801_v46, %v7800_v48  ;;  %v2422_v55 = vmul.f32 %v7803_v9, %v7802_v50  ;;  %v966_v15 = vand.u32 2147483647, %v942_v8  ;;  %v1859_v18 = vpop.permute.xlu1 %1858  ;;  %v7809_v5 = vld [vmem:[#allocation76_spill] sm:$0xff]  ;;  %v7814_v48 = vld [vmem:[#allocation19_spill] sm:$0xff] }
 0x48a   : > { %v7805_v53 = vsub.f32 1.0, %v7804_v24  ;;  %v2423_v4 = vmul.f32 %v7807_v39, %v7806_v20  ;;  %v2933_v58 = vmul.f32 %v2853_v43, %v7808_v2  ;;  %v967_v41 = vand.u32 2147483647, %v943_v49  ;;  %v7811_v13 = vld [vmem:[#allocation140_spill] sm:$0xff] }
 0x48b   : > { %v2086_v56 = vmax.f32 %v7799_v32, 0.0  ;;  %v1510_v42 = vsub.f32 %v7809_v5, %v7790_v14  ;;  %v1886_v33 = vmul.f32 %v1859_v18, %v7810_v31  ;;  %v2934_v40 = vmul.f32 %v2854_v0, %v7811_v13  ;;  %v7813_v49 = vld [vmem:[#allocation136_spill] sm:$0xff]  ;;  %v7816_v0 = vld [vmem:[#allocation141_spill] sm:$0xff] }
 0x48c   : > { %v2087_v27 = vmax.f32 %v7805_v53, 0.0  ;;  %v1887_v3 = vmul.f32 %v1859_v18, %v7812_v51  ;;  %v2597_v8 = vmax.f32 %v2573_v26, 0.0  ;;  %v2598_v44 = vmax.f32 %v2574_v63, 0.0  ;;  %v7815_v50 = vld [vmem:[#allocation64_spill] sm:$0xff]  ;;  %v7817_v63 = vld [vmem:[#allocation169_spill] sm:$0xff] }
 0x48d   : > { %v2599_v1 = vmax.f32 %v2575_v19, 0.0  ;;  %v968_v38 = vand.u32 2147483647, %v944_v12  ;;  %v1511_v62 = vsub.f32 %v7809_v5, %v5532_v45  ;;  %v1512_v43 = vsub.f32 %v7809_v5, %v7797_v10 }
 0x48e   : > { %v1885_v52 = vmul.f32 %v1859_v18, %v7813_v49  ;;  %v990_v32 = vsub.f32 1.0, %v966_v15  ;;  %v1374_v46 = vmul.f32 %v1344_v61, %v7814_v48  ;;  %v1375_v9 = vmul.f32 %v1344_v61, %v7815_v50  ;;  %v2371_v20 = vpop.permute.xlu1 %2370 }
 0x48f   : > { %v2935_v24 = vmul.f32 %v2855_v6, %v7816_v0  ;;  %v991_v53 = vsub.f32 1.0, %v967_v41  ;;  %v1534_v26 = vand.u32 2147483647, %v1510_v42  ;;  %v1373_v19 = vmul.f32 %v1344_v61, %v7817_v63  ;;  %v7818_v0 = vld [vmem:[#allocation52_spill] sm:$0xff] }
 0x490   : > { %v1934_v12 = vmul.f32 %v1910_v11, %v1886_v33  ;;  %v1935_v39 = vmul.f32 %v1911_v35, %v1887_v3  ;;  %v2397_v2 = vmul.f32 %v2371_v20, %v2085_v60  ;;  %v2398_v31 = vmul.f32 %v2371_v20, %v2086_v56  ;;  %v7819_v35 = vld [vmem:[#allocation84_spill] sm:$0xff] }
 0x491   : > { %v2399_v13 = vmul.f32 %v2371_v20, %v2087_v27  ;;  %v992_v5 = vsub.f32 1.0, %v968_v38  ;;  %v1535_v51 = vand.u32 2147483647, %v1511_v62  ;;  %v1536_v18 = vand.u32 2147483647, %v1512_v43 }
 0x492   : > { %v1933_v15 = vmul.f32 %v1909_v57, %v1885_v52  ;;  %v1422_v49 = vmul.f32 %v6937_v29, %v1374_v46  ;;  %v1423_v48 = vmul.f32 %v6941_v21, %v1375_v9  ;;  %v2446_v50 = vmul.f32 %v2422_v55, %v2398_v31 }
 0x493   : > { %v2447_v6 = vmul.f32 %v2423_v4, %v2399_v13  ;;  %v1014_v41 = vmax.f32 %v990_v32, 0.0  ;;  %v1558_v42 = vsub.f32 1.0, %v1534_v26  ;;  %v1421_v61 = vmul.f32 %v7818_v0, %v1373_v19  ;;  %v2883_v57 = vpop.permute.xlu1 %2882  ;;  %v7826_v0 = vld [vmem:[#allocation78_spill] sm:$0xff] }
 0x494   : > { %v2445_v11 = vmul.f32 %v2421_v54, %v2397_v2  ;;  %v2022_v60 = vsub.f32 %v7819_v35, %v7790_v14  ;;  %v2023_v56 = vsub.f32 %v7819_v35, %v5532_v45  ;;  %v1958_v27 = vadd.f32 %v1934_v12, %v1422_v49  ;;  %v7821_v2 = vld [vmem:[#allocation22_spill] sm:$0xff] }
 0x495   : > { %v1959_v33 = vadd.f32 %v1935_v39, %v1423_v48  ;;  %v1957_v3 = vadd.f32 %v1933_v15, %v1421_v61  ;;  %v2909_v29 = vmul.f32 %v2883_v57, %v2597_v8  ;;  %v2910_v38 = vmul.f32 %v2883_v57, %v2598_v44  ;;  %v7820_v39 = vld [vmem:[#allocation172_spill] sm:$0xff]  ;;  %v7823_v15 = vld [vmem:[#allocation53_spill] sm:$0xff]  ;;  %v7824_v49 = vld [vmem:[#allocation106_spill] sm:$0xff] }
 0x496   : > { %v2911_v21 = vmul.f32 %v2883_v57, %v2599_v1  ;;  %v1559_v55 = vsub.f32 1.0, %v1535_v51  ;;  %v1560_v4 = vsub.f32 1.0, %v1536_v18  ;;  %v2470_v43 = vadd.f32 %v2446_v50, %v1958_v27  ;;  %v7822_v51 = vld [vmem:[#allocation44_spill] sm:$0xff]  ;;  %v7825_v50 = vld [vmem:[#allocation77_spill] sm:$0xff] }
 0x497   : > { %v2471_v62 = vadd.f32 %v2447_v6, %v1959_v33  ;;  %v2957_v52 = vmul.f32 %v2933_v58, %v2909_v29  ;;  %v2958_v32 = vmul.f32 %v2934_v40, %v2910_v38  ;;  %v2469_v46 = vadd.f32 %v2445_v11, %v1957_v3  ;;  %v7827_v11 = vld [vmem:[#allocation79_spill] sm:$0xff]  ;;  %v7830_v57 = vld [vmem:[#allocation56_spill] sm:$0xff]  ;;  %v7831_v3 = vld [vmem:[#allocation85_spill] sm:$0xff] }
 0x498   : > { %v2959_v54 = vmul.f32 %v2935_v24, %v2911_v21  ;;  %v1015_v9 = vmax.f32 %v991_v53, 0.0  ;;  %v1016_v26 = vmax.f32 %v992_v5, 0.0  ;;  %v2024_v63 = vsub.f32 %v7819_v35, %v7797_v10  ;;  %v1359_v8 = vpop.permute.xlu1 %1358  ;;  %v7832_v38 = vld [vmem:[#allocation57_spill] sm:$0xff] }
 0x499   : > { %v7004_v19 = vand.u32 2147483647, %v2022_v60  ;;  %v7006_v12 = vand.u32 2147483647, %v2023_v56  ;;  %v2982_v44 = vadd.f32 %v2958_v32, %v2470_v43  ;;  %v2981_v1 = vadd.f32 %v2957_v52, %v2469_v46  ;;  %v7828_v56 = vld [vmem:[#allocation54_spill] sm:$0xff] }
 0x49a   : > { %v7008_v20 = vadd.f32 %v2959_v54, %v2471_v62  ;;  %v2929_v58 = vmul.f32 %v7821_v2, %v7820_v39  ;;  %v1382_v40 = vmul.f32 %v1359_v8, %v1014_v41  ;;  %v1383_v24 = vmul.f32 %v1359_v8, %v1015_v9  ;;  %v7833_v32 = vld [vmem:[#allocation42_spill] sm:$0xff] }
 0x49b   : > { %v1384_v31 = vmul.f32 %v1359_v8, %v1016_v26  ;;  %v1582_v53 = vmax.f32 %v1558_v42, 0.0  ;;  %v1583_v13 = vmax.f32 %v1559_v55, 0.0  ;;  %v1584_v5 = vmax.f32 %v1560_v4, 0.0  ;;  %3538 = vmatprep.mubr.f32.mxu0 %v2982_v44  ;;  %v7834_v9 = vld [vmem:[#allocation58_spill] sm:$0xff] }
 0x49c   : > { %v2905_v18 = vmul.f32 %v6883_v34, %v7822_v51  ;;  %v2662_v48 = vsub.f32 %v7824_v49, %v7823_v15  ;;  %v1430_v6 = vmul.f32 %v7825_v50, %v1382_v40  ;;  %v1431_v61 = vmul.f32 %v7826_v0, %v1383_v24  ;;  %3539 = vmatmul.mubr.f32.gmra.mrb[16].mxu0 %v2981_v1  ;;  %v7829_v34 = vld [vmem:[#allocation55_spill] sm:$0xff]  ;;  %v7836_v8 = vld [vmem:[#allocation82_spill] sm:$0xff]  ;;  %v7840_v15 = vld [vmem:[#allocation173_spill] sm:$0xff] }
 0x49d   : > { %v1432_v35 = vmul.f32 %v7827_v11, %v1384_v31  ;;  %v2048_v41 = vand.u32 2147483647, %v2024_v63  ;;  %v2070_v60 = vsub.f32 1.0, %v7004_v19  ;;  %v2071_v42 = vsub.f32 1.0, %v7006_v12  ;;  %3543 = vmatprep.mubr.f32.mxu0 %v6958_v37  ;;  %v1871_v55 = vpop.permute.xlu1 %1870  ;;  %v7835_v19 = vld [vmem:[#allocation81_spill] sm:$0xff]  ;;  %v7837_v1 = vld [vmem:[#allocation83_spill] sm:$0xff] }
 0x49e   : > { %v2663_v27 = vsub.f32 %v7824_v49, %v7828_v56  ;;  %v2664_v33 = vsub.f32 %v7824_v49, %v7829_v34  ;;  %v2790_v29 = vsub.f32 %v7831_v3, %v7830_v57  ;;  %v2791_v21 = vsub.f32 %v7831_v3, %v7832_v38  ;;  %v7842_v11 = vld [vmem:[#allocation65_spill] sm:$0xff] }
 0x49f   : > { %v2953_v4 = vmul.f32 %v2929_v58, %v2905_v18  ;;  %v1894_v62 = vmul.f32 %v1871_v55, %v1582_v53  ;;  %v1895_v43 = vmul.f32 %v1871_v55, %v1583_v13  ;;  %v1896_v52 = vmul.f32 %v1871_v55, %v1584_v5  ;;  %v7838_v5 = vld [vmem:[#allocation43_spill] sm:$0xff]  ;;  %v7839_v18 = vld [vmem:[#allocation32_spill] sm:$0xff] }
 0x4a0   : > { %v2534_v54 = vsub.f32 %v7833_v32, %v7790_v14  ;;  %v2535_v37 = vsub.f32 %v7833_v32, %v5532_v45  ;;  %v2686_v46 = vand.u32 2147483647, %v2662_v48  ;;  %v2792_v26 = vsub.f32 %v7831_v3, %v7834_v9  ;;  %3544 = vmatmul.mubr.f32.gmra.mrb[18].mxu0 %v6960_v59 }
 0x4a1   : > { %v2687_v63 = vand.u32 2147483647, %v2663_v27  ;;  %v1942_v12 = vmul.f32 %v7835_v19, %v1894_v62  ;;  %v1943_v44 = vmul.f32 %v7836_v8, %v1895_v43  ;;  %v1944_v39 = vmul.f32 %v7837_v1, %v1896_v52  ;;  %4310 = vmatprep.mubr.msk.f32.mxu0 %vm3429_vm3, %v6876_v7  ;;  %v7844_v27 = vld [vmem:[#allocation67_spill] sm:$0xff]  ;;  %v7847_v52 = vld [vmem:[#allocation6_spill] sm:$0xff] }
 0x4a2   : > { %v2536_v14 = vsub.f32 %v7833_v32, %v7797_v10  ;;  %v2688_v45 = vand.u32 2147483647, %v2664_v33  ;;  %v2814_v2 = vand.u32 2147483647, %v2790_v29  ;;  %v2815_v58 = vand.u32 2147483647, %v2791_v21  ;;  %v1354_v31 = vpop.permute.xlu1 %1353 }
 0x4a3   : > { %v7044_v40 = vadd.f32 %v1942_v12, %v1430_v6  ;;  %v7046_v24 = vadd.f32 %v1943_v44, %v1431_v61  ;;  %v7048_v59 = vadd.f32 %v1944_v39, %v1432_v35  ;;  %v2977_v53 = vadd.f32 %v2953_v4, %v6888_v17  ;;  %v7841_v10 = vld [vmem:[#allocation131_spill] sm:$0xff]  ;;  %v7843_v17 = vld [vmem:[#allocation66_spill] sm:$0xff]  ;;  %v7849_v12 = vld [vmem:[#allocation69_spill] sm:$0xff] }
 0x4a4   : > { %v2816_v13 = vand.u32 2147483647, %v2792_v26  ;;  %v1379_v51 = vmul.f32 %v1354_v31, %v7838_v5  ;;  %v1380_v7 = vmul.f32 %v1354_v31, %v7839_v18  ;;  %v1381_v49 = vmul.f32 %v1354_v31, %v7840_v15  ;;  %4311 = vmatmul.mubr.msk.f32.vlgmr.msra.gmra.mrb[20].mxu0 %vm3429_vm3, %v7841_v10  ;;  %v7845_v33 = vld [vmem:[#allocation174_spill] sm:$0xff]  ;;  %v7851_v39 = vld [vmem:[#allocation71_spill] sm:$0xff] }
 0x4a5   : > { %v2072_v48 = vsub.f32 1.0, %v2048_v41  ;;  %v2558_v50 = vand.u32 2147483647, %v2534_v54  ;;  %v2559_v6 = vand.u32 2147483647, %v2535_v37  ;;  %v2710_v0 = vsub.f32 1.0, %v2686_v46  ;;  %4313 = vmatprep.mubr.msk.f32.mxu0 %vm3429_vm3, %v2977_v53 }
 0x4a6   : > { %v2838_v61 = vsub.f32 1.0, %v2814_v2  ;;  %v1427_v35 = vmul.f32 %v7842_v11, %v1379_v51  ;;  %v1428_v56 = vmul.f32 %v7843_v17, %v1380_v7  ;;  %v1429_v34 = vmul.f32 %v7844_v27, %v1381_v49  ;;  %v7848_v54 = vld [vmem:[#allocation175_spill] sm:$0xff]  ;;  %v7850_v44 = vld [vmem:[#allocation70_spill] sm:$0xff]  ;;  %v7854_v11 = vld [vmem:[#allocation92_spill] sm:$0xff] }
 0x4a7   : > { %v7846_v57 = vsub.f32 1.0, %v7845_v33  ;;  %v2094_v29 = vmax.f32 %v2070_v60, 0.0  ;;  %v2095_v38 = vmax.f32 %v2071_v42, 0.0  ;;  %v2711_v21 = vsub.f32 1.0, %v2687_v63  ;;  %v1867_v43 = vpop.permute.xlu1 %1866 }
 0x4a8   : > { %v2560_v55 = vand.u32 2147483647, %v2536_v14  ;;  %v2712_v41 = vsub.f32 1.0, %v2688_v45  ;;  %v2839_v4 = vsub.f32 1.0, %v2815_v58  ;;  %v2840_v62 = vsub.f32 1.0, %v2816_v13  ;;  %4314 = vmatmul.mubr.msk.f32.gmra.mrb[22].mxu0 %vm3429_vm3, %v6898_v16 }
 0x4a9   : > { %v1581_v3 = vmax.f32 %v7846_v57, 0.0  ;;  %v1891_v32 = vmul.f32 %v1867_v43, %v7847_v52  ;;  %v1892_v37 = vmul.f32 %v1867_v43, %v7848_v54  ;;  %4316 = vmatprep.mubr.msk.f32.mxu0 %vm3429_vm3, %v7008_v20  ;;  %v2582_v9 = vsub.f32 1.0, %v2558_v50 }
 0x4aa   : > { %v2096_v60 = vmax.f32 %v2072_v48, 0.0  ;;  %v2734_v42 = vmax.f32 %v2710_v0, 0.0  ;;  %v2862_v26 = vmax.f32 %v2838_v61, 0.0  ;;  %v2583_v63 = vsub.f32 1.0, %v2559_v6  ;;  %v7852_v6 = vld [vmem:[#allocation90_spill] sm:$0xff] }
 0x4ab   : > { %v1893_v46 = vmul.f32 %v1867_v43, %v1581_v3  ;;  %v2735_v19 = vmax.f32 %v2711_v21, 0.0  ;;  %v1939_v8 = vmul.f32 %v7849_v12, %v1891_v32  ;;  %v1940_v1 = vmul.f32 %v7850_v44, %v1892_v37 }
 0x4ac   : > { %v2736_v14 = vmax.f32 %v2712_v41, 0.0  ;;  %v2863_v45 = vmax.f32 %v2839_v4, 0.0  ;;  %v2864_v2 = vmax.f32 %v2840_v62, 0.0  ;;  %4317 = vmatmul.mubr.msk.f32.gmra.mrb[24].mxu0 %vm3429_vm3, %v6963_v23  ;;  %v2584_v58 = vsub.f32 1.0, %v2560_v55  ;;  %v2383_v13 = vpop.permute.xlu1 %2382  ;;  %v7853_v23 = vld [vmem:[#allocation91_spill] sm:$0xff] }
 0x4ad   : > { %v1941_v16 = vmul.f32 %v7851_v39, %v1893_v46  ;;  %v1963_v20 = vadd.f32 %v1939_v8, %v1427_v35  ;;  %v1964_v31 = vadd.f32 %v1940_v1, %v1428_v56  ;;  %v2606_v5 = vmax.f32 %v2582_v9, 0.0 }
 0x4ae   : > { %v2406_v51 = vmul.f32 %v2383_v13, %v2094_v29  ;;  %v2407_v18 = vmul.f32 %v2383_v13, %v2095_v38  ;;  %v2408_v7 = vmul.f32 %v2383_v13, %v2096_v60  ;;  %v2942_v15 = vmul.f32 %v2862_v26, %v2734_v42 }
 0x4af   : > { %v1965_v53 = vadd.f32 %v1941_v16, %v1429_v34  ;;  %v2475_v49 = vadd.f32 %v6838_v36, %v1963_v20  ;;  %v2607_v10 = vmax.f32 %v2583_v63, 0.0  ;;  %v2476_v48 = vadd.f32 %v6843_v25, %v1964_v31 }
 0x4b0   : > { %v2454_v0 = vmul.f32 %v7852_v6, %v2406_v51  ;;  %v2455_v61 = vmul.f32 %v7853_v23, %v2407_v18  ;;  %v2456_v35 = vmul.f32 %v7854_v11, %v2408_v7  ;;  %v2943_v17 = vmul.f32 %v2863_v45, %v2735_v19 }
 0x4b1   : > { %v2477_v50 = vadd.f32 %v6846_v28, %v1965_v53  ;;  %v2987_v56 = vadd.f32 %v6858_v22, %v2475_v49  ;;  %v2608_v27 = vmax.f32 %v2584_v58, 0.0  ;;  %v2988_v34 = vadd.f32 %v6861_v47, %v2476_v48  ;;  %v2895_v25 = vpop.permute.xlu1 %2894 }
 0x4b2   : > { %v2480_v36 = vadd.f32 %v2456_v35, %v7048_v59  ;;  %v2944_v57 = vmul.f32 %v2864_v2, %v2736_v14  ;;  %v2479_v28 = vadd.f32 %v2455_v61, %v7046_v24  ;;  %v2478_v3 = vadd.f32 %v2454_v0, %v7044_v40  ;;  %v3664_v40 = vld [vmem:[%s471_s25] sm:$0xff] }
 0x4b3   : > { %v2989_v33 = vadd.f32 %v6864_v30, %v2477_v50  ;;  %v2918_v29 = vmul.f32 %v2895_v25, %v2606_v5  ;;  %v2919_v38 = vmul.f32 %v2895_v25, %v2607_v10  ;;  %v2920_v21 = vmul.f32 %v2895_v25, %v2608_v27  ;;  %3548 = vmatprep.mubr.f32.mxu1 %v2988_v34 }
 0x4b4   : > { %3549 = vmatmul.mubr.f32.vlgmr.msra.gmra.mrb[40].mxu1 %v2987_v56  ;;  %4322 = vmatprep.subr.mxu0 %v3664_v40 }
 0x4b5   : > { %4319 = vmatprep.mubr.msk.f32.mxu0 %vm3429_vm3, %v2989_v33  ;;  %v2966_v22 = vmul.f32 %v2942_v15, %v2918_v29  ;;  %v2967_v47 = vmul.f32 %v2943_v17, %v2919_v38  ;;  %v2968_v55 = vmul.f32 %v2944_v57, %v2920_v21  ;;  %4323 = vmatpush3.msra.mxu0 %v3664_v40  ;;  %v4062_v33 = vld [vmem:[%s7167_s9] ss:$0 sm:$0xff] (!%p4061_p7) }
 0x4b6   : > { %3806 = vst.msk [vmem:[%s4795_s26] sm:$0xff] (!%p4061_p7), %vm496_vm0, %v4062_v33  ;;  %3807 = vst.msk [vmem:[%s4795_s26 + $0x8] sm:$0xff] (!%p4061_p7), %vm496_vm0, %v4062_v33 }
 0x4b7   : > { %v2992_v30 = vadd.f32 %v2968_v55, %v2480_v36  ;;  %v2991_v41 = vadd.f32 %v2967_v47, %v2479_v28  ;;  %v2990_v59 = vadd.f32 %v2966_v22, %v2478_v3  ;;  %3808 = vst.msk [vmem:[%s4795_s26 + $0x10] sm:$0xff] (!%p4061_p7), %vm496_vm0, %v4062_v33  ;;  %3809 = vst.msk [vmem:[%s4795_s26 + $0x18] sm:$0xff] (!%p4061_p7), %vm496_vm0, %v4062_v33 }
 0x4b8   : > { %3810 = vst.msk [vmem:[%s4795_s26 + $0x20] sm:$0xff] (!%p4061_p7), %vm496_vm0, %v4062_v33  ;;  %3811 = vst.msk [vmem:[%s4795_s26 + $0x28] sm:$0xff] (!%p4061_p7), %vm496_vm0, %v4062_v33 }
 0x4b9   : > { %3553 = vmatprep.mubr.f32.mxu1 %v2991_v41  ;;  %4320 = vmatmul.mubr.msk.f32.gmra.mrb[26].mxu0 %vm3429_vm3, %v2992_v30  ;;  %3812 = vst.msk [vmem:[%s4795_s26 + $0x30] sm:$0xff] (!%p4061_p7), %vm496_vm0, %v4062_v33  ;;  %3813 = vst.msk [vmem:[%s4795_s26 + $0x38] sm:$0xff] (!%p4061_p7), %vm496_vm0, %v4062_v33 }
 0x4ba   : > { %3554 = vmatmul.mubr.f32.gmra.mrb[42].mxu1 %v2990_v59 }
 0x543   : > { %v4157_v24 = vpop.f32.mrb[8].mxu0 }
 0x544   : > { %v4158_v4 = vpop.f32.mrb[9].mxu0 }
 0x545   : > { %v4159_v62 = vadd.f32 %v4158_v4, %v4157_v24 }
 0x547   : > { %v4160_v43 = vpop.f32.mrb[10].mxu0 }
 0x548   : > { %v4161_v52 = vpop.f32.mrb[11].mxu0 }
 0x549   : > { %v4162_v32 = vadd.f32 %v4161_v52, %v4160_v43 }
 0x550   : > { %v4163_v54 = vpop.f32.mrb[12].mxu0 }
 0x551   : > { %v4164_v37 = vpop.f32.mrb[13].mxu0 }
 0x552   : > { %v4165_v46 = vadd.f32 %v4164_v37, %v4163_v54 }
 0x554   : > { %v4166_v9 = vpop.f32.mrb[14].mxu0 }
 0x555   : > { %v4167_v60 = vpop.f32.mrb[15].mxu0 }
 0x556   : > { %v4168_v42 = vadd.f32 %v4167_v60, %v4166_v9 }
 0x56f   : > { %v4169_v26 = vpop.f32.mrb[16].mxu0 }
 0x570   : > { %v4170_v63 = vpop.f32.mrb[17].mxu0 }
 0x571   : > { %v4171_v19 = vadd.f32 %v4170_v63, %v4169_v26 }
 0x573   : > { %v4172_v12 = vpop.f32.mrb[18].mxu0 }
 0x574   : > { %v4173_v8 = vpop.f32.mrb[19].mxu0 }
 0x575   : > { %v4174_v44 = vadd.f32 %v4173_v8, %v4172_v12 }
 0x577   : > { %v4312_v1 = vpop.f32.mrb[20].mxu0 }
 0x578   : > { %v3631_v39 = vadd.f32 %v4312_v1, %v4162_v32  ;;  %v3625_v16 = vpop.f32.mrb[21].mxu0 }
 0x579   : > { %v3626_v14 = vadd.f32 %v4159_v62, %v3625_v16 }
 0x57b   : > { %v4315_v45 = vpop.f32.mrb[22].mxu0  ;;  %4324 = vmatprep.mubr.msk.f32.mxu0 %vm3665_vm4, %v3626_v14 }
 0x57c   : > { %v3641_v2 = vadd.f32 %v4315_v45, %v4168_v42  ;;  %v3635_v58 = vpop.f32.mrb[23].mxu0  ;;  %4325 = vmatmul.mubr.msk.f32.vlgmr.msra.gmra.mrb[28].mxu0 %vm3665_vm4, %v3631_v39 }
 0x57d   : > { %v3636_v20 = vadd.f32 %v4165_v46, %v3635_v58 }
 0x57f   : > { %v4318_v31 = vpop.f32.mrb[24].mxu0  ;;  %4327 = vmatprep.mubr.msk.f32.mxu0 %vm3665_vm4, %v3636_v20 }
 0x580   : > { %v3651_v53 = vadd.f32 %v4318_v31, %v4174_v44  ;;  %v3645_v13 = vpop.f32.mrb[25].mxu0  ;;  %4328 = vmatmul.mubr.msk.f32.gmra.mrb[30].mxu0 %vm3665_vm4, %v3641_v2 }
 0x581   : > { %v3646_v5 = vadd.f32 %v4171_v19, %v3645_v13 }
 0x583   : > { %4330 = vmatprep.mubr.msk.f32.mxu0 %vm3665_vm4, %v3646_v5 }
 0x584   : > { %4331 = vmatmul.mubr.msk.f32.gmra.mrb[32].mxu0 %vm3665_vm4, %v3651_v53 }
 0x587   : > { %v4175_v51 = vpop.f32.mrb[40].mxu1 }
 0x588   : > { %v4176_v18 = vpop.f32.mrb[41].mxu1 }
 0x589   : > { %v4177_v7 = vadd.f32 %v4176_v18, %v4175_v51 }
 0x58c   : > { %v4321_v15 = vpop.f32.mrb[26].mxu0 }
 0x58d   : > { %v4178_v49 = vpop.f32.mrb[42].mxu1  ;;  %v3655_v10 = vpop.f32.mrb[27].mxu0 }
 0x58e   : > { %v3656_v48 = vadd.f32 %v4177_v7, %v3655_v10  ;;  %v4179_v50 = vpop.f32.mrb[43].mxu1 }
 0x58f   : > { %v4180_v6 = vadd.f32 %v4179_v50, %v4178_v49 }
 0x590   : > { %4333 = vmatprep.mubr.msk.f32.mxu0 %vm3665_vm4, %v3656_v48 }
 0x591   : > { %v3661_v0 = vadd.f32 %v4321_v15, %v4180_v6 }
 0x593   : > { %4334 = vmatmul.mubr.msk.f32.gmra.mrb[34].mxu0 %vm3665_vm4, %v3661_v0 }
 0x64f   : > { %v4326_v23 = vpop.f32.mrb[28].mxu0 }
 0x650   : > { %v3756_v61 = vpop.f32.mrb[29].mxu0 }
 0x653   : > { %v4329_v11 = vpop.f32.mrb[30].mxu0 }
 0x654   : > { %v3766_v35 = vpop.f32.mrb[31].mxu0 }
 0x657   : > { %v4332_v17 = vpop.f32.mrb[32].mxu0 }
 0x658   : > { %v3776_v56 = vpop.f32.mrb[33].mxu0 }
 0x661   : > { %3798 = sbr.rel (%p4061_p7) target bundleno = 1640 (0x668), region = 64 }
 0x666   : > { %v4335_v27 = vpop.f32.mrb[34].mxu0 }
 0x667   : > { %v3786_v34 = vpop.f32.mrb[35].mxu0 }
 0x668 PF: > { %v3814_v36 = vld [vmem:[%s4795_s26] sm:$0xff]  ;;  %v3815_v57 = vld [vmem:[%s4795_s26 + $0x8] sm:$0xff]  ;;  %v3816_v25 = vld [vmem:[%s4795_s26 + $0x10] sm:$0xff] }
 0x669   : > { %v3822_v28 = vadd.f32 %v3814_v36, %v3756_v61  ;;  %v3823_v3 = vadd.f32 %v4326_v23, %v3815_v57  ;;  %v3824_v29 = vadd.f32 %v3816_v25, %v3766_v35  ;;  %v3817_v38 = vld [vmem:[%s4795_s26 + $0x18] sm:$0xff]  ;;  %v3818_v21 = vld [vmem:[%s4795_s26 + $0x20] sm:$0xff]  ;;  %v3819_v22 = vld [vmem:[%s4795_s26 + $0x28] sm:$0xff] }
 0x66a   : > { %v3825_v47 = vadd.f32 %v4329_v11, %v3817_v38  ;;  %v3826_v55 = vadd.f32 %v3818_v21, %v3776_v56  ;;  %v3827_v30 = vadd.f32 %v4332_v17, %v3819_v22  ;;  %v3820_v41 = vld [vmem:[%s4795_s26 + $0x30] sm:$0xff]  ;;  %v3821_v59 = vld [vmem:[%s4795_s26 + $0x38] sm:$0xff] }
 0x66b   : > { %3830 = vst.msk [vmem:[%s4795_s26] sm:$0xff] %vm496_vm0, %v3822_v28  ;;  %3831 = vst.msk [vmem:[%s4795_s26 + $0x8] sm:$0xff] %vm496_vm0, %v3823_v3  ;;  %v3828_v40 = vadd.f32 %v3820_v41, %v3786_v34  ;;  %v3829_v24 = vadd.f32 %v4335_v27, %v3821_v59 }
 0x66c   : > { %3832 = vst.msk [vmem:[%s4795_s26 + $0x10] sm:$0xff] %vm496_vm0, %v3824_v29  ;;  %3833 = vst.msk [vmem:[%s4795_s26 + $0x18] sm:$0xff] %vm496_vm0, %v3825_v47 }
 0x66d   : > { %3834 = vst.msk [vmem:[%s4795_s26 + $0x20] sm:$0xff] %vm496_vm0, %v3826_v55  ;;  %3835 = vst.msk [vmem:[%s4795_s26 + $0x28] sm:$0xff] %vm496_vm0, %v3827_v30 }
 0x66e   : > { %3836 = vst.msk [vmem:[%s4795_s26 + $0x30] sm:$0xff] %vm496_vm0, %v3828_v40  ;;  %3837 = vst.msk [vmem:[%s4795_s26 + $0x38] sm:$0xff] %vm496_vm0, %v3829_v24 }
 0x66f PF: > { %s20_s17 = sadd.s32 1, %s4655_s17   ;;  %s7855_s13 = smov %s4647_s15 }
 0x670   : > { %p17_p8 = scmp.ge.s32.totalorder %s20_s17, 10   ;;  %s7856_s14 = smov %s4651_s16 }
 0x671   : > { %s7857_s15 = smov %s7860_s18  ;;  %s7858_s16 = smov %s7864_s19 }
 0x672   :  { %19 = sbr.rel (!%p17_p8) target bundleno = 3 (0x3), region = 114 }

</bundles_post_ra>
